<compile_context>
chip_gen: v7x
topology: tpu7x:2x2x1
jax: 0.10.0
libtpu: 0.0.40
codegen_flags: <defaults>
</compile_context>

<pallas_src>
import math

import jax
import jax.numpy as jnp
from jax import lax
from jax.experimental import pallas as pl
from jax.experimental.pallas import tpu as pltpu


def _pick_block_b(B, T):
    """Batch rows folded into the matmul M dimension per grid step."""
    bb = max(1, min(B, -(-256 // T)))          # target M = bb*T ~ 256 (MXU-wide)
    if B >= 2:
        bb = min(bb, max(1, B // 2))           # keep >= 2 grid steps (v7x: 2 TCs)
    while B % bb:
        bb -= 1
    return bb


def _vmem_limit_bytes():
    """0.85 * physical VMEM (v5e/v6e ~109 MiB, v7x ~54 MiB); safe fallback."""
    try:
        return int(pltpu.get_tpu_info().vmem_capacity_bytes * 0.85)
    except Exception:
        return 64 * 1024 * 1024


def gated_decoder_layer(trg, enc_src, trg_mask, src_mask, params, *, n_heads,
                        block_b=None):
    B, T, H = trg.shape
    S = enc_src.shape[1]
    PF = params["W1"].shape[1]
    nh = n_heads
    assert H % nh == 0
    hd = H // nh
    bb = _pick_block_b(B, T) if block_b is None else block_b
    assert B % bb == 0
    grid_b = B // bb
    M = bb * T
    Z = nh * bb
    inv_scale = 1.0 / math.sqrt(hd)
    bf16 = jnp.bfloat16

    # ---------------- host-side parameter / input prep (once per call) ---------------
    # masks -> additive bias (0 where kept, -1e10 where masked); trg bias in bf16
    tbias = ((trg_mask - 1.0) * 1e10).astype(bf16)            # (B, T, T)
    sbias = ((src_mask - 1.0) * 1e10).astype(jnp.float32)     # (B, 1, S)

    def gate_halves(name):   # concat([a;b]) @ Wg == a @ Wg[:H] + b @ Wg[H:]
        Wg = params[name]
        return Wg[:H].astype(bf16), Wg[H:].astype(bf16)

    Wg1a, Wg1b = gate_halves("Wg1")
    Wg2a, Wg2b = gate_halves("Wg2")
    Wg3a, Wg3b = gate_halves("Wg3")

    weights = [params["Wq1"].astype(bf16), params["Wk1"].astype(bf16),
               params["Wv1"].astype(bf16), params["Wo1"].astype(bf16), Wg1a, Wg1b,
               params["Wq2"].astype(bf16), params["Wk2"].astype(bf16),
               params["Wv2"].astype(bf16), params["Wo2"].astype(bf16), Wg2a, Wg2b,
               params["W1"].astype(bf16), params["W2"].astype(bf16), Wg3a, Wg3b]

    # all (1, H) vectors packed into one (18, H) f32 array
    vec_names = ("ln1_g", "ln1_b", "bq1", "bk1", "bv1", "bo1", "bg1",
                 "ln2_g", "ln2_b", "bq2", "bk2", "bv2", "bo2", "bg2",
                 "ln3_g", "ln3_b", "b2", "bg3")
    NVEC = len(vec_names)
    (LN1_G, LN1_B, BQ1, BK1, BV1, BO1, BG1,
     LN2_G, LN2_B, BQ2, BK2, BV2, BO2, BG2,
     LN3_G, LN3_B, BF2, BG3) = range(NVEC)
    vecs = jnp.concatenate([params[k] for k in vec_names],
                           axis=0).astype(jnp.float32)        # (18, H)

    bf1 = params["b1"].astype(jnp.float32)                    # (1, PF)

    pf_tile = 512 if (PF > 512 and PF % 512 == 0) else PF     # FFN hidden chunk

    # ---------------------------------- kernel ---------------------------------------
    def kernel(trg_ref, enc_ref, tbias_ref, sbias_ref, vec_ref, bf1_ref,
               Wq1, Wk1, Wv1, Wo1, Wg1a_r, Wg1b_r,
               Wq2, Wk2, Wv2, Wo2, Wg2a_r, Wg2b_r,
               W1, W2, Wg3a_r, Wg3b_r,
               out_ref, attn_ref):
        V = vec_ref[...]                                      # (NVEC, H) f32

        def vrow(i):                                          # (1, H) f32
            return V[i:i + 1]

        x2 = trg_ref[...].reshape(M, H)                       # (bb*T, H) f32
        enc2 = enc_ref[...].reshape(bb * S, H)                # (bb*S, H) f32

        def layer_norm(y, gi, bi):                            # f32 VPU math
            mu = jnp.mean(y, axis=-1, keepdims=True)
            d = y - mu
            var = jnp.mean(d * d, axis=-1, keepdims=True)
            return d * lax.rsqrt(var + 1e-5) * vrow(gi) + vrow(bi)

        def dense(y16, W_ref):                                # bf16 MXU, f32 accum
            return jnp.dot(y16, W_ref[...], preferred_element_type=jnp.float32)

        def gate(a, b, Wa, Wb, bi):
            g = jax.nn.sigmoid(dense(a.astype(bf16), Wa) + dense(b.astype(bf16), Wb)
                               + vrow(bi))
            return g * a + (1.0 - g) * b

        def to_heads(x16, Tx):
            # (bb*Tx, H) bf16 -> (nh*bb, Tx, hd): lane-slice per head (matmuls already
            # done full-width), head-major fused batch axis (no tiled-dim transpose).
            hs = jnp.stack([x16[:, h * hd:(h + 1) * hd] for h in range(nh)], axis=0)
            return hs.reshape(Z, Tx, hd)

        def mha(q_in, kv_in, Tk, bias, Wq, Wk, Wv, Wo, bq_i, bk_i, bv_i, bo_i,
                attn_out):
            # full-width projections: one (rows,H)x(H,H) MXU matmul each, kept in bf16
            q = (dense(q_in.astype(bf16), Wq) + vrow(bq_i)).astype(bf16)    # (M, H)
            k = (dense(kv_in.astype(bf16), Wk) + vrow(bk_i)).astype(bf16)   # (bb*Tk,H)
            v = (dense(kv_in.astype(bf16), Wv) + vrow(bv_i)).astype(bf16)

            q3 = to_heads(q, T)                               # (Z, T, hd)
            k3 = to_heads(k, Tk)                              # (Z, Tk, hd)
            v3 = to_heads(v, Tk)

            # batched attention core over the fused head*batch axis (single einsums)
            e = jnp.einsum("ztd,zkd->ztk", q3, k3,
                           preferred_element_type=jnp.float32) * inv_scale  # (Z,T,Tk)
            e = e.reshape(nh, bb, T, Tk) + bias               # bias broadcasts over nh
            e = e - jnp.max(e, axis=-1, keepdims=True)
            p = jnp.exp(e)
            p = p / jnp.sum(p, axis=-1, keepdims=True)        # exact normalization
            if attn_out is not None:                          # (bb, nh, T, S) output
                for b in range(bb):
                    attn_out[b] = p[:, b].astype(attn_out.dtype)
            c = jnp.einsum("ztk,zkd->ztd", p.reshape(Z, T, Tk).astype(bf16), v3,
                           preferred_element_type=jnp.float32)  # (Z, T, hd)
            c = c.reshape(nh, M, hd).astype(bf16)
            ctx = c[0] if nh == 1 else jnp.concatenate(
                [c[h] for h in range(nh)], axis=-1)           # (M, H) bf16
            # single full-width (M,H)x(H,H) output projection
            return dense(ctx, Wo) + vrow(bo_i)                # (M, H) f32

        # ---- forward pass (dropout = identity, eval mode) ----
        t1 = layer_norm(x2, LN1_G, LN1_B)
        sa = mha(t1, t1, T, tbias_ref[...].astype(jnp.float32),
                 Wq1, Wk1, Wv1, Wo1, BQ1, BK1, BV1, BO1, None)
        f1 = gate(sa, t1, Wg1a_r, Wg1b_r, BG1)

        t2 = layer_norm(f1, LN2_G, LN2_B)
        ca = mha(t2, enc2, S, sbias_ref[...],
                 Wq2, Wk2, Wv2, Wo2, BQ2, BK2, BV2, BO2, attn_ref)
        f2 = gate(ca, t2, Wg2a_r, Wg2b_r, BG2)

        t3 = layer_norm(f2, LN3_G, LN3_B)
        t3_16 = t3.astype(bf16)
        ff = jnp.zeros((M, H), jnp.float32)
        for c0 in range(0, PF, pf_tile):                      # PF-tiled FFN
            hchunk = jnp.maximum(
                jnp.dot(t3_16, W1[:, c0:c0 + pf_tile],
                        preferred_element_type=jnp.float32)
                + bf1_ref[:, c0:c0 + pf_tile], 0.0)
            ff = ff + jnp.dot(hchunk.astype(bf16), W2[c0:c0 + pf_tile, :],
                              preferred_element_type=jnp.float32)
        ff = ff + vrow(BF2)
        out = gate(ff, t3, Wg3a_r, Wg3b_r, BG3)

        out_ref[...] = out.reshape(bb, T, H).astype(out_ref.dtype)

    # ------------------------------- specs / call -------------------------------------
    in_specs = [
        pl.BlockSpec((bb, T, H), lambda b: (b, 0, 0)),
        pl.BlockSpec((bb, S, H), lambda b: (b, 0, 0)),
        pl.BlockSpec((bb, T, T), lambda b: (b, 0, 0)),
        pl.BlockSpec((bb, 1, S), lambda b: (b, 0, 0)),
        pl.BlockSpec((NVEC, H), lambda b: (0, 0)),
        pl.BlockSpec((1, PF), lambda b: (0, 0)),
    ] + [pl.BlockSpec(w.shape, lambda b: (0, 0)) for w in weights]

    out_specs = [
        pl.BlockSpec((bb, T, H), lambda b: (b, 0, 0)),
        pl.BlockSpec((bb, nh, T, S), lambda b: (b, 0, 0, 0)),
    ]

    grid_spec = pltpu.PrefetchScalarGridSpec(
        num_scalar_prefetch=0,
        grid=(grid_b,),
        in_specs=in_specs,
        out_specs=out_specs,
    )

    return pl.pallas_call(
        kernel,
        out_shape=(
            jax.ShapeDtypeStruct((B, T, H), jnp.float32),
            jax.ShapeDtypeStruct((B, nh, T, S), jnp.float32),
        ),
        grid_spec=grid_spec,
        compiler_params=pltpu.CompilerParams(
            dimension_semantics=("parallel",),
            vmem_limit_bytes=_vmem_limit_bytes(),
        ),
    )(trg, enc_src, tbias, sbias, vecs, bf1, *weights)


def init_params(key, H, PF):
    """Deterministic synthetic params (f32 'module' parameters)."""
    ks = iter(jax.random.split(key, 16))
    w = lambda shape: jax.random.normal(next(ks), shape, jnp.float32) * 0.02
    ones = lambda n: jnp.ones((1, n), jnp.float32)
    zeros = lambda n: jnp.zeros((1, n), jnp.float32)

    p = {}
    p["ln1_g"], p["ln1_b"] = ones(H), zeros(H)
    p["Wq1"], p["Wk1"], p["Wv1"], p["Wo1"] = (w((H, H)) for _ in range(4))
    p["bq1"], p["bk1"], p["bv1"], p["bo1"] = (zeros(H) for _ in range(4))
    p["Wg1"], p["bg1"] = w((2 * H, H)), zeros(H)
    p["ln2_g"], p["ln2_b"] = ones(H), zeros(H)
    p["Wq2"], p["Wk2"], p["Wv2"], p["Wo2"] = (w((H, H)) for _ in range(4))
    p["bq2"], p["bk2"], p["bv2"], p["bo2"] = (zeros(H) for _ in range(4))
    p["Wg2"], p["bg2"] = w((2 * H, H)), zeros(H)
    p["ln3_g"], p["ln3_b"] = ones(H), zeros(H)
    p["W1"], p["b1"], p["W2"], p["b2"] = w((H, PF)), zeros(PF), w((PF, H)), zeros(H)
    p["Wg3"], p["bg3"] = w((2 * H, H)), zeros(H)
    return p


if __name__ == "__main__":
    B, T, S, H, N_HEADS, PF = 2, 8, 8, 32, 4, 64

    key = jax.random.PRNGKey(0)
    k_trg, k_enc, k_par = jax.random.split(key, 3)

    trg = jax.random.normal(k_trg, (B, T, H), jnp.float32)
    enc_src = jax.random.normal(k_enc, (B, S, H), jnp.float32)

    # causal target mask (1=keep, 0=mask), broadcast over batch
    trg_mask = jnp.broadcast_to(jnp.tril(jnp.ones((T, T), jnp.float32)), (B, T, T))
    # source padding mask; mask out last two source tokens of batch element 1
    src_mask = jnp.ones((B, 1, S), jnp.float32).at[1, 0, S - 2:].set(0.0)

    params = init_params(k_par, H, PF)

    out, attention = gated_decoder_layer(
        trg, enc_src, trg_mask, src_mask, params, n_heads=N_HEADS)
    jax.block_until_ready((out, attention))

    assert out.shape == (B, T, H)
    assert attention.shape == (B, N_HEADS, T, S)
    assert bool(jnp.all(jnp.isfinite(out))) and bool(jnp.all(jnp.isfinite(attention)))
    print("KERNEL_OK")
</pallas_src>

<mosaic_0001>
module attributes {stable_mosaic.version = 11 : i64} {
  func.func @kernel(%arg0: i32, %arg1: memref<1x8x32xf32, #tpu.memory_space<vmem>>, %arg2: memref<1x8x32xf32, #tpu.memory_space<vmem>>, %arg3: memref<1x8x8xbf16, #tpu.memory_space<vmem>>, %arg4: memref<1x1x8xf32, #tpu.memory_space<vmem>>, %arg5: memref<18x32xf32, #tpu.memory_space<vmem>>, %arg6: memref<1x64xf32, #tpu.memory_space<vmem>>, %arg7: memref<32x32xbf16, #tpu.memory_space<vmem>>, %arg8: memref<32x32xbf16, #tpu.memory_space<vmem>>, %arg9: memref<32x32xbf16, #tpu.memory_space<vmem>>, %arg10: memref<32x32xbf16, #tpu.memory_space<vmem>>, %arg11: memref<32x32xbf16, #tpu.memory_space<vmem>>, %arg12: memref<32x32xbf16, #tpu.memory_space<vmem>>, %arg13: memref<32x32xbf16, #tpu.memory_space<vmem>>, %arg14: memref<32x32xbf16, #tpu.memory_space<vmem>>, %arg15: memref<32x32xbf16, #tpu.memory_space<vmem>>, %arg16: memref<32x32xbf16, #tpu.memory_space<vmem>>, %arg17: memref<32x32xbf16, #tpu.memory_space<vmem>>, %arg18: memref<32x32xbf16, #tpu.memory_space<vmem>>, %arg19: memref<32x64xbf16, #tpu.memory_space<vmem>>, %arg20: memref<64x32xbf16, #tpu.memory_space<vmem>>, %arg21: memref<32x32xbf16, #tpu.memory_space<vmem>>, %arg22: memref<32x32xbf16, #tpu.memory_space<vmem>>, %arg23: memref<1x8x32xf32, #tpu.memory_space<vmem>>, %arg24: memref<1x4x8x8xf32, #tpu.memory_space<vmem>>) attributes {dimension_semantics = [#tpu.dimension_semantics<parallel>], iteration_bounds = array<i64: 2>, scalar_prefetch = 0 : i64, scratch_operands = 0 : i64, tpu.core_type = #tpu.core_type<tc>, window_params = [{transform_indices = @transform_0, window_bounds = array<i64: 1, 8, 32>}, {transform_indices = @transform_1, window_bounds = array<i64: 1, 8, 32>}, {transform_indices = @transform_2, window_bounds = array<i64: 1, 8, 8>}, {transform_indices = @transform_3, window_bounds = array<i64: 1, 1, 8>}, {pipeline_mode = #tpu.pipeline_mode<synchronous>, transform_indices = @transform_4, window_bounds = array<i64: 18, 32>}, {pipeline_mode = #tpu.pipeline_mode<synchronous>, transform_indices = @transform_5, window_bounds = array<i64: 1, 64>}, {pipeline_mode = #tpu.pipeline_mode<synchronous>, transform_indices = @transform_6, window_bounds = array<i64: 32, 32>}, {pipeline_mode = #tpu.pipeline_mode<synchronous>, transform_indices = @transform_7, window_bounds = array<i64: 32, 32>}, {pipeline_mode = #tpu.pipeline_mode<synchronous>, transform_indices = @transform_8, window_bounds = array<i64: 32, 32>}, {pipeline_mode = #tpu.pipeline_mode<synchronous>, transform_indices = @transform_9, window_bounds = array<i64: 32, 32>}, {pipeline_mode = #tpu.pipeline_mode<synchronous>, transform_indices = @transform_10, window_bounds = array<i64: 32, 32>}, {pipeline_mode = #tpu.pipeline_mode<synchronous>, transform_indices = @transform_11, window_bounds = array<i64: 32, 32>}, {pipeline_mode = #tpu.pipeline_mode<synchronous>, transform_indices = @transform_12, window_bounds = array<i64: 32, 32>}, {pipeline_mode = #tpu.pipeline_mode<synchronous>, transform_indices = @transform_13, window_bounds = array<i64: 32, 32>}, {pipeline_mode = #tpu.pipeline_mode<synchronous>, transform_indices = @transform_14, window_bounds = array<i64: 32, 32>}, {pipeline_mode = #tpu.pipeline_mode<synchronous>, transform_indices = @transform_15, window_bounds = array<i64: 32, 32>}, {pipeline_mode = #tpu.pipeline_mode<synchronous>, transform_indices = @transform_16, window_bounds = array<i64: 32, 32>}, {pipeline_mode = #tpu.pipeline_mode<synchronous>, transform_indices = @transform_17, window_bounds = array<i64: 32, 32>}, {pipeline_mode = #tpu.pipeline_mode<synchronous>, transform_indices = @transform_18, window_bounds = array<i64: 32, 64>}, {pipeline_mode = #tpu.pipeline_mode<synchronous>, transform_indices = @transform_19, window_bounds = array<i64: 64, 32>}, {pipeline_mode = #tpu.pipeline_mode<synchronous>, transform_indices = @transform_20, window_bounds = array<i64: 32, 32>}, {pipeline_mode = #tpu.pipeline_mode<synchronous>, transform_indices = @transform_21, window_bounds = array<i64: 32, 32>}, {transform_indices = @transform_22, window_bounds = array<i64: 1, 8, 32>}, {transform_indices = @transform_23, window_bounds = array<i64: 1, 4, 8, 8>}]} {
    %c0 = arith.constant 0 : index
    %c0_0 = arith.constant 0 : index
    %0 = vector.load %arg5[%c0, %c0_0] : memref<18x32xf32, #tpu.memory_space<vmem>>, vector<18x32xf32>
    %c0_1 = arith.constant 0 : index
    %c0_2 = arith.constant 0 : index
    %c0_3 = arith.constant 0 : index
    %1 = vector.load %arg1[%c0_1, %c0_2, %c0_3] : memref<1x8x32xf32, #tpu.memory_space<vmem>>, vector<1x8x32xf32>
    %2 = vector.shape_cast %1 : vector<1x8x32xf32> to vector<8x32xf32>
    %c0_4 = arith.constant 0 : index
    %c0_5 = arith.constant 0 : index
    %c0_6 = arith.constant 0 : index
    %3 = vector.load %arg2[%c0_4, %c0_5, %c0_6] : memref<1x8x32xf32, #tpu.memory_space<vmem>>, vector<1x8x32xf32>
    %4 = vector.shape_cast %3 : vector<1x8x32xf32> to vector<8x32xf32>
    %cst = arith.constant dense<0.000000e+00> : vector<8xf32>
    %5 = vector.multi_reduction <add>, %2, %cst [1] : vector<8x32xf32> to vector<8xf32>
    %6 = vector.shape_cast %5 : vector<8xf32> to vector<8x1xf32>
    %cst_7 = arith.constant 3.200000e+01 : f32
    %7 = vector.broadcast %cst_7 : f32 to vector<8x1xf32>
    %8 = arith.divf %6, %7 : vector<8x1xf32>
    %9 = vector.broadcast %8 : vector<8x1xf32> to vector<8x32xf32>
    %10 = arith.subf %2, %9 : vector<8x32xf32>
    %11 = arith.mulf %10, %10 : vector<8x32xf32>
    %cst_8 = arith.constant dense<0.000000e+00> : vector<8xf32>
    %12 = vector.multi_reduction <add>, %11, %cst_8 [1] : vector<8x32xf32> to vector<8xf32>
    %13 = vector.shape_cast %12 : vector<8xf32> to vector<8x1xf32>
    %cst_9 = arith.constant 3.200000e+01 : f32
    %14 = vector.broadcast %cst_9 : f32 to vector<8x1xf32>
    %15 = arith.divf %13, %14 : vector<8x1xf32>
    %cst_10 = arith.constant 9.99999974E-6 : f32
    %16 = vector.broadcast %cst_10 : f32 to vector<8x1xf32>
    %17 = arith.addf %15, %16 : vector<8x1xf32>
    %18 = math.rsqrt %17 : vector<8x1xf32>
    %19 = vector.broadcast %18 : vector<8x1xf32> to vector<8x32xf32>
    %20 = arith.mulf %10, %19 : vector<8x32xf32>
    %21 = vector.extract_strided_slice %0 {offsets = [0, 0], sizes = [1, 32], strides = [1, 1]} : vector<18x32xf32> to vector<1x32xf32>
    %22 = vector.broadcast %21 : vector<1x32xf32> to vector<8x32xf32>
    %23 = arith.mulf %20, %22 : vector<8x32xf32>
    %24 = vector.extract_strided_slice %0 {offsets = [1, 0], sizes = [1, 32], strides = [1, 1]} : vector<18x32xf32> to vector<1x32xf32>
    %25 = vector.broadcast %24 : vector<1x32xf32> to vector<8x32xf32>
    %26 = arith.addf %23, %25 : vector<8x32xf32>
    %c0_11 = arith.constant 0 : index
    %c0_12 = arith.constant 0 : index
    %c0_13 = arith.constant 0 : index
    %27 = vector.load %arg3[%c0_11, %c0_12, %c0_13] : memref<1x8x8xbf16, #tpu.memory_space<vmem>>, vector<1x8x8xbf16>
    %28 = arith.extf %27 : vector<1x8x8xbf16> to vector<1x8x8xf32>
    %29 = arith.truncf %26 : vector<8x32xf32> to vector<8x32xbf16>
    %c0_14 = arith.constant 0 : index
    %c0_15 = arith.constant 0 : index
    %30 = vector.load %arg7[%c0_14, %c0_15] : memref<32x32xbf16, #tpu.memory_space<vmem>>, vector<32x32xbf16>
    %cst_16 = arith.constant dense<0.000000e+00> : vector<8x32xf32>
    %31 = tpu.matmul %29, %30, %cst_16 {dimension_numbers = #tpu.dot_dimension_numbers<[1], [0], [0], [1], [0, 0, 1, 1], [], []>} : vector<8x32xbf16>, vector<32x32xbf16>, vector<8x32xf32> -> vector<8x32xf32>
    %32 = vector.extract_strided_slice %0 {offsets = [2, 0], sizes = [1, 32], strides = [1, 1]} : vector<18x32xf32> to vector<1x32xf32>
    %33 = vector.broadcast %32 : vector<1x32xf32> to vector<8x32xf32>
    %34 = arith.addf %31, %33 : vector<8x32xf32>
    %35 = arith.truncf %34 : vector<8x32xf32> to vector<8x32xbf16>
    %36 = arith.truncf %26 : vector<8x32xf32> to vector<8x32xbf16>
    %c0_17 = arith.constant 0 : index
    %c0_18 = arith.constant 0 : index
    %37 = vector.load %arg8[%c0_17, %c0_18] : memref<32x32xbf16, #tpu.memory_space<vmem>>, vector<32x32xbf16>
    %cst_19 = arith.constant dense<0.000000e+00> : vector<8x32xf32>
    %38 = tpu.matmul %36, %37, %cst_19 {dimension_numbers = #tpu.dot_dimension_numbers<[1], [0], [0], [1], [0, 0, 1, 1], [], []>} : vector<8x32xbf16>, vector<32x32xbf16>, vector<8x32xf32> -> vector<8x32xf32>
    %39 = vector.extract_strided_slice %0 {offsets = [3, 0], sizes = [1, 32], strides = [1, 1]} : vector<18x32xf32> to vector<1x32xf32>
    %40 = vector.broadcast %39 : vector<1x32xf32> to vector<8x32xf32>
    %41 = arith.addf %38, %40 : vector<8x32xf32>
    %42 = arith.truncf %41 : vector<8x32xf32> to vector<8x32xbf16>
    %43 = arith.truncf %26 : vector<8x32xf32> to vector<8x32xbf16>
    %c0_20 = arith.constant 0 : index
    %c0_21 = arith.constant 0 : index
    %44 = vector.load %arg9[%c0_20, %c0_21] : memref<32x32xbf16, #tpu.memory_space<vmem>>, vector<32x32xbf16>
    %cst_22 = arith.constant dense<0.000000e+00> : vector<8x32xf32>
    %45 = tpu.matmul %43, %44, %cst_22 {dimension_numbers = #tpu.dot_dimension_numbers<[1], [0], [0], [1], [0, 0, 1, 1], [], []>} : vector<8x32xbf16>, vector<32x32xbf16>, vector<8x32xf32> -> vector<8x32xf32>
    %46 = vector.extract_strided_slice %0 {offsets = [4, 0], sizes = [1, 32], strides = [1, 1]} : vector<18x32xf32> to vector<1x32xf32>
    %47 = vector.broadcast %46 : vector<1x32xf32> to vector<8x32xf32>
    %48 = arith.addf %45, %47 : vector<8x32xf32>
    %49 = arith.truncf %48 : vector<8x32xf32> to vector<8x32xbf16>
    %50 = vector.extract_strided_slice %35 {offsets = [0, 0], sizes = [8, 8], strides = [1, 1]} : vector<8x32xbf16> to vector<8x8xbf16>
    %51 = vector.extract_strided_slice %35 {offsets = [0, 8], sizes = [8, 8], strides = [1, 1]} : vector<8x32xbf16> to vector<8x8xbf16>
    %52 = vector.extract_strided_slice %35 {offsets = [0, 16], sizes = [8, 8], strides = [1, 1]} : vector<8x32xbf16> to vector<8x8xbf16>
    %53 = vector.extract_strided_slice %35 {offsets = [0, 24], sizes = [8, 8], strides = [1, 1]} : vector<8x32xbf16> to vector<8x8xbf16>
    %54 = vector.shape_cast %50 : vector<8x8xbf16> to vector<1x8x8xbf16>
    %55 = vector.shape_cast %51 : vector<8x8xbf16> to vector<1x8x8xbf16>
    %56 = vector.shape_cast %52 : vector<8x8xbf16> to vector<1x8x8xbf16>
    %57 = vector.shape_cast %53 : vector<8x8xbf16> to vector<1x8x8xbf16>
    %58 = tpu.concatenate %54, %55, %56, %57 in 0 : vector<1x8x8xbf16>, vector<1x8x8xbf16>, vector<1x8x8xbf16>, vector<1x8x8xbf16> -> vector<4x8x8xbf16>
    %59 = vector.extract_strided_slice %42 {offsets = [0, 0], sizes = [8, 8], strides = [1, 1]} : vector<8x32xbf16> to vector<8x8xbf16>
    %60 = vector.extract_strided_slice %42 {offsets = [0, 8], sizes = [8, 8], strides = [1, 1]} : vector<8x32xbf16> to vector<8x8xbf16>
    %61 = vector.extract_strided_slice %42 {offsets = [0, 16], sizes = [8, 8], strides = [1, 1]} : vector<8x32xbf16> to vector<8x8xbf16>
    %62 = vector.extract_strided_slice %42 {offsets = [0, 24], sizes = [8, 8], strides = [1, 1]} : vector<8x32xbf16> to vector<8x8xbf16>
    %63 = vector.shape_cast %59 : vector<8x8xbf16> to vector<1x8x8xbf16>
    %64 = vector.shape_cast %60 : vector<8x8xbf16> to vector<1x8x8xbf16>
    %65 = vector.shape_cast %61 : vector<8x8xbf16> to vector<1x8x8xbf16>
    %66 = vector.shape_cast %62 : vector<8x8xbf16> to vector<1x8x8xbf16>
    %67 = tpu.concatenate %63, %64, %65, %66 in 0 : vector<1x8x8xbf16>, vector<1x8x8xbf16>, vector<1x8x8xbf16>, vector<1x8x8xbf16> -> vector<4x8x8xbf16>
    %68 = vector.extract_strided_slice %49 {offsets = [0, 0], sizes = [8, 8], strides = [1, 1]} : vector<8x32xbf16> to vector<8x8xbf16>
    %69 = vector.extract_strided_slice %49 {offsets = [0, 8], sizes = [8, 8], strides = [1, 1]} : vector<8x32xbf16> to vector<8x8xbf16>
    %70 = vector.extract_strided_slice %49 {offsets = [0, 16], sizes = [8, 8], strides = [1, 1]} : vector<8x32xbf16> to vector<8x8xbf16>
    %71 = vector.extract_strided_slice %49 {offsets = [0, 24], sizes = [8, 8], strides = [1, 1]} : vector<8x32xbf16> to vector<8x8xbf16>
    %72 = vector.shape_cast %68 : vector<8x8xbf16> to vector<1x8x8xbf16>
    %73 = vector.shape_cast %69 : vector<8x8xbf16> to vector<1x8x8xbf16>
    %74 = vector.shape_cast %70 : vector<8x8xbf16> to vector<1x8x8xbf16>
    %75 = vector.shape_cast %71 : vector<8x8xbf16> to vector<1x8x8xbf16>
    %76 = tpu.concatenate %72, %73, %74, %75 in 0 : vector<1x8x8xbf16>, vector<1x8x8xbf16>, vector<1x8x8xbf16>, vector<1x8x8xbf16> -> vector<4x8x8xbf16>
    "tpu.trace_start"() <{level = 10 : i32, message = "ztd,zkd->ztk"}> : () -> ()
    %cst_23 = arith.constant dense<0.000000e+00> : vector<4x8x8xf32>
    %77 = tpu.matmul %58, %67, %cst_23 {dimension_numbers = #tpu.dot_dimension_numbers<[2], [2], [1], [1], [0, 0, 0, 1, 1, 1], [0], [0]>} : vector<4x8x8xbf16>, vector<4x8x8xbf16>, vector<4x8x8xf32> -> vector<4x8x8xf32>
    "tpu.trace_stop"() : () -> ()
    %cst_24 = arith.constant 0.353553385 : f32
    %78 = vector.broadcast %cst_24 : f32 to vector<4x8x8xf32>
    %79 = arith.mulf %77, %78 : vector<4x8x8xf32>
    %80 = vector.shape_cast %79 : vector<4x8x8xf32> to vector<4x1x8x8xf32>
    %81 = vector.shape_cast %28 : vector<1x8x8xf32> to vector<1x1x8x8xf32>
    %82 = vector.broadcast %81 : vector<1x1x8x8xf32> to vector<4x1x8x8xf32>
    %83 = arith.addf %80, %82 : vector<4x1x8x8xf32>
    %cst_25 = arith.constant dense<0xFF800000> : vector<4x1x8xf32>
    %84 = vector.multi_reduction <maximumf>, %83, %cst_25 [3] : vector<4x1x8x8xf32> to vector<4x1x8xf32>
    %85 = vector.shape_cast %84 : vector<4x1x8xf32> to vector<4x1x8x1xf32>
    %86 = vector.broadcast %85 : vector<4x1x8x1xf32> to vector<4x1x8x8xf32>
    %87 = arith.subf %83, %86 : vector<4x1x8x8xf32>
    %88 = math.exp %87 : vector<4x1x8x8xf32>
    %cst_26 = arith.constant dense<0.000000e+00> : vector<4x1x8xf32>
    %89 = vector.multi_reduction <add>, %88, %cst_26 [3] : vector<4x1x8x8xf32> to vector<4x1x8xf32>
    %90 = vector.shape_cast %89 : vector<4x1x8xf32> to vector<4x1x8x1xf32>
    %91 = vector.broadcast %90 : vector<4x1x8x1xf32> to vector<4x1x8x8xf32>
    %92 = arith.divf %88, %91 : vector<4x1x8x8xf32>
    %93 = vector.shape_cast %92 : vector<4x1x8x8xf32> to vector<4x8x8xf32>
    %94 = arith.truncf %93 : vector<4x8x8xf32> to vector<4x8x8xbf16>
    "tpu.trace_start"() <{level = 10 : i32, message = "ztk,zkd->ztd"}> : () -> ()
    %cst_27 = arith.constant dense<0.000000e+00> : vector<4x8x8xf32>
    %95 = tpu.matmul %94, %76, %cst_27 {dimension_numbers = #tpu.dot_dimension_numbers<[2], [1], [1], [2], [0, 0, 0, 1, 1, 2], [0], [0]>} : vector<4x8x8xbf16>, vector<4x8x8xbf16>, vector<4x8x8xf32> -> vector<4x8x8xf32>
    "tpu.trace_stop"() : () -> ()
    %96 = arith.truncf %95 : vector<4x8x8xf32> to vector<4x8x8xbf16>
    %97 = vector.extract_strided_slice %96 {offsets = [0, 0, 0], sizes = [1, 8, 8], strides = [1, 1, 1]} : vector<4x8x8xbf16> to vector<1x8x8xbf16>
    %98 = vector.shape_cast %97 : vector<1x8x8xbf16> to vector<8x8xbf16>
    %99 = vector.extract_strided_slice %96 {offsets = [1, 0, 0], sizes = [1, 8, 8], strides = [1, 1, 1]} : vector<4x8x8xbf16> to vector<1x8x8xbf16>
    %100 = vector.shape_cast %99 : vector<1x8x8xbf16> to vector<8x8xbf16>
    %101 = vector.extract_strided_slice %96 {offsets = [2, 0, 0], sizes = [1, 8, 8], strides = [1, 1, 1]} : vector<4x8x8xbf16> to vector<1x8x8xbf16>
    %102 = vector.shape_cast %101 : vector<1x8x8xbf16> to vector<8x8xbf16>
    %103 = vector.extract_strided_slice %96 {offsets = [3, 0, 0], sizes = [1, 8, 8], strides = [1, 1, 1]} : vector<4x8x8xbf16> to vector<1x8x8xbf16>
    %104 = vector.shape_cast %103 : vector<1x8x8xbf16> to vector<8x8xbf16>
    %105 = tpu.concatenate %98, %100, %102, %104 in 1 : vector<8x8xbf16>, vector<8x8xbf16>, vector<8x8xbf16>, vector<8x8xbf16> -> vector<8x32xbf16>
    %c0_28 = arith.constant 0 : index
    %c0_29 = arith.constant 0 : index
    %106 = vector.load %arg10[%c0_28, %c0_29] : memref<32x32xbf16, #tpu.memory_space<vmem>>, vector<32x32xbf16>
    %cst_30 = arith.constant dense<0.000000e+00> : vector<8x32xf32>
    %107 = tpu.matmul %105, %106, %cst_30 {dimension_numbers = #tpu.dot_dimension_numbers<[1], [0], [0], [1], [0, 0, 1, 1], [], []>} : vector<8x32xbf16>, vector<32x32xbf16>, vector<8x32xf32> -> vector<8x32xf32>
    %108 = vector.extract_strided_slice %0 {offsets = [5, 0], sizes = [1, 32], strides = [1, 1]} : vector<18x32xf32> to vector<1x32xf32>
    %109 = vector.broadcast %108 : vector<1x32xf32> to vector<8x32xf32>
    %110 = arith.addf %107, %109 : vector<8x32xf32>
    %111 = arith.truncf %110 : vector<8x32xf32> to vector<8x32xbf16>
    %c0_31 = arith.constant 0 : index
    %c0_32 = arith.constant 0 : index
    %112 = vector.load %arg11[%c0_31, %c0_32] : memref<32x32xbf16, #tpu.memory_space<vmem>>, vector<32x32xbf16>
    %cst_33 = arith.constant dense<0.000000e+00> : vector<8x32xf32>
    %113 = tpu.matmul %111, %112, %cst_33 {dimension_numbers = #tpu.dot_dimension_numbers<[1], [0], [0], [1], [0, 0, 1, 1], [], []>} : vector<8x32xbf16>, vector<32x32xbf16>, vector<8x32xf32> -> vector<8x32xf32>
    %114 = arith.truncf %26 : vector<8x32xf32> to vector<8x32xbf16>
    %c0_34 = arith.constant 0 : index
    %c0_35 = arith.constant 0 : index
    %115 = vector.load %arg12[%c0_34, %c0_35] : memref<32x32xbf16, #tpu.memory_space<vmem>>, vector<32x32xbf16>
    %cst_36 = arith.constant dense<0.000000e+00> : vector<8x32xf32>
    %116 = tpu.matmul %114, %115, %cst_36 {dimension_numbers = #tpu.dot_dimension_numbers<[1], [0], [0], [1], [0, 0, 1, 1], [], []>} : vector<8x32xbf16>, vector<32x32xbf16>, vector<8x32xf32> -> vector<8x32xf32>
    %117 = arith.addf %113, %116 : vector<8x32xf32>
    %118 = vector.extract_strided_slice %0 {offsets = [6, 0], sizes = [1, 32], strides = [1, 1]} : vector<18x32xf32> to vector<1x32xf32>
    %119 = vector.broadcast %118 : vector<1x32xf32> to vector<8x32xf32>
    %120 = arith.addf %117, %119 : vector<8x32xf32>
    %121 = arith.negf %120 : vector<8x32xf32>
    %122 = math.exp %121 : vector<8x32xf32>
    %cst_37 = arith.constant 1.000000e+00 : f32
    %123 = vector.broadcast %cst_37 : f32 to vector<8x32xf32>
    %124 = arith.addf %123, %122 : vector<8x32xf32>
    %125 = arith.divf %123, %124 : vector<8x32xf32>
    %126 = arith.mulf %125, %110 : vector<8x32xf32>
    %cst_38 = arith.constant 1.000000e+00 : f32
    %127 = vector.broadcast %cst_38 : f32 to vector<8x32xf32>
    %128 = arith.subf %127, %125 : vector<8x32xf32>
    %129 = arith.mulf %128, %26 : vector<8x32xf32>
    %130 = arith.addf %126, %129 : vector<8x32xf32>
    %cst_39 = arith.constant dense<0.000000e+00> : vector<8xf32>
    %131 = vector.multi_reduction <add>, %130, %cst_39 [1] : vector<8x32xf32> to vector<8xf32>
    %132 = vector.shape_cast %131 : vector<8xf32> to vector<8x1xf32>
    %cst_40 = arith.constant 3.200000e+01 : f32
    %133 = vector.broadcast %cst_40 : f32 to vector<8x1xf32>
    %134 = arith.divf %132, %133 : vector<8x1xf32>
    %135 = vector.broadcast %134 : vector<8x1xf32> to vector<8x32xf32>
    %136 = arith.subf %130, %135 : vector<8x32xf32>
    %137 = arith.mulf %136, %136 : vector<8x32xf32>
    %cst_41 = arith.constant dense<0.000000e+00> : vector<8xf32>
    %138 = vector.multi_reduction <add>, %137, %cst_41 [1] : vector<8x32xf32> to vector<8xf32>
    %139 = vector.shape_cast %138 : vector<8xf32> to vector<8x1xf32>
    %cst_42 = arith.constant 3.200000e+01 : f32
    %140 = vector.broadcast %cst_42 : f32 to vector<8x1xf32>
    %141 = arith.divf %139, %140 : vector<8x1xf32>
    %cst_43 = arith.constant 9.99999974E-6 : f32
    %142 = vector.broadcast %cst_43 : f32 to vector<8x1xf32>
    %143 = arith.addf %141, %142 : vector<8x1xf32>
    %144 = math.rsqrt %143 : vector<8x1xf32>
    %145 = vector.broadcast %144 : vector<8x1xf32> to vector<8x32xf32>
    %146 = arith.mulf %136, %145 : vector<8x32xf32>
    %147 = vector.extract_strided_slice %0 {offsets = [7, 0], sizes = [1, 32], strides = [1, 1]} : vector<18x32xf32> to vector<1x32xf32>
    %148 = vector.broadcast %147 : vector<1x32xf32> to vector<8x32xf32>
    %149 = arith.mulf %146, %148 : vector<8x32xf32>
    %150 = vector.extract_strided_slice %0 {offsets = [8, 0], sizes = [1, 32], strides = [1, 1]} : vector<18x32xf32> to vector<1x32xf32>
    %151 = vector.broadcast %150 : vector<1x32xf32> to vector<8x32xf32>
    %152 = arith.addf %149, %151 : vector<8x32xf32>
    %c0_44 = arith.constant 0 : index
    %c0_45 = arith.constant 0 : index
    %c0_46 = arith.constant 0 : index
    %153 = vector.load %arg4[%c0_44, %c0_45, %c0_46] : memref<1x1x8xf32, #tpu.memory_space<vmem>>, vector<1x1x8xf32>
    %154 = arith.truncf %152 : vector<8x32xf32> to vector<8x32xbf16>
    %c0_47 = arith.constant 0 : index
    %c0_48 = arith.constant 0 : index
    %155 = vector.load %arg13[%c0_47, %c0_48] : memref<32x32xbf16, #tpu.memory_space<vmem>>, vector<32x32xbf16>
    %cst_49 = arith.constant dense<0.000000e+00> : vector<8x32xf32>
    %156 = tpu.matmul %154, %155, %cst_49 {dimension_numbers = #tpu.dot_dimension_numbers<[1], [0], [0], [1], [0, 0, 1, 1], [], []>} : vector<8x32xbf16>, vector<32x32xbf16>, vector<8x32xf32> -> vector<8x32xf32>
    %157 = vector.extract_strided_slice %0 {offsets = [9, 0], sizes = [1, 32], strides = [1, 1]} : vector<18x32xf32> to vector<1x32xf32>
    %158 = vector.broadcast %157 : vector<1x32xf32> to vector<8x32xf32>
    %159 = arith.addf %156, %158 : vector<8x32xf32>
    %160 = arith.truncf %159 : vector<8x32xf32> to vector<8x32xbf16>
    %161 = arith.truncf %4 : vector<8x32xf32> to vector<8x32xbf16>
    %c0_50 = arith.constant 0 : index
    %c0_51 = arith.constant 0 : index
    %162 = vector.load %arg14[%c0_50, %c0_51] : memref<32x32xbf16, #tpu.memory_space<vmem>>, vector<32x32xbf16>
    %cst_52 = arith.constant dense<0.000000e+00> : vector<8x32xf32>
    %163 = tpu.matmul %161, %162, %cst_52 {dimension_numbers = #tpu.dot_dimension_numbers<[1], [0], [0], [1], [0, 0, 1, 1], [], []>} : vector<8x32xbf16>, vector<32x32xbf16>, vector<8x32xf32> -> vector<8x32xf32>
    %164 = vector.extract_strided_slice %0 {offsets = [10, 0], sizes = [1, 32], strides = [1, 1]} : vector<18x32xf32> to vector<1x32xf32>
    %165 = vector.broadcast %164 : vector<1x32xf32> to vector<8x32xf32>
    %166 = arith.addf %163, %165 : vector<8x32xf32>
    %167 = arith.truncf %166 : vector<8x32xf32> to vector<8x32xbf16>
    %168 = arith.truncf %4 : vector<8x32xf32> to vector<8x32xbf16>
    %c0_53 = arith.constant 0 : index
    %c0_54 = arith.constant 0 : index
    %169 = vector.load %arg15[%c0_53, %c0_54] : memref<32x32xbf16, #tpu.memory_space<vmem>>, vector<32x32xbf16>
    %cst_55 = arith.constant dense<0.000000e+00> : vector<8x32xf32>
    %170 = tpu.matmul %168, %169, %cst_55 {dimension_numbers = #tpu.dot_dimension_numbers<[1], [0], [0], [1], [0, 0, 1, 1], [], []>} : vector<8x32xbf16>, vector<32x32xbf16>, vector<8x32xf32> -> vector<8x32xf32>
    %171 = vector.extract_strided_slice %0 {offsets = [11, 0], sizes = [1, 32], strides = [1, 1]} : vector<18x32xf32> to vector<1x32xf32>
    %172 = vector.broadcast %171 : vector<1x32xf32> to vector<8x32xf32>
    %173 = arith.addf %170, %172 : vector<8x32xf32>
    %174 = arith.truncf %173 : vector<8x32xf32> to vector<8x32xbf16>
    %175 = vector.extract_strided_slice %160 {offsets = [0, 0], sizes = [8, 8], strides = [1, 1]} : vector<8x32xbf16> to vector<8x8xbf16>
    %176 = vector.extract_strided_slice %160 {offsets = [0, 8], sizes = [8, 8], strides = [1, 1]} : vector<8x32xbf16> to vector<8x8xbf16>
    %177 = vector.extract_strided_slice %160 {offsets = [0, 16], sizes = [8, 8], strides = [1, 1]} : vector<8x32xbf16> to vector<8x8xbf16>
    %178 = vector.extract_strided_slice %160 {offsets = [0, 24], sizes = [8, 8], strides = [1, 1]} : vector<8x32xbf16> to vector<8x8xbf16>
    %179 = vector.shape_cast %175 : vector<8x8xbf16> to vector<1x8x8xbf16>
    %180 = vector.shape_cast %176 : vector<8x8xbf16> to vector<1x8x8xbf16>
    %181 = vector.shape_cast %177 : vector<8x8xbf16> to vector<1x8x8xbf16>
    %182 = vector.shape_cast %178 : vector<8x8xbf16> to vector<1x8x8xbf16>
    %183 = tpu.concatenate %179, %180, %181, %182 in 0 : vector<1x8x8xbf16>, vector<1x8x8xbf16>, vector<1x8x8xbf16>, vector<1x8x8xbf16> -> vector<4x8x8xbf16>
    %184 = vector.extract_strided_slice %167 {offsets = [0, 0], sizes = [8, 8], strides = [1, 1]} : vector<8x32xbf16> to vector<8x8xbf16>
    %185 = vector.extract_strided_slice %167 {offsets = [0, 8], sizes = [8, 8], strides = [1, 1]} : vector<8x32xbf16> to vector<8x8xbf16>
    %186 = vector.extract_strided_slice %167 {offsets = [0, 16], sizes = [8, 8], strides = [1, 1]} : vector<8x32xbf16> to vector<8x8xbf16>
    %187 = vector.extract_strided_slice %167 {offsets = [0, 24], sizes = [8, 8], strides = [1, 1]} : vector<8x32xbf16> to vector<8x8xbf16>
    %188 = vector.shape_cast %184 : vector<8x8xbf16> to vector<1x8x8xbf16>
    %189 = vector.shape_cast %185 : vector<8x8xbf16> to vector<1x8x8xbf16>
    %190 = vector.shape_cast %186 : vector<8x8xbf16> to vector<1x8x8xbf16>
    %191 = vector.shape_cast %187 : vector<8x8xbf16> to vector<1x8x8xbf16>
    %192 = tpu.concatenate %188, %189, %190, %191 in 0 : vector<1x8x8xbf16>, vector<1x8x8xbf16>, vector<1x8x8xbf16>, vector<1x8x8xbf16> -> vector<4x8x8xbf16>
    %193 = vector.extract_strided_slice %174 {offsets = [0, 0], sizes = [8, 8], strides = [1, 1]} : vector<8x32xbf16> to vector<8x8xbf16>
    %194 = vector.extract_strided_slice %174 {offsets = [0, 8], sizes = [8, 8], strides = [1, 1]} : vector<8x32xbf16> to vector<8x8xbf16>
    %195 = vector.extract_strided_slice %174 {offsets = [0, 16], sizes = [8, 8], strides = [1, 1]} : vector<8x32xbf16> to vector<8x8xbf16>
    %196 = vector.extract_strided_slice %174 {offsets = [0, 24], sizes = [8, 8], strides = [1, 1]} : vector<8x32xbf16> to vector<8x8xbf16>
    %197 = vector.shape_cast %193 : vector<8x8xbf16> to vector<1x8x8xbf16>
    %198 = vector.shape_cast %194 : vector<8x8xbf16> to vector<1x8x8xbf16>
    %199 = vector.shape_cast %195 : vector<8x8xbf16> to vector<1x8x8xbf16>
    %200 = vector.shape_cast %196 : vector<8x8xbf16> to vector<1x8x8xbf16>
    %201 = tpu.concatenate %197, %198, %199, %200 in 0 : vector<1x8x8xbf16>, vector<1x8x8xbf16>, vector<1x8x8xbf16>, vector<1x8x8xbf16> -> vector<4x8x8xbf16>
    "tpu.trace_start"() <{level = 10 : i32, message = "ztd,zkd->ztk"}> : () -> ()
    %cst_56 = arith.constant dense<0.000000e+00> : vector<4x8x8xf32>
    %202 = tpu.matmul %183, %192, %cst_56 {dimension_numbers = #tpu.dot_dimension_numbers<[2], [2], [1], [1], [0, 0, 0, 1, 1, 1], [0], [0]>} : vector<4x8x8xbf16>, vector<4x8x8xbf16>, vector<4x8x8xf32> -> vector<4x8x8xf32>
    "tpu.trace_stop"() : () -> ()
    %cst_57 = arith.constant 0.353553385 : f32
    %203 = vector.broadcast %cst_57 : f32 to vector<4x8x8xf32>
    %204 = arith.mulf %202, %203 : vector<4x8x8xf32>
    %205 = vector.shape_cast %204 : vector<4x8x8xf32> to vector<4x1x8x8xf32>
    %206 = vector.shape_cast %153 : vector<1x1x8xf32> to vector<1x1x1x8xf32>
    %207 = vector.broadcast %206 : vector<1x1x1x8xf32> to vector<4x1x8x8xf32>
    %208 = arith.addf %205, %207 : vector<4x1x8x8xf32>
    %cst_58 = arith.constant dense<0xFF800000> : vector<4x1x8xf32>
    %209 = vector.multi_reduction <maximumf>, %208, %cst_58 [3] : vector<4x1x8x8xf32> to vector<4x1x8xf32>
    %210 = vector.shape_cast %209 : vector<4x1x8xf32> to vector<4x1x8x1xf32>
    %211 = vector.broadcast %210 : vector<4x1x8x1xf32> to vector<4x1x8x8xf32>
    %212 = arith.subf %208, %211 : vector<4x1x8x8xf32>
    %213 = math.exp %212 : vector<4x1x8x8xf32>
    %cst_59 = arith.constant dense<0.000000e+00> : vector<4x1x8xf32>
    %214 = vector.multi_reduction <add>, %213, %cst_59 [3] : vector<4x1x8x8xf32> to vector<4x1x8xf32>
    %215 = vector.shape_cast %214 : vector<4x1x8xf32> to vector<4x1x8x1xf32>
    %216 = vector.broadcast %215 : vector<4x1x8x1xf32> to vector<4x1x8x8xf32>
    %217 = arith.divf %213, %216 : vector<4x1x8x8xf32>
    %218 = vector.shape_cast %217 : vector<4x1x8x8xf32> to vector<4x8x8xf32>
    %c0_60 = arith.constant 0 : index
    %c0_61 = arith.constant 0 : index
    %c0_62 = arith.constant 0 : index
    %c0_63 = arith.constant 0 : index
    %219 = vector.load %arg24[%c0_60, %c0_61, %c0_62, %c0_63] : memref<1x4x8x8xf32, #tpu.memory_space<vmem>>, vector<1x4x8x8xf32>
    %220 = vector.shape_cast %219 : vector<1x4x8x8xf32> to vector<4x8x8xf32>
    %221 = vector.shape_cast %218 : vector<4x8x8xf32> to vector<1x4x8x8xf32>
    tpu.vector_store %arg24[%c0_60, %c0_61, %c0_62, %c0_63], %221 {strides = array<i32>} : memref<1x4x8x8xf32, #tpu.memory_space<vmem>>, vector<1x4x8x8xf32>,
    %222 = vector.shape_cast %217 : vector<4x1x8x8xf32> to vector<4x8x8xf32>
    %223 = arith.truncf %222 : vector<4x8x8xf32> to vector<4x8x8xbf16>
    "tpu.trace_start"() <{level = 10 : i32, message = "ztk,zkd->ztd"}> : () -> ()
    %cst_64 = arith.constant dense<0.000000e+00> : vector<4x8x8xf32>
    %224 = tpu.matmul %223, %201, %cst_64 {dimension_numbers = #tpu.dot_dimension_numbers<[2], [1], [1], [2], [0, 0, 0, 1, 1, 2], [0], [0]>} : vector<4x8x8xbf16>, vector<4x8x8xbf16>, vector<4x8x8xf32> -> vector<4x8x8xf32>
    "tpu.trace_stop"() : () -> ()
    %225 = arith.truncf %224 : vector<4x8x8xf32> to vector<4x8x8xbf16>
    %226 = vector.extract_strided_slice %225 {offsets = [0, 0, 0], sizes = [1, 8, 8], strides = [1, 1, 1]} : vector<4x8x8xbf16> to vector<1x8x8xbf16>
    %227 = vector.shape_cast %226 : vector<1x8x8xbf16> to vector<8x8xbf16>
    %228 = vector.extract_strided_slice %225 {offsets = [1, 0, 0], sizes = [1, 8, 8], strides = [1, 1, 1]} : vector<4x8x8xbf16> to vector<1x8x8xbf16>
    %229 = vector.shape_cast %228 : vector<1x8x8xbf16> to vector<8x8xbf16>
    %230 = vector.extract_strided_slice %225 {offsets = [2, 0, 0], sizes = [1, 8, 8], strides = [1, 1, 1]} : vector<4x8x8xbf16> to vector<1x8x8xbf16>
    %231 = vector.shape_cast %230 : vector<1x8x8xbf16> to vector<8x8xbf16>
    %232 = vector.extract_strided_slice %225 {offsets = [3, 0, 0], sizes = [1, 8, 8], strides = [1, 1, 1]} : vector<4x8x8xbf16> to vector<1x8x8xbf16>
    %233 = vector.shape_cast %232 : vector<1x8x8xbf16> to vector<8x8xbf16>
    %234 = tpu.concatenate %227, %229, %231, %233 in 1 : vector<8x8xbf16>, vector<8x8xbf16>, vector<8x8xbf16>, vector<8x8xbf16> -> vector<8x32xbf16>
    %c0_65 = arith.constant 0 : index
    %c0_66 = arith.constant 0 : index
    %235 = vector.load %arg16[%c0_65, %c0_66] : memref<32x32xbf16, #tpu.memory_space<vmem>>, vector<32x32xbf16>
    %cst_67 = arith.constant dense<0.000000e+00> : vector<8x32xf32>
    %236 = tpu.matmul %234, %235, %cst_67 {dimension_numbers = #tpu.dot_dimension_numbers<[1], [0], [0], [1], [0, 0, 1, 1], [], []>} : vector<8x32xbf16>, vector<32x32xbf16>, vector<8x32xf32> -> vector<8x32xf32>
    %237 = vector.extract_strided_slice %0 {offsets = [12, 0], sizes = [1, 32], strides = [1, 1]} : vector<18x32xf32> to vector<1x32xf32>
    %238 = vector.broadcast %237 : vector<1x32xf32> to vector<8x32xf32>
    %239 = arith.addf %236, %238 : vector<8x32xf32>
    %240 = arith.truncf %239 : vector<8x32xf32> to vector<8x32xbf16>
    %c0_68 = arith.constant 0 : index
    %c0_69 = arith.constant 0 : index
    %241 = vector.load %arg17[%c0_68, %c0_69] : memref<32x32xbf16, #tpu.memory_space<vmem>>, vector<32x32xbf16>
    %cst_70 = arith.constant dense<0.000000e+00> : vector<8x32xf32>
    %242 = tpu.matmul %240, %241, %cst_70 {dimension_numbers = #tpu.dot_dimension_numbers<[1], [0], [0], [1], [0, 0, 1, 1], [], []>} : vector<8x32xbf16>, vector<32x32xbf16>, vector<8x32xf32> -> vector<8x32xf32>
    %243 = arith.truncf %152 : vector<8x32xf32> to vector<8x32xbf16>
    %c0_71 = arith.constant 0 : index
    %c0_72 = arith.constant 0 : index
    %244 = vector.load %arg18[%c0_71, %c0_72] : memref<32x32xbf16, #tpu.memory_space<vmem>>, vector<32x32xbf16>
    %cst_73 = arith.constant dense<0.000000e+00> : vector<8x32xf32>
    %245 = tpu.matmul %243, %244, %cst_73 {dimension_numbers = #tpu.dot_dimension_numbers<[1], [0], [0], [1], [0, 0, 1, 1], [], []>} : vector<8x32xbf16>, vector<32x32xbf16>, vector<8x32xf32> -> vector<8x32xf32>
    %246 = arith.addf %242, %245 : vector<8x32xf32>
    %247 = vector.extract_strided_slice %0 {offsets = [13, 0], sizes = [1, 32], strides = [1, 1]} : vector<18x32xf32> to vector<1x32xf32>
    %248 = vector.broadcast %247 : vector<1x32xf32> to vector<8x32xf32>
    %249 = arith.addf %246, %248 : vector<8x32xf32>
    %250 = arith.negf %249 : vector<8x32xf32>
    %251 = math.exp %250 : vector<8x32xf32>
    %cst_74 = arith.constant 1.000000e+00 : f32
    %252 = vector.broadcast %cst_74 : f32 to vector<8x32xf32>
    %253 = arith.addf %252, %251 : vector<8x32xf32>
    %254 = arith.divf %252, %253 : vector<8x32xf32>
    %255 = arith.mulf %254, %239 : vector<8x32xf32>
    %cst_75 = arith.constant 1.000000e+00 : f32
    %256 = vector.broadcast %cst_75 : f32 to vector<8x32xf32>
    %257 = arith.subf %256, %254 : vector<8x32xf32>
    %258 = arith.mulf %257, %152 : vector<8x32xf32>
    %259 = arith.addf %255, %258 : vector<8x32xf32>
    %cst_76 = arith.constant dense<0.000000e+00> : vector<8xf32>
    %260 = vector.multi_reduction <add>, %259, %cst_76 [1] : vector<8x32xf32> to vector<8xf32>
    %261 = vector.shape_cast %260 : vector<8xf32> to vector<8x1xf32>
    %cst_77 = arith.constant 3.200000e+01 : f32
    %262 = vector.broadcast %cst_77 : f32 to vector<8x1xf32>
    %263 = arith.divf %261, %262 : vector<8x1xf32>
    %264 = vector.broadcast %263 : vector<8x1xf32> to vector<8x32xf32>
    %265 = arith.subf %259, %264 : vector<8x32xf32>
    %266 = arith.mulf %265, %265 : vector<8x32xf32>
    %cst_78 = arith.constant dense<0.000000e+00> : vector<8xf32>
    %267 = vector.multi_reduction <add>, %266, %cst_78 [1] : vector<8x32xf32> to vector<8xf32>
    %268 = vector.shape_cast %267 : vector<8xf32> to vector<8x1xf32>
    %cst_79 = arith.constant 3.200000e+01 : f32
    %269 = vector.broadcast %cst_79 : f32 to vector<8x1xf32>
    %270 = arith.divf %268, %269 : vector<8x1xf32>
    %cst_80 = arith.constant 9.99999974E-6 : f32
    %271 = vector.broadcast %cst_80 : f32 to vector<8x1xf32>
    %272 = arith.addf %270, %271 : vector<8x1xf32>
    %273 = math.rsqrt %272 : vector<8x1xf32>
    %274 = vector.broadcast %273 : vector<8x1xf32> to vector<8x32xf32>
    %275 = arith.mulf %265, %274 : vector<8x32xf32>
    %276 = vector.extract_strided_slice %0 {offsets = [14, 0], sizes = [1, 32], strides = [1, 1]} : vector<18x32xf32> to vector<1x32xf32>
    %277 = vector.broadcast %276 : vector<1x32xf32> to vector<8x32xf32>
    %278 = arith.mulf %275, %277 : vector<8x32xf32>
    %279 = vector.extract_strided_slice %0 {offsets = [15, 0], sizes = [1, 32], strides = [1, 1]} : vector<18x32xf32> to vector<1x32xf32>
    %280 = vector.broadcast %279 : vector<1x32xf32> to vector<8x32xf32>
    %281 = arith.addf %278, %280 : vector<8x32xf32>
    %282 = arith.truncf %281 : vector<8x32xf32> to vector<8x32xbf16>
    %cst_81 = arith.constant 0.000000e+00 : f32
    %283 = vector.broadcast %cst_81 : f32 to vector<8x32xf32>
    %c0_82 = arith.constant 0 : index
    %c0_83 = arith.constant 0 : index
    %284 = vector.load %arg19[%c0_82, %c0_83] : memref<32x64xbf16, #tpu.memory_space<vmem>>, vector<32x64xbf16>
    %cst_84 = arith.constant dense<0.000000e+00> : vector<8x64xf32>
    %285 = tpu.matmul %282, %284, %cst_84 {dimension_numbers = #tpu.dot_dimension_numbers<[1], [0], [0], [1], [0, 0, 1, 1], [], []>} : vector<8x32xbf16>, vector<32x64xbf16>, vector<8x64xf32> -> vector<8x64xf32>
    %c0_85 = arith.constant 0 : index
    %c0_86 = arith.constant 0 : index
    %286 = vector.load %arg6[%c0_85, %c0_86] : memref<1x64xf32, #tpu.memory_space<vmem>>, vector<1x64xf32>
    %287 = vector.broadcast %286 : vector<1x64xf32> to vector<8x64xf32>
    %288 = arith.addf %285, %287 : vector<8x64xf32>
    %cst_87 = arith.constant 0.000000e+00 : f32
    %289 = vector.broadcast %cst_87 : f32 to vector<8x64xf32>
    %290 = arith.maximumf %288, %289 : vector<8x64xf32>
    %291 = arith.truncf %290 : vector<8x64xf32> to vector<8x64xbf16>
    %c0_88 = arith.constant 0 : index
    %c0_89 = arith.constant 0 : index
    %292 = vector.load %arg20[%c0_88, %c0_89] : memref<64x32xbf16, #tpu.memory_space<vmem>>, vector<64x32xbf16>
    %cst_90 = arith.constant dense<0.000000e+00> : vector<8x32xf32>
    %293 = tpu.matmul %291, %292, %cst_90 {dimension_numbers = #tpu.dot_dimension_numbers<[1], [0], [0], [1], [0, 0, 1, 1], [], []>} : vector<8x64xbf16>, vector<64x32xbf16>, vector<8x32xf32> -> vector<8x32xf32>
    %294 = arith.addf %283, %293 : vector<8x32xf32>
    %295 = vector.extract_strided_slice %0 {offsets = [16, 0], sizes = [1, 32], strides = [1, 1]} : vector<18x32xf32> to vector<1x32xf32>
    %296 = vector.broadcast %295 : vector<1x32xf32> to vector<8x32xf32>
    %297 = arith.addf %294, %296 : vector<8x32xf32>
    %298 = arith.truncf %297 : vector<8x32xf32> to vector<8x32xbf16>
    %c0_91 = arith.constant 0 : index
    %c0_92 = arith.constant 0 : index
    %299 = vector.load %arg21[%c0_91, %c0_92] : memref<32x32xbf16, #tpu.memory_space<vmem>>, vector<32x32xbf16>
    %cst_93 = arith.constant dense<0.000000e+00> : vector<8x32xf32>
    %300 = tpu.matmul %298, %299, %cst_93 {dimension_numbers = #tpu.dot_dimension_numbers<[1], [0], [0], [1], [0, 0, 1, 1], [], []>} : vector<8x32xbf16>, vector<32x32xbf16>, vector<8x32xf32> -> vector<8x32xf32>
    %301 = arith.truncf %281 : vector<8x32xf32> to vector<8x32xbf16>
    %c0_94 = arith.constant 0 : index
    %c0_95 = arith.constant 0 : index
    %302 = vector.load %arg22[%c0_94, %c0_95] : memref<32x32xbf16, #tpu.memory_space<vmem>>, vector<32x32xbf16>
    %cst_96 = arith.constant dense<0.000000e+00> : vector<8x32xf32>
    %303 = tpu.matmul %301, %302, %cst_96 {dimension_numbers = #tpu.dot_dimension_numbers<[1], [0], [0], [1], [0, 0, 1, 1], [], []>} : vector<8x32xbf16>, vector<32x32xbf16>, vector<8x32xf32> -> vector<8x32xf32>
    %304 = arith.addf %300, %303 : vector<8x32xf32>
    %305 = vector.extract_strided_slice %0 {offsets = [17, 0], sizes = [1, 32], strides = [1, 1]} : vector<18x32xf32> to vector<1x32xf32>
    %306 = vector.broadcast %305 : vector<1x32xf32> to vector<8x32xf32>
    %307 = arith.addf %304, %306 : vector<8x32xf32>
    %308 = arith.negf %307 : vector<8x32xf32>
    %309 = math.exp %308 : vector<8x32xf32>
    %cst_97 = arith.constant 1.000000e+00 : f32
    %310 = vector.broadcast %cst_97 : f32 to vector<8x32xf32>
    %311 = arith.addf %310, %309 : vector<8x32xf32>
    %312 = arith.divf %310, %311 : vector<8x32xf32>
    %313 = arith.mulf %312, %297 : vector<8x32xf32>
    %cst_98 = arith.constant 1.000000e+00 : f32
    %314 = vector.broadcast %cst_98 : f32 to vector<8x32xf32>
    %315 = arith.subf %314, %312 : vector<8x32xf32>
    %316 = arith.mulf %315, %281 : vector<8x32xf32>
    %317 = arith.addf %313, %316 : vector<8x32xf32>
    %318 = vector.shape_cast %317 : vector<8x32xf32> to vector<1x8x32xf32>
    %c0_99 = arith.constant 0 : index
    %c0_100 = arith.constant 0 : index
    %c0_101 = arith.constant 0 : index
    %319 = vector.load %arg23[%c0_99, %c0_100, %c0_101] : memref<1x8x32xf32, #tpu.memory_space<vmem>>, vector<1x8x32xf32>
    tpu.vector_store %arg23[%c0_99, %c0_100, %c0_101], %318 {strides = array<i32>} : memref<1x8x32xf32, #tpu.memory_space<vmem>>, vector<1x8x32xf32>,
    return
  }
  func.func @transform_0(%arg0: i32) -> (i32, i32, i32) {
    %c0_i32 = arith.constant 0 : i32
    %c0_i32_0 = arith.constant 0 : i32
    %c0_i32_1 = arith.constant 0 : i32
    return %arg0, %c0_i32, %c0_i32_0 : i32, i32, i32
  }
  func.func @transform_1(%arg0: i32) -> (i32, i32, i32) {
    %c0_i32 = arith.constant 0 : i32
    %c0_i32_0 = arith.constant 0 : i32
    %c0_i32_1 = arith.constant 0 : i32
    return %arg0, %c0_i32, %c0_i32_0 : i32, i32, i32
  }
  func.func @transform_2(%arg0: i32) -> (i32, i32, i32) {
    %c0_i32 = arith.constant 0 : i32
    %c0_i32_0 = arith.constant 0 : i32
    %c0_i32_1 = arith.constant 0 : i32
    return %arg0, %c0_i32, %c0_i32_0 : i32, i32, i32
  }
  func.func @transform_3(%arg0: i32) -> (i32, i32, i32) {
    %c0_i32 = arith.constant 0 : i32
    %c0_i32_0 = arith.constant 0 : i32
    %c0_i32_1 = arith.constant 0 : i32
    return %arg0, %c0_i32, %c0_i32_0 : i32, i32, i32
  }
  func.func @transform_4(%arg0: i32) -> (i32, i32) {
    %c0_i32 = arith.constant 0 : i32
    %c0_i32_0 = arith.constant 0 : i32
    %c0_i32_1 = arith.constant 0 : i32
    return %c0_i32, %c0_i32_0 : i32, i32
  }
  func.func @transform_5(%arg0: i32) -> (i32, i32) {
    %c0_i32 = arith.constant 0 : i32
    %c0_i32_0 = arith.constant 0 : i32
    %c0_i32_1 = arith.constant 0 : i32
    return %c0_i32, %c0_i32_0 : i32, i32
  }
  func.func @transform_6(%arg0: i32) -> (i32, i32) {
    %c0_i32 = arith.constant 0 : i32
    %c0_i32_0 = arith.constant 0 : i32
    %c0_i32_1 = arith.constant 0 : i32
    return %c0_i32, %c0_i32_0 : i32, i32
  }
  func.func @transform_7(%arg0: i32) -> (i32, i32) {
    %c0_i32 = arith.constant 0 : i32
    %c0_i32_0 = arith.constant 0 : i32
    %c0_i32_1 = arith.constant 0 : i32
    return %c0_i32, %c0_i32_0 : i32, i32
  }
  func.func @transform_8(%arg0: i32) -> (i32, i32) {
    %c0_i32 = arith.constant 0 : i32
    %c0_i32_0 = arith.constant 0 : i32
    %c0_i32_1 = arith.constant 0 : i32
    return %c0_i32, %c0_i32_0 : i32, i32
  }
  func.func @transform_9(%arg0: i32) -> (i32, i32) {
    %c0_i32 = arith.constant 0 : i32
    %c0_i32_0 = arith.constant 0 : i32
    %c0_i32_1 = arith.constant 0 : i32
    return %c0_i32, %c0_i32_0 : i32, i32
  }
  func.func @transform_10(%arg0: i32) -> (i32, i32) {
    %c0_i32 = arith.constant 0 : i32
    %c0_i32_0 = arith.constant 0 : i32
    %c0_i32_1 = arith.constant 0 : i32
    return %c0_i32, %c0_i32_0 : i32, i32
  }
  func.func @transform_11(%arg0: i32) -> (i32, i32) {
    %c0_i32 = arith.constant 0 : i32
    %c0_i32_0 = arith.constant 0 : i32
    %c0_i32_1 = arith.constant 0 : i32
    return %c0_i32, %c0_i32_0 : i32, i32
  }
  func.func @transform_12(%arg0: i32) -> (i32, i32) {
    %c0_i32 = arith.constant 0 : i32
    %c0_i32_0 = arith.constant 0 : i32
    %c0_i32_1 = arith.constant 0 : i32
    return %c0_i32, %c0_i32_0 : i32, i32
  }
  func.func @transform_13(%arg0: i32) -> (i32, i32) {
    %c0_i32 = arith.constant 0 : i32
    %c0_i32_0 = arith.constant 0 : i32
    %c0_i32_1 = arith.constant 0 : i32
    return %c0_i32, %c0_i32_0 : i32, i32
  }
  func.func @transform_14(%arg0: i32) -> (i32, i32) {
    %c0_i32 = arith.constant 0 : i32
    %c0_i32_0 = arith.constant 0 : i32
    %c0_i32_1 = arith.constant 0 : i32
    return %c0_i32, %c0_i32_0 : i32, i32
  }
  func.func @transform_15(%arg0: i32) -> (i32, i32) {
    %c0_i32 = arith.constant 0 : i32
    %c0_i32_0 = arith.constant 0 : i32
    %c0_i32_1 = arith.constant 0 : i32
    return %c0_i32, %c0_i32_0 : i32, i32
  }
  func.func @transform_16(%arg0: i32) -> (i32, i32) {
    %c0_i32 = arith.constant 0 : i32
    %c0_i32_0 = arith.constant 0 : i32
    %c0_i32_1 = arith.constant 0 : i32
    return %c0_i32, %c0_i32_0 : i32, i32
  }
  func.func @transform_17(%arg0: i32) -> (i32, i32) {
    %c0_i32 = arith.constant 0 : i32
    %c0_i32_0 = arith.constant 0 : i32
    %c0_i32_1 = arith.constant 0 : i32
    return %c0_i32, %c0_i32_0 : i32, i32
  }
  func.func @transform_18(%arg0: i32) -> (i32, i32) {
    %c0_i32 = arith.constant 0 : i32
    %c0_i32_0 = arith.constant 0 : i32
    %c0_i32_1 = arith.constant 0 : i32
    return %c0_i32, %c0_i32_0 : i32, i32
  }
  func.func @transform_19(%arg0: i32) -> (i32, i32) {
    %c0_i32 = arith.constant 0 : i32
    %c0_i32_0 = arith.constant 0 : i32
    %c0_i32_1 = arith.constant 0 : i32
    return %c0_i32, %c0_i32_0 : i32, i32
  }
  func.func @transform_20(%arg0: i32) -> (i32, i32) {
    %c0_i32 = arith.constant 0 : i32
    %c0_i32_0 = arith.constant 0 : i32
    %c0_i32_1 = arith.constant 0 : i32
    return %c0_i32, %c0_i32_0 : i32, i32
  }
  func.func @transform_21(%arg0: i32) -> (i32, i32) {
    %c0_i32 = arith.constant 0 : i32
    %c0_i32_0 = arith.constant 0 : i32
    %c0_i32_1 = arith.constant 0 : i32
    return %c0_i32, %c0_i32_0 : i32, i32
  }
  func.func @transform_22(%arg0: i32) -> (i32, i32, i32) {
    %c0_i32 = arith.constant 0 : i32
    %c0_i32_0 = arith.constant 0 : i32
    %c0_i32_1 = arith.constant 0 : i32
    return %arg0, %c0_i32, %c0_i32_0 : i32, i32, i32
  }
  func.func @transform_23(%arg0: i32) -> (i32, i32, i32, i32) {
    %c0_i32 = arith.constant 0 : i32
    %c0_i32_0 = arith.constant 0 : i32
    %c0_i32_1 = arith.constant 0 : i32
    %c0_i32_2 = arith.constant 0 : i32
    return %arg0, %c0_i32, %c0_i32_0, %c0_i32_1 : i32, i32, i32, i32
  }
}

</mosaic_0001>

<bundles_post_ra>
// kernel: tpu_custom_call.1
= control target key start
LH: loop header
LB: loop body
LE: loop exit
PB: predicated region body
PF: predicated region fallthrough
CT: control target
= control target key end

     0   :  { %s6359_s0 = inlined_call_operand.hbm [shape: f32[2,8,32], index: 0, kind: input, shape index: {}]   ;;  %s6360_s1 = inlined_call_operand.hbm [shape: f32[2,8,32], index: 1, kind: input, shape index: {}]   ;;  %s6361_s2 = inlined_call_operand.hbm [shape: bf16[2,8,8], index: 2, kind: input, shape index: {}]   ;;  %s6362_s3 = inlined_call_operand.hbm [shape: f32[2,1,8], index: 3, kind: input, shape index: {}]   ;;  %s6363_s4 = inlined_call_operand.hbm [shape: f32[18,32], index: 4, kind: input, shape index: {}]   ;;  %s6364_s5 = inlined_call_operand.hbm [shape: f32[1,64], index: 5, kind: input, shape index: {}]   ;;  %s6365_s6 = inlined_call_operand.hbm [shape: bf16[32,32], index: 6, kind: input, shape index: {}]   ;;  %s6366_s7 = inlined_call_operand.hbm [shape: bf16[32,32], index: 7, kind: input, shape index: {}]   ;;  %s6367_s8 = inlined_call_operand.hbm [shape: bf16[32,32], index: 8, kind: input, shape index: {}]   ;;  %s6368_s9 = inlined_call_operand.hbm [shape: bf16[32,32], index: 9, kind: input, shape index: {}]   ;;  %s6369_s10 = inlined_call_operand.hbm [shape: bf16[32,32], index: 10, kind: input, shape index: {}]   ;;  %s6370_s11 = inlined_call_operand.hbm [shape: bf16[32,32], index: 11, kind: input, shape index: {}]   ;;  %s6371_s12 = inlined_call_operand.hbm [shape: bf16[32,32], index: 12, kind: input, shape index: {}]   ;;  %s6372_s13 = inlined_call_operand.hbm [shape: bf16[32,32], index: 13, kind: input, shape index: {}]   ;;  %s6373_s14 = inlined_call_operand.hbm [shape: bf16[32,32], index: 14, kind: input, shape index: {}]   ;;  %s6374_s15 = inlined_call_operand.hbm [shape: bf16[32,32], index: 15, kind: input, shape index: {}]   ;;  %s6375_s16 = inlined_call_operand.hbm [shape: bf16[32,32], index: 16, kind: input, shape index: {}]   ;;  %s6376_s17 = inlined_call_operand.hbm [shape: bf16[32,32], index: 17, kind: input, shape index: {}]   ;;  %s6377_s18 = inlined_call_operand.hbm [shape: bf16[32,64], index: 18, kind: input, shape index: {}]   ;;  %s6378_s19 = inlined_call_operand.hbm [shape: bf16[64,32], index: 19, kind: input, shape index: {}]   ;;  %s6379_s20 = inlined_call_operand.hbm [shape: bf16[32,32], index: 20, kind: input, shape index: {}]   ;;  %s6380_s21 = inlined_call_operand.hbm [shape: bf16[32,32], index: 21, kind: input, shape index: {}]   ;;  %s6381_s22 = inlined_call_operand.hbm [shape: f32[2,8,32], index: 22, kind: output, shape index: {0}]   ;;  %s6382_s23 = inlined_call_operand.hbm [shape: f32[2,4,8,8], index: 23, kind: output, shape index: {1}]  }
   0x1   :  { %6434 = sst [smem:[#allocation60_spill]] %s6359_s0 }
   0x2   :  { %6435 = sst [smem:[#allocation61_spill]] %s6360_s1 }
   0x3   :  { %6436 = sst [smem:[#allocation62_spill]] %s6361_s2 }
   0x4   :  { %6437 = sst [smem:[#allocation63_spill]] %s6362_s3 }
   0x5   :  { %6438 = sst [smem:[#allocation64_spill]] %s6363_s4 }
   0x6   :  { %6439 = sst [smem:[#allocation65_spill]] %s6364_s5 }
   0x7   :  { %6440 = sst [smem:[#allocation66_spill]] %s6365_s6 }
   0x8   :  { %6441 = sst [smem:[#allocation67_spill]] %s6366_s7 }
   0x9   :  { %6442 = sst [smem:[#allocation68_spill]] %s6367_s8 }
   0xa   :  { %6443 = sst [smem:[#allocation69_spill]] %s6368_s9 }
   0xb   :  { %6444 = sst [smem:[#allocation70_spill]] %s6369_s10 }
   0xc   :  { %6445 = sst [smem:[#allocation71_spill]] %s6370_s11 }
   0xd   :  { %6446 = sst [smem:[#allocation72_spill]] %s6371_s12 }
   0xe   :  { %6447 = sst [smem:[#allocation73_spill]] %s6372_s13 }
   0xf   :  { %6448 = sst [smem:[#allocation74_spill]] %s6373_s14 }
  0x10   :  { %6449 = sst [smem:[#allocation75_spill]] %s6374_s15 }
  0x11   :  { %6450 = sst [smem:[#allocation76_spill]] %s6375_s16 }
  0x12   :  { %6451 = sst [smem:[#allocation77_spill]] %s6376_s17 }
  0x13   :  { %6452 = sst [smem:[#allocation78_spill]] %s6377_s18 }
  0x14   :  { %6453 = sst [smem:[#allocation79_spill]] %s6378_s19 }
  0x15   :  { %6454 = sst [smem:[#allocation80_spill]] %s6379_s20 }
  0x16   :  { %6455 = sst [smem:[#allocation81_spill]] %s6380_s21 }
  0x17   :  { %6456 = sst [smem:[#allocation82_spill]] %s6381_s22 }
  0x18   :  { %6457 = sst [smem:[#allocation83_spill]] %s6382_s23 }
  0x19   :  { %29 = vsyncpa [#allocation3], 0 }
  0x1a   :  { %31 = vsyncpa [#allocation3 + $0x1], 0 }
  0x1b   :  { %32 = vsyncpa [#allocation6], 0 }
  0x1c   :  { %34 = vsyncpa [#allocation6 + $0x1], 0 }
  0x1d   :  { %35 = vsyncpa [#allocation9], 0 }
  0x1e   :  { %37 = vsyncpa [#allocation9 + $0x1], 0 }
  0x1f   :  { %38 = vsyncpa [#allocation12], 0 }
  0x20   :  { %39 = vsyncpa [#allocation15], 0 }
  0x21   :  { %40 = vsyncpa [#allocation18], 0 }
  0x22   :  { %41 = vsyncpa [#allocation21], 0 }
  0x23   :  { %42 = vsyncpa [#allocation24], 0 }
  0x24   :  { %43 = vsyncpa [#allocation27], 0 }
  0x25   :  { %44 = vsyncpa [#allocation30], 0 }
  0x26   :  { %45 = vsyncpa [#allocation33], 0 }
  0x27   :  { %46 = vsyncpa [#allocation36], 0 }
  0x28   :  { %47 = vsyncpa [#allocation4], 0 }
  0x29   :  { %49 = vsyncpa [#allocation4 + $0x1], 0 }
  0x2a   :  { %50 = vsyncpa [#allocation39], 0 }
  0x2b   :  { %52 = vsyncpa [#allocation39 + $0x1], 0  ;;  %s5255_s4 = smov 0   ;;  %s5257_s30 = smov 0  }
  0x2c   :  { %s5259_s24 = smov 0   ;;  %s5261_s25 = smov 0  }
  0x2d LB: > { %6458 = sst [smem:[#allocation55_spill]] %s5092_s24  ;;  %s5098_s5 = smov [#allocation10]   ;;  %s5096_s25 = sphi %s5261_s25, %s6534_s25   ;;  %s5092_s24 = sphi %s5259_s24, %s6536_s24   ;;  %s5088_s30 = sphi %s5257_s30, %s6538_s30   ;;  %s5084_s4 = sphi %s5255_s4, %s6537_s4  }
  0x2e   : > { %s609_s1 = sshll.u32 %s5098_s5, 4  ;;  %s5276_s26 = sadd.s32 4294967295, %s5096_s25   ;;  %s5281_s1 = int_to_ptr.vmem [resolvable:$true] %s609_s1 }
  0x2f   : > { %p3542_p0 = scmp.ge.s32.totalorder %s5096_s25, 1  ;;  %p6400_p1 = scmp.eq.s32.totalorder %s5276_s26, 0 }
  0x30   : > { %p597_p2 = scmp.lt.s32.totalorder %s5096_s25, 3  ;;  %s5099_s6 = smov [#allocation11]  }
  0x31   : > { %s623_s27 = sshll.u32 %s5099_s6, 4  ;;  %s5100_s28 = smov [#allocation14]   ;;  %s5296_s27 = int_to_ptr.vmem [resolvable:$true] %s623_s27 }
  0x32   : > { %p5283_p3 = pnand %p3542_p0, %p597_p2  ;;  %s5298_s29 = sshll.u32 %s5100_s28, 4  ;;  %s647_s29 = int_to_ptr.vmem [resolvable:$true] %s5298_s29 }
  0x33   : > { %s6462_s5 = sld [smem:[#allocation64_spill]] }
  0x34   : > { %s6459_s2 = scalar_select %p5283_p3, 1, 0 }
  0x35   : > { %p4066_p5 = pneg %p5283_p3 }
  0x36   : > { %6460 = sst [smem:[#allocation56_spill]] %s6459_s2 }
  0x37   : > { %p5292_p6 = pnand %p4066_p5, %p6400_p1 }
  0x39   : > { %s6461_s7 = scalar_select %p5292_p6, 1, 0 }
  0x3a   : > { %s4326_s22 = scalar_lea.hbm %s6462_s5, 384  ;;  %p5308_p8 = pneg %p5292_p6 }
  0x3b   : > { %p4327_p7 = scmp.ne.s32.totalorder %s6462_s5, %s4326_s22  ;;  %p4333_p11 = scmp.lt.u32.totalorder %s4326_s22, %s6462_s5 }
  0x3c   : > { %s6463_s6 = scalar_select %p5308_p8, 1, 0 }
  0x3d   : > { %p4329_p9 = pnand %p5308_p8, %p4327_p7 }
  0x3f   : > { %p4330_p10 = pneg %p4329_p9 }
  0x41   : > { %p4335_p12 = pnand %p4333_p11, %p4330_p10 }
  0x43   : > { %4338 = shalt.err (!%p4335_p12)
}
  0x44   : > { %s4339_s23 = scalar_lea.vmem %s5281_s1, 384  ;;  %p4347_p5 = scmp.lt.s32.totalorder %s5281_s1, %s5281_s1 }
  0x45   : > { %p4340_p13 = scmp.ne.s32.totalorder %s5281_s1, %s4339_s23  ;;  %p4348_p4 = scmp.lt.s32.totalorder %s4339_s23, %s4339_s23 }
  0x47   : > { %p4342_p0 = pnand %p4340_p13, %p5308_p8  ;;  %p4349_p7 = por %p4348_p4, %p4347_p5 }
  0x49   : > { %p4343_p2 = pneg %p4342_p0 }
  0x4b   : > { %p4350_p9 = pnand %p4349_p7, %p4343_p2 }
  0x4d   : > { %4353 = shalt.err (!%p4350_p9)
}
  0x4e   : > { %s5101_s2 = smov 128   ;;  %s5102_s21 = smov 8  }
  0x4f   : > { %4069 = dma.hbm_to_vmem [thread:$0]  (!%p5292_p6), %s6462_s5, 384, %s5281_s1, [#allocation9], %s5101_s2, %s5101_s2, %s5102_s21  }
  0x50   : > { %s6464_s20 = sld [smem:[#allocation65_spill]] }
  0x56   : > { %s4354_s18 = scalar_lea.hbm %s6464_s20, 16 }
  0x57   : > { %p4355_p4 = scmp.ne.s32.totalorder %s6464_s20, %s4354_s18  ;;  %p4361_p12 = scmp.lt.u32.totalorder %s4354_s18, %s6464_s20 }
  0x59   : > { %p4357_p10 = pnand %p4355_p4, %p5308_p8 }
  0x5b   : > { %p4358_p11 = pneg %p4357_p10 }
  0x5d   : > { %p4363_p13 = pnand %p4361_p12, %p4358_p11 }
  0x5f   : > { %4366 = shalt.err (!%p4363_p13)
}
  0x60   : > { %s4367_s1 = scalar_lea.vmem %s5296_s27, 16  ;;  %s4374_s14 = scalar_lea.vmem %s5296_s27, 32 }
  0x61   : > { %p4368_p0 = scmp.ne.s32.totalorder %s5296_s27, %s4367_s1  ;;  %p4375_p7 = scmp.lt.s32.totalorder %s5296_s27, %s5296_s27 }
  0x62   : > { %p4376_p9 = scmp.lt.s32.totalorder %s4374_s14, %s4367_s1 }
  0x63   : > { %p4370_p2 = pnand %p4368_p0, %p5308_p8 }
  0x64   : > { %p4377_p4 = por %p4376_p9, %p4375_p7 }
  0x65   : > { %p4371_p5 = pneg %p4370_p2 }
  0x67   : > { %p4378_p10 = pnand %p4377_p4, %p4371_p5 }
  0x69   : > { %4381 = shalt.err (!%p4378_p10)
}
  0x6a   : > { %4072 = dma.hbm_to_vmem [thread:$0]  (!%p5292_p6), %s6464_s20, 16, %s5296_s27, [#allocation12]  }
  0x6b   : > { %s6465_s21 = sld [smem:[#allocation67_spill]] }
  0x71   : > { %s4382_s22 = scalar_lea.hbm %s6465_s21, 256 }
  0x72   : > { %p4383_p11 = scmp.ne.s32.totalorder %s6465_s21, %s4382_s22  ;;  %p4389_p0 = scmp.lt.u32.totalorder %s4382_s22, %s6465_s21 }
  0x74   : > { %p4385_p12 = pnand %p4383_p11, %p5308_p8 }
  0x76   : > { %p4386_p13 = pneg %p4385_p12 }
  0x78   : > { %p4391_p2 = pnand %p4389_p0, %p4386_p13 }
  0x7a   : > { %4394 = shalt.err (!%p4391_p2)
}
  0x7b   : > { %s4395_s1 = scalar_lea.vmem %s647_s29, 256  ;;  %p4403_p4 = scmp.lt.s32.totalorder %s647_s29, %s647_s29 }
  0x7c   : > { %p4396_p5 = scmp.ne.s32.totalorder %s647_s29, %s4395_s1  ;;  %p4404_p10 = scmp.lt.s32.totalorder %s4395_s1, %s4395_s1 }
  0x7e   : > { %p4398_p7 = pnand %p4396_p5, %p5308_p8  ;;  %p4405_p1 = por %p4404_p10, %p4403_p4 }
  0x80   : > { %p4399_p9 = pneg %p4398_p7 }
  0x82   : > { %p4406_p3 = pnand %p4405_p1, %p4399_p9 }
  0x84   : > { %4409 = shalt.err (!%p4406_p3)
}
  0x85   : > { %s6405_s27 = smov 64   ;;  %s6407_s14 = smov 4  }
  0x86   : > { %4078 = dma.hbm_to_vmem [thread:$0]  (!%p5292_p6), %s6465_s21, 256, %s647_s29, [#allocation15], %s6405_s27, %s6405_s27, %s6407_s14  }
  0x87   : > { %s5105_s18 = smov [#allocation17]   ;;  %s5106_s22 = smov [#allocation20]  }
  0x88   : > { %s672_s2 = sshll.u32 %s5105_s18, 4  ;;  %s698_s3 = sshll.u32 %s5106_s22, 4  ;;  %s673_s2 = int_to_ptr.vmem [resolvable:$true] %s672_s2  ;;  %s699_s3 = int_to_ptr.vmem [resolvable:$true] %s698_s3 }
  0x89   : > { %s6466_s9 = sld [smem:[#allocation69_spill]] }
  0x8f   : > { %s4410_s23 = scalar_lea.hbm %s6466_s9, 256 }
  0x90   : > { %p4411_p1 = scmp.ne.s32.totalorder %s6466_s9, %s4410_s23  ;;  %p4417_p12 = scmp.lt.u32.totalorder %s4410_s23, %s6466_s9 }
  0x92   : > { %p4413_p3 = pnand %p4411_p1, %p5308_p8 }
  0x94   : > { %p4414_p11 = pneg %p4413_p3 }
  0x96   : > { %p4419_p13 = pnand %p4417_p12, %p4414_p11 }
  0x98   : > { %4422 = shalt.err (!%p4419_p13)
}
  0x99   : > { %s4423_s29 = scalar_lea.vmem %s673_s2, 256  ;;  %p4431_p7 = scmp.lt.s32.totalorder %s673_s2, %s673_s2 }
  0x9a   : > { %p4424_p0 = scmp.ne.s32.totalorder %s673_s2, %s4423_s29  ;;  %p4432_p9 = scmp.lt.s32.totalorder %s4423_s29, %s4423_s29 }
  0x9c   : > { %p4426_p2 = pnand %p4424_p0, %p5308_p8  ;;  %p4433_p4 = por %p4432_p9, %p4431_p7 }
  0x9e   : > { %p4427_p5 = pneg %p4426_p2 }
  0xa0   : > { %p4434_p10 = pnand %p4433_p4, %p4427_p5 }
  0xa2   : > { %4437 = shalt.err (!%p4434_p10)
}
  0xa3   : > { %4084 = dma.hbm_to_vmem [thread:$0]  (!%p5292_p6), %s6466_s9, 256, %s673_s2, [#allocation18], %s6405_s27, %s6405_s27, %s6407_s14  }
  0xa4   : > { %s6467_s11 = sld [smem:[#allocation71_spill]] }
  0xaa   : > { %s4438_s16 = scalar_lea.hbm %s6467_s11, 256 }
  0xab   : > { %p4439_p1 = scmp.ne.s32.totalorder %s6467_s11, %s4438_s16  ;;  %p4445_p12 = scmp.lt.u32.totalorder %s4438_s16, %s6467_s11 }
  0xad   : > { %p4441_p3 = pnand %p4439_p1, %p5308_p8 }
  0xaf   : > { %p4442_p11 = pneg %p4441_p3 }
  0xb1   : > { %p4447_p13 = pnand %p4445_p12, %p4442_p11 }
  0xb3   : > { %4450 = shalt.err (!%p4447_p13)
}
  0xb4   : > { %s4451_s23 = scalar_lea.vmem %s699_s3, 256  ;;  %p4459_p7 = scmp.lt.s32.totalorder %s699_s3, %s699_s3 }
  0xb5   : > { %p4452_p0 = scmp.ne.s32.totalorder %s699_s3, %s4451_s23  ;;  %p4460_p9 = scmp.lt.s32.totalorder %s4451_s23, %s4451_s23 }
  0xb7   : > { %p4454_p2 = pnand %p4452_p0, %p5308_p8  ;;  %p4461_p4 = por %p4460_p9, %p4459_p7 }
  0xb9   : > { %p4455_p5 = pneg %p4454_p2 }
  0xbb   : > { %p4462_p10 = pnand %p4461_p4, %p4455_p5 }
  0xbd   : > { %4465 = shalt.err (!%p4462_p10)
}
  0xbe   : > { %4090 = dma.hbm_to_vmem [thread:$0]  (!%p5292_p6), %s6467_s11, 256, %s699_s3, [#allocation21], %s6405_s27, %s6405_s27, %s6407_s14  }
  0xbf   : > { %s5107_s29 = smov [#allocation23]   ;;  %s5108_s20 = smov [#allocation26]  }
  0xc0   : > { %s724_s10 = sshll.u32 %s5107_s29, 4  ;;  %s750_s5 = sshll.u32 %s5108_s20, 4  ;;  %s725_s10 = int_to_ptr.vmem [resolvable:$true] %s724_s10  ;;  %s751_s5 = int_to_ptr.vmem [resolvable:$true] %s750_s5 }
  0xc1   : > { %s6468_s13 = sld [smem:[#allocation73_spill]] }
  0xc7   : > { %s4466_s18 = scalar_lea.hbm %s6468_s13, 256 }
  0xc8   : > { %p4467_p1 = scmp.ne.s32.totalorder %s6468_s13, %s4466_s18  ;;  %p4473_p12 = scmp.lt.u32.totalorder %s4466_s18, %s6468_s13 }
  0xca   : > { %p4469_p3 = pnand %p4467_p1, %p5308_p8 }
  0xcc   : > { %p4470_p11 = pneg %p4469_p3 }
  0xce   : > { %p4475_p13 = pnand %p4473_p12, %p4470_p11 }
  0xd0   : > { %4478 = shalt.err (!%p4475_p13)
}
  0xd1   : > { %s4479_s3 = scalar_lea.vmem %s725_s10, 256  ;;  %p4487_p7 = scmp.lt.s32.totalorder %s725_s10, %s725_s10 }
  0xd2   : > { %p4480_p0 = scmp.ne.s32.totalorder %s725_s10, %s4479_s3  ;;  %p4488_p9 = scmp.lt.s32.totalorder %s4479_s3, %s4479_s3 }
  0xd4   : > { %p4482_p2 = pnand %p4480_p0, %p5308_p8  ;;  %p4489_p4 = por %p4488_p9, %p4487_p7 }
  0xd6   : > { %p4483_p5 = pneg %p4482_p2 }
  0xd8   : > { %p4490_p10 = pnand %p4489_p4, %p4483_p5 }
  0xda   : > { %4493 = shalt.err (!%p4490_p10)
}
  0xdb   : > { %4096 = dma.hbm_to_vmem [thread:$0]  (!%p5292_p6), %s6468_s13, 256, %s725_s10, [#allocation24], %s6405_s27, %s6405_s27, %s6407_s14  }
  0xdc   : > { %s6469_s15 = sld [smem:[#allocation75_spill]] }
  0xe2   : > { %s4494_s12 = scalar_lea.hbm %s6469_s15, 256 }
  0xe3   : > { %p4495_p1 = scmp.ne.s32.totalorder %s6469_s15, %s4494_s12  ;;  %p4501_p12 = scmp.lt.u32.totalorder %s4494_s12, %s6469_s15 }
  0xe5   : > { %p4497_p3 = pnand %p4495_p1, %p5308_p8 }
  0xe7   : > { %p4498_p11 = pneg %p4497_p3 }
  0xe9   : > { %p4503_p13 = pnand %p4501_p12, %p4498_p11 }
  0xeb   : > { %4506 = shalt.err (!%p4503_p13)
}
  0xec   : > { %s4507_s28 = scalar_lea.vmem %s751_s5, 256  ;;  %p4515_p7 = scmp.lt.s32.totalorder %s751_s5, %s751_s5 }
  0xed   : > { %p4508_p0 = scmp.ne.s32.totalorder %s751_s5, %s4507_s28  ;;  %p4516_p9 = scmp.lt.s32.totalorder %s4507_s28, %s4507_s28 }
  0xef   : > { %p4510_p2 = pnand %p4508_p0, %p5308_p8  ;;  %p4517_p4 = por %p4516_p9, %p4515_p7 }
  0xf1   : > { %p4511_p5 = pneg %p4510_p2 }
  0xf3   : > { %p4518_p10 = pnand %p4517_p4, %p4511_p5 }
  0xf5   : > { %4521 = shalt.err (!%p4518_p10)
}
  0xf6   : > { %4102 = dma.hbm_to_vmem [thread:$0]  (!%p5292_p6), %s6469_s15, 256, %s751_s5, [#allocation27], %s6405_s27, %s6405_s27, %s6407_s14  }
  0xf7   : > { %s5109_s3 = smov [#allocation29]   ;;  %s5110_s1 = smov [#allocation32]  }
  0xf8   : > { %s776_s2 = sshll.u32 %s5109_s3, 4  ;;  %s802_s29 = sshll.u32 %s5110_s1, 4  ;;  %s777_s2 = int_to_ptr.vmem [resolvable:$true] %s776_s2  ;;  %s803_s29 = int_to_ptr.vmem [resolvable:$true] %s802_s29 }
  0xf9   : > { %s6470_s17 = sld [smem:[#allocation77_spill]] }
  0xff   : > { %s4522_s16 = scalar_lea.hbm %s6470_s17, 256 }
 0x100   : > { %p4523_p1 = scmp.ne.s32.totalorder %s6470_s17, %s4522_s16  ;;  %p4529_p12 = scmp.lt.u32.totalorder %s4522_s16, %s6470_s17 }
 0x102   : > { %p4525_p3 = pnand %p4523_p1, %p5308_p8 }
 0x104   : > { %p4526_p11 = pneg %p4525_p3 }
 0x106   : > { %p4531_p13 = pnand %p4529_p12, %p4526_p11 }
 0x108   : > { %4534 = shalt.err (!%p4531_p13)
}
 0x109   : > { %s4535_s5 = scalar_lea.vmem %s777_s2, 256  ;;  %p4543_p7 = scmp.lt.s32.totalorder %s777_s2, %s777_s2 }
 0x10a   : > { %p4536_p0 = scmp.ne.s32.totalorder %s777_s2, %s4535_s5  ;;  %p4544_p9 = scmp.lt.s32.totalorder %s4535_s5, %s4535_s5 }
 0x10c   : > { %p4538_p2 = pnand %p4536_p0, %p5308_p8  ;;  %p4545_p4 = por %p4544_p9, %p4543_p7 }
 0x10e   : > { %p4539_p5 = pneg %p4538_p2 }
 0x110   : > { %p4546_p10 = pnand %p4545_p4, %p4539_p5 }
 0x112   : > { %4549 = shalt.err (!%p4546_p10)
}
 0x113   : > { %4108 = dma.hbm_to_vmem [thread:$0]  (!%p5292_p6), %s6470_s17, 256, %s777_s2, [#allocation30], %s6405_s27, %s6405_s27, %s6407_s14  }
 0x114   : > { %s6471_s19 = sld [smem:[#allocation79_spill]] }
 0x11a   : > { %s4550_s20 = scalar_lea.hbm %s6471_s19, 512 }
 0x11b   : > { %p4551_p1 = scmp.ne.s32.totalorder %s6471_s19, %s4550_s20  ;;  %p4557_p12 = scmp.lt.u32.totalorder %s4550_s20, %s6471_s19 }
 0x11d   : > { %p4553_p3 = pnand %p4551_p1, %p5308_p8 }
 0x11f   : > { %p4554_p11 = pneg %p4553_p3 }
 0x121   : > { %p4559_p13 = pnand %p4557_p12, %p4554_p11 }
 0x123   : > { %4562 = shalt.err (!%p4559_p13)
}
 0x124   : > { %s4563_s0 = scalar_lea.vmem %s803_s29, 512  ;;  %p4571_p7 = scmp.lt.s32.totalorder %s803_s29, %s803_s29 }
 0x125   : > { %p4564_p0 = scmp.ne.s32.totalorder %s803_s29, %s4563_s0  ;;  %p4572_p9 = scmp.lt.s32.totalorder %s4563_s0, %s4563_s0 }
 0x127   : > { %p4566_p2 = pnand %p4564_p0, %p5308_p8  ;;  %p4573_p4 = por %p4572_p9, %p4571_p7 }
 0x129   : > { %p4567_p5 = pneg %p4566_p2 }
 0x12b   : > { %p4574_p10 = pnand %p4573_p4, %p4567_p5 }
 0x12d   : > { %4577 = shalt.err (!%p4574_p10)
}
 0x12e   : > { %4114 = dma.hbm_to_vmem [thread:$0]  (!%p5292_p6), %s6471_s19, 512, %s803_s29, [#allocation33], %s6405_s27, %s6405_s27, %s6407_s14  }
 0x12f   : > { %s3541_s5 = sadd.s32 4294967294, %s5096_s25   ;;  %s5503_s10 = sadd.s32 1, %s5096_s25  }
 0x130   : > { %6472 = sst [smem:[#allocation57_spill]] %s5503_s10  ;;  %s65_s23 = sadd.s32 1, %s5092_s24 }
 0x131   : > { %s62_s3 = ssub.s32 %s5096_s25, %s5503_s10  ;;  %p72_p1 = scmp.ne.s32.totalorder %s5092_s24, %s5088_s30 }
 0x132   : > { %p63_p3 = scmp.eq.s32.totalorder %s62_s3, 0  ;;  %p73_p11 = scmp.eq.s32.totalorder %s5096_s25, 0 }
 0x133   : > { %p78_p12 = scmp.ne.s32.totalorder %s5088_s30, %s5084_s4  ;;  %p558_p13 = scmp.eq.s32.totalorder %s5276_s26, 1 }
 0x134   : > { %s5515_s1 = scalar_select %p63_p3, %s5092_s24, %s65_s23  }
 0x135   : > { %p74_p0 = por %p73_p11, %p72_p1  ;;  %p6474_p2 = scmp.eq.s32.totalorder %s5276_s26, 0 }
 0x136   : > { %6473 = sst [smem:[#allocation58_spill]] %s5515_s1  ;;  %p5523_p7 = por %p558_p13, %p72_p1 }
 0x137   : > { %p5519_p5 = por %p6474_p2, %p78_p12  ;;  %p564_p9 = scmp.eq.s32.totalorder %s3541_s5, 1 }
 0x138   : > { %s6476_s20 = scalar_select %p5523_p7, 1, 0 }
 0x139   : > { %s6475_s29 = scalar_select %p5519_p5, 1, 0 }
 0x13a   : > { %p4159_p4 = scmp.lt.s32.totalorder %s5096_s25, 2  ;;  %s5529_s12 = sand.u32 1, %s5092_s24  }
 0x13b   : > { %p5531_p10 = por %p564_p9, %p78_p12  ;;  %s6409_s18 = sshll.u32 %s5529_s12, 3 }
 0x13c   : > { %s6410_s22 = sshll.u32 %s5096_s25, 7  ;;  %p5537_p3 = pnand %p4159_p4, %p74_p0 }
 0x13d   : > { %s6477_s16 = scalar_select %p5531_p10, 1, 0 }
 0x13e   : > { %s6479_s0 = scalar_select %p5537_p3, 1, 0 }
 0x13f   : > { %6478 = sst [smem:[#allocation59_spill]] %s6477_s16  ;;  %s6412_s2 = sand.u32 1, %s5096_s25  }
 0x140   : > { %s6480_s23 = sld [smem:[#allocation61_spill]]  ;;  %s864_s27 = scalar_lea.vmem [#allocation5], %s6409_s18 }
 0x141   : > { %s871_s14 = sshll.u32 %s864_s27, 4  ;;  %s5555_s9 = scalar_lea.sflag [#allocation6], %s6412_s2  ;;  %s5551_s14 = int_to_ptr.vmem [resolvable:$true] %s871_s14 }
 0x142   : > { %p5561_p11 = pneg %p5537_p3 }
 0x144   : > { %s6481_s13 = scalar_select %p5561_p11, 1, 0 }
 0x146   : > { %s5547_s3 = scalar_lea.hbm %s6480_s23, %s6410_s22  ;;  %s4583_s27 = scalar_lea.hbm %s6480_s23, 256 }
 0x147   : > { %s4578_s11 = scalar_lea.hbm %s5547_s3, 128  ;;  %p4584_p0 = scmp.lt.u32.totalorder %s5547_s3, %s6480_s23 }
 0x148   : > { %p4579_p1 = scmp.ne.s32.totalorder %s5547_s3, %s4578_s11  ;;  %p4585_p2 = scmp.lt.u32.totalorder %s4583_s27, %s4578_s11 }
 0x149   : > { %p4587_p4 = scmp.lt.u32.totalorder %s4578_s11, %s5547_s3 }
 0x14a   : > { %p4581_p12 = pnand %p5561_p11, %p4579_p1  ;;  %p4586_p9 = por %p4585_p2, %p4584_p0 }
 0x14c   : > { %p4582_p13 = pneg %p4581_p12  ;;  %p4588_p10 = por %p4587_p4, %p4586_p9 }
 0x14e   : > { %p4589_p7 = pnand %p4588_p10, %p4582_p13 }
 0x150   : > { %4592 = shalt.err (!%p4589_p7)
}
 0x151   : > { %s4593_s2 = scalar_lea.vmem %s5551_s14, 128  ;;  %s5111_s28 = smov [#allocation5]  }
 0x152   : > { %p4594_p1 = scmp.ne.s32.totalorder %s5551_s14, %s4593_s2  ;;  %s4598_s5 = sshll.u32 %s5111_s28, 4  ;;  %s4599_s5 = int_to_ptr.vmem [resolvable:$false] %s4598_s5 }
 0x153   : > { %s4600_s18 = scalar_lea.vmem %s4599_s5, 256  ;;  %p4601_p6 = scmp.lt.s32.totalorder %s5551_s14, %s4599_s5 }
 0x154   : > { %p4596_p12 = pnand %p4594_p1, %p5561_p11  ;;  %p4602_p8 = scmp.lt.s32.totalorder %s4600_s18, %s4593_s2 }
 0x156   : > { %p4597_p5 = pneg %p4596_p12  ;;  %p4603_p0 = por %p4602_p8, %p4601_p6 }
 0x158   : > { %p4604_p2 = pnand %p4603_p0, %p4597_p5 }
 0x15a   : > { %4607 = shalt.err (!%p4604_p2)
}
 0x15b   : > { %4127 = dma.hbm_to_vmem [thread:$0]  (!%p5537_p3), %s5547_s3, 128, %s5551_s14, %s5555_s9  }
 0x15c   : > { %s5112_s11 = smov [#allocation13]   ;;  %s5113_s27 = smov [#allocation16]  }
 0x15d   : > { %s633_s22 = sshll.u32 %s5112_s11, 4  ;;  %s659_s15 = sshll.u32 %s5113_s27, 4  ;;  %s634_s22 = int_to_ptr.vmem [resolvable:$true] %s633_s22  ;;  %s5585_s15 = int_to_ptr.vmem [resolvable:$true] %s659_s15 }
 0x15e   : > { %s6482_s2 = sld [smem:[#allocation66_spill]]  ;;  %p6483_p8 = scmp.ne.s32.totalorder %s6463_s6, 0 }
 0x164   : > { %s4608_s18 = scalar_lea.hbm %s6482_s2, 256 }
 0x165   : > { %p4609_p6 = scmp.ne.s32.totalorder %s6482_s2, %s4608_s18  ;;  %p4615_p10 = scmp.lt.u32.totalorder %s4608_s18, %s6482_s2 }
 0x167   : > { %p4611_p5 = pnand %p4609_p6, %p6483_p8 }
 0x169   : > { %p4612_p7 = pneg %p4611_p5 }
 0x16b   : > { %p4617_p13 = pnand %p4615_p10, %p4612_p7 }
 0x16d   : > { %4620 = shalt.err (!%p4617_p13)
}
 0x16e   : > { %s4621_s3 = scalar_lea.vmem %s634_s22, 256  ;;  %p4629_p12 = scmp.lt.s32.totalorder %s634_s22, %s634_s22 }
 0x16f   : > { %p4622_p9 = scmp.ne.s32.totalorder %s634_s22, %s4621_s3  ;;  %p4630_p0 = scmp.lt.s32.totalorder %s4621_s3, %s4621_s3 }
 0x171   : > { %p4624_p4 = pnand %p4622_p9, %p6483_p8  ;;  %p4631_p2 = por %p4630_p0, %p4629_p12 }
 0x173   : > { %p4625_p1 = pneg %p4624_p4 }
 0x175   : > { %p4632_p3 = pnand %p4631_p2, %p4625_p1 }
 0x177   : > { %4635 = shalt.err (!%p4632_p3)
}
 0x178   : > { %p6484_p6 = scmp.ne.s32.totalorder %s6461_s7, 0  ;;  %s6485_s17 = smov 4  }
 0x179   : > { %s6486_s19 = smov 64   ;;  %s6487_s8 = sld [smem:[#allocation68_spill]] }
 0x17a   : > { %4075 = dma.hbm_to_vmem [thread:$0]  (!%p6484_p6), %s6482_s2, 256, %s634_s22, [#allocation12], %s6486_s19, %s6486_s19, %s6485_s17  }
 0x17f   : > { %s4636_s5 = scalar_lea.hbm %s6487_s8, 256 }
 0x180   : > { %p4637_p5 = scmp.ne.s32.totalorder %s6487_s8, %s4636_s5  ;;  %p4643_p10 = scmp.lt.u32.totalorder %s4636_s5, %s6487_s8 }
 0x182   : > { %p4639_p3 = pnand %p4637_p5, %p6483_p8 }
 0x184   : > { %p4640_p7 = pneg %p4639_p3 }
 0x186   : > { %p4645_p13 = pnand %p4643_p10, %p4640_p7 }
 0x188   : > { %4648 = shalt.err (!%p4645_p13)
}
 0x189   : > { %s4649_s22 = scalar_lea.vmem %s5585_s15, 256  ;;  %p4657_p12 = scmp.lt.s32.totalorder %s5585_s15, %s5585_s15 }
 0x18a   : > { %p4650_p9 = scmp.ne.s32.totalorder %s5585_s15, %s4649_s22  ;;  %p4658_p0 = scmp.lt.s32.totalorder %s4649_s22, %s4649_s22 }
 0x18c   : > { %p4652_p4 = pnand %p4650_p9, %p6483_p8  ;;  %p4659_p2 = por %p4658_p0, %p4657_p12 }
 0x18e   : > { %p4653_p1 = pneg %p4652_p4 }
 0x190   : > { %p4660_p5 = pnand %p4659_p2, %p4653_p1 }
 0x192   : > { %4663 = shalt.err (!%p4660_p5)
}
 0x193   : > { %4081 = dma.hbm_to_vmem [thread:$0]  (!%p6484_p6), %s6487_s8, 256, %s5585_s15, [#allocation15], %s6486_s19, %s6486_s19, %s6485_s17  }
 0x194   : > { %s5114_s11 = smov [#allocation19]   ;;  %s5115_s28 = smov [#allocation22]  }
 0x195   : > { %s685_s27 = sshll.u32 %s5114_s11, 4  ;;  %s711_s5 = sshll.u32 %s5115_s28, 4  ;;  %s686_s27 = int_to_ptr.vmem [resolvable:$true] %s685_s27  ;;  %s5634_s5 = int_to_ptr.vmem [resolvable:$true] %s711_s5 }
 0x196   : > { %s6488_s3 = sld [smem:[#allocation70_spill]] }
 0x19c   : > { %s4664_s22 = scalar_lea.hbm %s6488_s3, 256 }
 0x19d   : > { %p4665_p3 = scmp.ne.s32.totalorder %s6488_s3, %s4664_s22  ;;  %p4671_p13 = scmp.lt.u32.totalorder %s4664_s22, %s6488_s3 }
 0x19f   : > { %p4667_p7 = pnand %p4665_p3, %p6483_p8 }
 0x1a1   : > { %p4668_p10 = pneg %p4667_p7 }
 0x1a3   : > { %p4673_p9 = pnand %p4671_p13, %p4668_p10 }
 0x1a5   : > { %4676 = shalt.err (!%p4673_p9)
}
 0x1a6   : > { %s4677_s21 = scalar_lea.vmem %s686_s27, 256  ;;  %p4685_p0 = scmp.lt.s32.totalorder %s686_s27, %s686_s27 }
 0x1a7   : > { %p4678_p4 = scmp.ne.s32.totalorder %s686_s27, %s4677_s21  ;;  %p4686_p2 = scmp.lt.s32.totalorder %s4677_s21, %s4677_s21 }
 0x1a9   : > { %p4680_p1 = pnand %p4678_p4, %p6483_p8  ;;  %p4687_p5 = por %p4686_p2, %p4685_p0 }
 0x1ab   : > { %p4681_p12 = pneg %p4680_p1 }
 0x1ad   : > { %p4688_p11 = pnand %p4687_p5, %p4681_p12 }
 0x1af   : > { %4691 = shalt.err (!%p4688_p11)
}
 0x1b0   : > { %4087 = dma.hbm_to_vmem [thread:$0]  (!%p6484_p6), %s6488_s3, 256, %s686_s27, [#allocation18], %s6486_s19, %s6486_s19, %s6485_s17  }
 0x1b1   : > { %s6489_s18 = sld [smem:[#allocation72_spill]] }
 0x1b7   : > { %s4692_s14 = scalar_lea.hbm %s6489_s18, 256 }
 0x1b8   : > { %p4693_p3 = scmp.ne.s32.totalorder %s6489_s18, %s4692_s14  ;;  %p4699_p10 = scmp.lt.u32.totalorder %s4692_s14, %s6489_s18 }
 0x1ba   : > { %p4695_p11 = pnand %p4693_p3, %p6483_p8 }
 0x1bc   : > { %p4696_p7 = pneg %p4695_p11 }
 0x1be   : > { %p4701_p13 = pnand %p4699_p10, %p4696_p7 }
 0x1c0   : > { %4704 = shalt.err (!%p4701_p13)
}
 0x1c1   : > { %s4705_s27 = scalar_lea.vmem %s5634_s5, 256  ;;  %p4713_p12 = scmp.lt.s32.totalorder %s5634_s5, %s5634_s5 }
 0x1c2   : > { %p4706_p9 = scmp.ne.s32.totalorder %s5634_s5, %s4705_s27  ;;  %p4714_p0 = scmp.lt.s32.totalorder %s4705_s27, %s4705_s27 }
 0x1c4   : > { %p4708_p4 = pnand %p4706_p9, %p6483_p8  ;;  %p4715_p2 = por %p4714_p0, %p4713_p12 }
 0x1c6   : > { %p4709_p1 = pneg %p4708_p4 }
 0x1c8   : > { %p4716_p5 = pnand %p4715_p2, %p4709_p1 }
 0x1ca   : > { %4719 = shalt.err (!%p4716_p5)
}
 0x1cb   : > { %4093 = dma.hbm_to_vmem [thread:$0]  (!%p6484_p6), %s6489_s18, 256, %s5634_s5, [#allocation21], %s6486_s19, %s6486_s19, %s6485_s17  }
 0x1cc   : > { %s5116_s11 = smov [#allocation25]   ;;  %s5117_s14 = smov [#allocation28]  }
 0x1cd   : > { %s737_s28 = sshll.u32 %s5116_s11, 4  ;;  %s763_s22 = sshll.u32 %s5117_s14, 4  ;;  %s738_s28 = int_to_ptr.vmem [resolvable:$true] %s737_s28  ;;  %s5683_s22 = int_to_ptr.vmem [resolvable:$true] %s763_s22 }
 0x1ce   : > { %s6490_s21 = sld [smem:[#allocation74_spill]] }
 0x1d4   : > { %s4720_s27 = scalar_lea.hbm %s6490_s21, 256 }
 0x1d5   : > { %p4721_p3 = scmp.ne.s32.totalorder %s6490_s21, %s4720_s27  ;;  %p4727_p10 = scmp.lt.u32.totalorder %s4720_s27, %s6490_s21 }
 0x1d7   : > { %p4723_p11 = pnand %p4721_p3, %p6483_p8 }
 0x1d9   : > { %p4724_p7 = pneg %p4723_p11 }
 0x1db   : > { %p4729_p13 = pnand %p4727_p10, %p4724_p7 }
 0x1dd   : > { %4732 = shalt.err (!%p4729_p13)
}
 0x1de   : > { %s4733_s2 = scalar_lea.vmem %s738_s28, 256  ;;  %p4741_p12 = scmp.lt.s32.totalorder %s738_s28, %s738_s28 }
 0x1df   : > { %p4734_p9 = scmp.ne.s32.totalorder %s738_s28, %s4733_s2  ;;  %p4742_p0 = scmp.lt.s32.totalorder %s4733_s2, %s4733_s2 }
 0x1e1   : > { %p4736_p4 = pnand %p4734_p9, %p6483_p8  ;;  %p4743_p2 = por %p4742_p0, %p4741_p12 }
 0x1e3   : > { %p4737_p1 = pneg %p4736_p4 }
 0x1e5   : > { %p4744_p5 = pnand %p4743_p2, %p4737_p1 }
 0x1e7   : > { %4747 = shalt.err (!%p4744_p5)
}
 0x1e8   : > { %4099 = dma.hbm_to_vmem [thread:$0]  (!%p6484_p6), %s6490_s21, 256, %s738_s28, [#allocation24], %s6486_s19, %s6486_s19, %s6485_s17  }
 0x1e9   : > { %s6491_s23 = sld [smem:[#allocation76_spill]] }
 0x1ef   : > { %s4748_s15 = scalar_lea.hbm %s6491_s23, 256 }
 0x1f0   : > { %p4749_p3 = scmp.ne.s32.totalorder %s6491_s23, %s4748_s15  ;;  %p4755_p10 = scmp.lt.u32.totalorder %s4748_s15, %s6491_s23 }
 0x1f2   : > { %p4751_p11 = pnand %p4749_p3, %p6483_p8 }
 0x1f4   : > { %p4752_p7 = pneg %p4751_p11 }
 0x1f6   : > { %p4757_p13 = pnand %p4755_p10, %p4752_p7 }
 0x1f8   : > { %4760 = shalt.err (!%p4757_p13)
}
 0x1f9   : > { %s4761_s28 = scalar_lea.vmem %s5683_s22, 256  ;;  %p4769_p12 = scmp.lt.s32.totalorder %s5683_s22, %s5683_s22 }
 0x1fa   : > { %p4762_p9 = scmp.ne.s32.totalorder %s5683_s22, %s4761_s28  ;;  %p4770_p0 = scmp.lt.s32.totalorder %s4761_s28, %s4761_s28 }
 0x1fc   : > { %p4764_p4 = pnand %p4762_p9, %p6483_p8  ;;  %p4771_p2 = por %p4770_p0, %p4769_p12 }
 0x1fe   : > { %p4765_p1 = pneg %p4764_p4 }
 0x200   : > { %p4772_p5 = pnand %p4771_p2, %p4765_p1 }
 0x202   : > { %4775 = shalt.err (!%p4772_p5)
}
 0x203   : > { %4105 = dma.hbm_to_vmem [thread:$0]  (!%p6484_p6), %s6491_s23, 256, %s5683_s22, [#allocation27], %s6486_s19, %s6486_s19, %s6485_s17  }
 0x204   : > { %s5118_s11 = smov [#allocation31]   ;;  %s5119_s15 = smov [#allocation34]  }
 0x205   : > { %s789_s14 = sshll.u32 %s5118_s11, 4  ;;  %s815_s27 = sshll.u32 %s5119_s15, 4  ;;  %s790_s14 = int_to_ptr.vmem [resolvable:$true] %s789_s14  ;;  %s5732_s27 = int_to_ptr.vmem [resolvable:$true] %s815_s27 }
 0x206   : > { %s6492_s2 = sld [smem:[#allocation78_spill]] }
 0x20c   : > { %s4776_s28 = scalar_lea.hbm %s6492_s2, 256 }
 0x20d   : > { %p4777_p3 = scmp.ne.s32.totalorder %s6492_s2, %s4776_s28  ;;  %p4783_p10 = scmp.lt.u32.totalorder %s4776_s28, %s6492_s2 }
 0x20f   : > { %p4779_p11 = pnand %p4777_p3, %p6483_p8 }
 0x211   : > { %p4780_p7 = pneg %p4779_p11 }
 0x213   : > { %p4785_p13 = pnand %p4783_p10, %p4780_p7 }
 0x215   : > { %4788 = shalt.err (!%p4785_p13)
}
 0x216   : > { %s4789_s3 = scalar_lea.vmem %s790_s14, 256  ;;  %p4797_p12 = scmp.lt.s32.totalorder %s790_s14, %s790_s14 }
 0x217   : > { %p4790_p9 = scmp.ne.s32.totalorder %s790_s14, %s4789_s3  ;;  %p4798_p0 = scmp.lt.s32.totalorder %s4789_s3, %s4789_s3 }
 0x219   : > { %p4792_p4 = pnand %p4790_p9, %p6483_p8  ;;  %p4799_p2 = por %p4798_p0, %p4797_p12 }
 0x21b   : > { %p4793_p1 = pneg %p4792_p4 }
 0x21d   : > { %p4800_p5 = pnand %p4799_p2, %p4793_p1 }
 0x21f   : > { %4803 = shalt.err (!%p4800_p5)
}
 0x220   : > { %4111 = dma.hbm_to_vmem [thread:$0]  (!%p6484_p6), %s6492_s2, 256, %s790_s14, [#allocation30], %s6486_s19, %s6486_s19, %s6485_s17  }
 0x221   : > { %s6493_s1 = sld [smem:[#allocation80_spill]] }
 0x227   : > { %s4804_s5 = scalar_lea.hbm %s6493_s1, 256 }
 0x228   : > { %p4805_p3 = scmp.ne.s32.totalorder %s6493_s1, %s4804_s5  ;;  %p4811_p10 = scmp.lt.u32.totalorder %s4804_s5, %s6493_s1 }
 0x22a   : > { %p4807_p11 = pnand %p4805_p3, %p6483_p8 }
 0x22c   : > { %p4808_p7 = pneg %p4807_p11 }
 0x22e   : > { %p4813_p13 = pnand %p4811_p10, %p4808_p7 }
 0x230   : > { %4816 = shalt.err (!%p4813_p13)
}
 0x231   : > { %s4817_s14 = scalar_lea.vmem %s5732_s27, 256  ;;  %p4825_p12 = scmp.lt.s32.totalorder %s5732_s27, %s5732_s27 }
 0x232   : > { %p4818_p9 = scmp.ne.s32.totalorder %s5732_s27, %s4817_s14  ;;  %p4826_p0 = scmp.lt.s32.totalorder %s4817_s14, %s4817_s14 }
 0x234   : > { %p4820_p4 = pnand %p4818_p9, %p6483_p8  ;;  %p4827_p2 = por %p4826_p0, %p4825_p12 }
 0x236   : > { %p4821_p1 = pneg %p4820_p4 }
 0x238   : > { %p4828_p5 = pnand %p4827_p2, %p4821_p1 }
 0x23a   : > { %4831 = shalt.err (!%p4828_p5)
}
 0x23b   : > { %4117 = dma.hbm_to_vmem [thread:$0]  (!%p6484_p6), %s6493_s1, 256, %s5732_s27, [#allocation33], %s6486_s19, %s6486_s19, %s6485_s17  }
 0x23c   : > { %s5120_s11 = smov [#allocation35]   ;;  %s6494_s5 = sshll.u32 %s5096_s25, 7 }
 0x23d   : > { %s828_s15 = sshll.u32 %s5120_s11, 4  ;;  %s6495_s22 = sld [smem:[#allocation60_spill]]  ;;  %s829_s15 = int_to_ptr.vmem [resolvable:$true] %s828_s15 }
 0x23e   : > { %s6496_s23 = sld [smem:[#allocation81_spill]] }
 0x243   : > { %s5786_s3 = scalar_lea.hbm %s6495_s22, %s6494_s5 }
 0x244   : > { %s4832_s24 = scalar_lea.hbm %s6496_s23, 256 }
 0x245   : > { %p4833_p3 = scmp.ne.s32.totalorder %s6496_s23, %s4832_s24  ;;  %p4839_p10 = scmp.lt.u32.totalorder %s4832_s24, %s6496_s23 }
 0x247   : > { %p4835_p11 = pnand %p4833_p3, %p6483_p8 }
 0x249   : > { %p4836_p7 = pneg %p4835_p11 }
 0x24b   : > { %p4841_p13 = pnand %p4839_p10, %p4836_p7 }
 0x24d   : > { %4844 = shalt.err (!%p4841_p13)
}
 0x24e   : > { %s4845_s21 = scalar_lea.vmem %s829_s15, 256  ;;  %p4853_p12 = scmp.lt.s32.totalorder %s829_s15, %s829_s15 }
 0x24f   : > { %p4846_p9 = scmp.ne.s32.totalorder %s829_s15, %s4845_s21  ;;  %p4854_p0 = scmp.lt.s32.totalorder %s4845_s21, %s4845_s21 }
 0x251   : > { %p4848_p4 = pnand %p4846_p9, %p6483_p8  ;;  %p4855_p2 = por %p4854_p0, %p4853_p12 }
 0x253   : > { %p4849_p1 = pneg %p4848_p4 }
 0x255   : > { %p4856_p5 = pnand %p4855_p2, %p4849_p1 }
 0x257   : > { %4859 = shalt.err (!%p4856_p5)
}
 0x258   : > { %4120 = dma.hbm_to_vmem [thread:$0]  (!%p6484_p6), %s6496_s23, 256, %s829_s15, [#allocation36], %s6486_s19, %s6486_s19, %s6485_s17  }
 0x259   : > { %s6497_s6 = sshll.u32 %s5529_s12, 3  ;;  %s3566_s11 = sshll.u32 %s5529_s12, 2 }
 0x25a   : > { %s846_s16 = scalar_lea.vmem [#allocation2], %s6497_s6  ;;  %s843_s7 = scalar_lea.sflag [#allocation3], %s5529_s12 }
 0x25b   : > { %s853_s2 = sshll.u32 %s846_s16, 4  ;;  %s4860_s5 = scalar_lea.hbm %s5786_s3, 128  ;;  %s854_s2 = int_to_ptr.vmem [resolvable:$true] %s853_s2 }
 0x25c   : > { %p4861_p8 = scmp.ne.s32.totalorder %s5786_s3, %s4860_s5  ;;  %p6498_p3 = scmp.ne.s32.totalorder %s6481_s13, 0 }
 0x25d   : > { %s4865_s14 = scalar_lea.hbm %s6495_s22, 256  ;;  %p4866_p10 = scmp.lt.u32.totalorder %s5786_s3, %s6495_s22 }
 0x25e   : > { %p4863_p11 = pnand %p4861_p8, %p6498_p3  ;;  %p4867_p6 = scmp.lt.u32.totalorder %s4865_s14, %s4860_s5 }
 0x25f   : > { %p4869_p9 = scmp.lt.u32.totalorder %s4860_s5, %s5786_s3 }
 0x260   : > { %p4864_p7 = pneg %p4863_p11  ;;  %p4868_p13 = por %p4867_p6, %p4866_p10 }
 0x262   : > { %p4870_p4 = por %p4869_p9, %p4868_p13 }
 0x264   : > { %p4871_p1 = pnand %p4870_p4, %p4864_p7 }
 0x266   : > { %4874 = shalt.err (!%p4871_p1)
}
 0x267   : > { %s4875_s17 = scalar_lea.vmem %s854_s2, 128  ;;  %s5121_s19 = smov [#allocation2]  }
 0x268   : > { %p4876_p12 = scmp.ne.s32.totalorder %s854_s2, %s4875_s17  ;;  %s4880_s15 = sshll.u32 %s5121_s19, 4  ;;  %s4881_s15 = int_to_ptr.vmem [resolvable:$false] %s4880_s15 }
 0x269   : > { %s4882_s21 = scalar_lea.vmem %s4881_s15, 256  ;;  %p4883_p5 = scmp.lt.s32.totalorder %s854_s2, %s4881_s15 }
 0x26a   : > { %p4878_p0 = pnand %p4876_p12, %p6498_p3  ;;  %p4884_p8 = scmp.lt.s32.totalorder %s4882_s21, %s4875_s17 }
 0x26c   : > { %p4879_p2 = pneg %p4878_p0  ;;  %p4885_p11 = por %p4884_p8, %p4883_p5 }
 0x26e   : > { %p4886_p6 = pnand %p4885_p11, %p4879_p2 }
 0x270   : > { %4889 = shalt.err (!%p4886_p6)
}
 0x271   : > { %p6499_p10 = scmp.ne.s32.totalorder %s6479_s0, 0  ;;  %s3567_s10 = sshll.u32 %s5096_s25, 6 }
 0x272   : > { %s882_s24 = scalar_lea.vmem [#allocation7], %s3566_s11  ;;  %s6500_s28 = sld [smem:[#allocation62_spill]] }
 0x273   : > { %4124 = dma.hbm_to_vmem [thread:$0]  (!%p6499_p10), %s5786_s3, 128, %s854_s2, %s843_s7  }
 0x274   : > { %s889_s6 = sshll.u32 %s882_s24, 4  ;;  %s890_s6 = int_to_ptr.vmem [resolvable:$true] %s889_s6 }
 0x278   : > { %s887_s8 = scalar_lea.hbm %s6500_s28, %s3567_s10  ;;  %s4895_s17 = scalar_lea.hbm %s6500_s28, 128 }
 0x279   : > { %s4890_s14 = scalar_lea.hbm %s887_s8, 64  ;;  %p4896_p4 = scmp.lt.u32.totalorder %s887_s8, %s6500_s28 }
 0x27a   : > { %p4891_p7 = scmp.ne.s32.totalorder %s887_s8, %s4890_s14  ;;  %p4897_p1 = scmp.lt.u32.totalorder %s4895_s17, %s4890_s14 }
 0x27b   : > { %p4899_p0 = scmp.lt.u32.totalorder %s4890_s14, %s887_s8 }
 0x27c   : > { %p4893_p13 = pnand %p4891_p7, %p6498_p3  ;;  %p4898_p12 = por %p4897_p1, %p4896_p4 }
 0x27e   : > { %p4894_p9 = pneg %p4893_p13  ;;  %p4900_p2 = por %p4899_p0, %p4898_p12 }
 0x280   : > { %p4901_p5 = pnand %p4900_p2, %p4894_p9 }
 0x282   : > { %4904 = shalt.err (!%p4901_p5)
}
 0x283   : > { %s4905_s2 = scalar_lea.vmem %s890_s6, 64  ;;  %s5122_s11 = smov [#allocation7]  }
 0x284   : > { %p4906_p8 = scmp.ne.s32.totalorder %s890_s6, %s4905_s2  ;;  %s4910_s7 = sshll.u32 %s5122_s11, 4  ;;  %s4911_s7 = int_to_ptr.vmem [resolvable:$false] %s4910_s7 }
 0x285   : > { %s4912_s15 = scalar_lea.vmem %s4911_s7, 128  ;;  %p4913_p7 = scmp.lt.s32.totalorder %s890_s6, %s4911_s7 }
 0x286   : > { %p4908_p11 = pnand %p4906_p8, %p6498_p3  ;;  %p4914_p13 = scmp.lt.s32.totalorder %s4912_s15, %s4905_s2 }
 0x288   : > { %p4909_p6 = pneg %p4908_p11  ;;  %p4915_p10 = por %p4914_p13, %p4913_p7 }
 0x28a   : > { %p4916_p1 = pnand %p4915_p10, %p4909_p6 }
 0x28c   : > { %4919 = shalt.err (!%p4916_p1)
}
 0x28d   : > { %p6501_p4 = scmp.ne.s32.totalorder %s6479_s0, 0  ;;  %s3568_s21 = sshll.u32 %s5096_s25, 4 }
 0x28e   : > { %s6502_s16 = sld [smem:[#allocation63_spill]]  ;;  %s899_s14 = scalar_lea.vmem [#allocation8], %s5529_s12 }
 0x28f   : > { %4130 = dma.hbm_to_vmem [thread:$0]  (!%p6501_p4), %s887_s8, 64, %s890_s6, %s5555_s9  }
 0x290   : > { %s906_s27 = sshll.u32 %s899_s14, 4  ;;  %s6503_s18 = sand.u32 1, %s5096_s25   ;;  %s907_s27 = int_to_ptr.vmem [resolvable:$true] %s906_s27 }
 0x291   : > { %s897_s17 = scalar_lea.sflag [#allocation9], %s6503_s18 }
 0x294   : > { %s5853_s5 = scalar_lea.hbm %s6502_s16, %s3568_s21  ;;  %s4925_s8 = scalar_lea.hbm %s6502_s16, 32 }
 0x295   : > { %s4920_s19 = scalar_lea.hbm %s5853_s5, 16  ;;  %p4926_p0 = scmp.lt.u32.totalorder %s5853_s5, %s6502_s16 }
 0x296   : > { %p4921_p10 = scmp.ne.s32.totalorder %s5853_s5, %s4920_s19  ;;  %p4927_p2 = scmp.lt.u32.totalorder %s4925_s8, %s4920_s19 }
 0x297   : > { %p4929_p8 = scmp.lt.u32.totalorder %s4920_s19, %s5853_s5 }
 0x298   : > { %p4923_p9 = pnand %p4921_p10, %p6498_p3  ;;  %p4928_p5 = por %p4927_p2, %p4926_p0 }
 0x29a   : > { %p4924_p12 = pneg %p4923_p9  ;;  %p4930_p11 = por %p4929_p8, %p4928_p5 }
 0x29c   : > { %p4931_p6 = pnand %p4930_p11, %p4924_p12 }
 0x29e   : > { %4934 = shalt.err (!%p4931_p6)
}
 0x29f   : > { %s4935_s12 = scalar_lea.vmem %s907_s27, 16  ;;  %s5123_s11 = smov [#allocation8]  }
 0x2a0   : > { %p4936_p7 = scmp.ne.s32.totalorder %s907_s27, %s4935_s12  ;;  %s4940_s7 = sshll.u32 %s5123_s11, 4  ;;  %s4941_s7 = int_to_ptr.vmem [resolvable:$false] %s4940_s7 }
 0x2a1   : > { %s4942_s15 = scalar_lea.vmem %s4941_s7, 32  ;;  %p4943_p10 = scmp.lt.s32.totalorder %s907_s27, %s4941_s7 }
 0x2a2   : > { %p4938_p13 = pnand %p4936_p7, %p6498_p3  ;;  %p4944_p9 = scmp.lt.s32.totalorder %s4942_s15, %s4935_s12 }
 0x2a4   : > { %p4939_p1 = pneg %p4938_p13  ;;  %p4945_p4 = por %p4944_p9, %p4943_p10 }
 0x2a6   : > { %p4946_p0 = pnand %p4945_p4, %p4939_p1 }
 0x2a8   : > { %4949 = shalt.err (!%p4946_p0)
}
 0x2a9   : > { %p6504_p2 = scmp.ne.s32.totalorder %s6479_s0, 0  ;;  %s6505_s21 = sld [smem:[#allocation56_spill]] }
 0x2ab   : > { %4133 = dma.hbm_to_vmem [thread:$0]  (!%p6504_p2), %s5853_s5, 16, %s907_s27, %s897_s17  }
 0x2af   : > { %p6506_p12 = scmp.ne.s32.totalorder %s6505_s21, 0 }
 0x2b0   : > { %s5878_s13 = sand.u32 (!%p6506_p12), 1, %s5088_s30   ;;  %p6507_p3 = scmp.ne.s32.totalorder (!%p6506_p12), %s6475_s29, 0 }
 0x2b1   : > { %915 = sbr.rel (%p6506_p12) target bundleno = 5804 (0x16ac), region = 108  ;;  %s5881_s10 = sshll.u32 (!%p6506_p12), %s5878_s13, 3 }
 0x2b2   : > { %s918_s24 = scalar_lea.sflag (!%p6506_p12), [#allocation3], %s5878_s13  ;;  %s921_s14 = scalar_lea.vmem (!%p6506_p12), [#allocation2], %s5881_s10 }
 0x2b8   : > { %5023 = dma.done.wait (%p6507_p3), %s918_s24, 128  }
 0x2b9   : > { %5025 = vsyncadd (%p6507_p3), %s918_s24, 4294967168  ;;  %s926_s0 = sand.u32 1, %s5276_s26   ;;  %s930_s27 = scalar_lea.vmem [#allocation5], %s5881_s10 }
 0x2ba   : > { %s927_s5 = scalar_lea.sflag [#allocation6], %s926_s0 }
 0x2bb   : > { %5027 = dma.done.wait (%p6507_p3), %s927_s5, 192  }
 0x2bc   : > { %5029 = vsyncadd (%p6507_p3), %s927_s5, 4294967104  ;;  %s3572_s18 = sshll.u32 %s5878_s13, 2  ;;  %s945_s19 = scalar_lea.sflag [#allocation9], %s926_s0 }
 0x2bd   : > { %s5896_s17 = scalar_lea.vmem [#allocation7], %s3572_s18  ;;  %s947_s9 = scalar_lea.vmem [#allocation8], %s5878_s13 }
 0x2be   : > { %5031 = dma.done.wait (%p6507_p3), %s945_s19, 16  }
 0x2bf   : > { %5033 = vsyncadd (%p6507_p3), %s945_s19, 4294967280  ;;  %p6508_p4 = scmp.eq.s32.totalorder %s5276_s26, 0 }
 0x2c1   : > { %5035 = dma.done.wait (%p6508_p4), [#allocation9], 384   ;;  %p6509_p5 = pmov %p6508_p4 }
 0x2c2   : > { %p6510_p8 = pmov %p6508_p4 }
 0x2c3   : > { %5037 = vsyncadd (%p6509_p5), [#allocation9], 4294966912 }
 0x2c4   : > { %5039 = dma.done.wait (%p6510_p8), [#allocation12], 272   ;;  %p6511_p11 = pmov %p6508_p4 }
 0x2c5   : > { %p6512_p6 = pmov %p6508_p4 }
 0x2c6   : > { %5041 = vsyncadd (%p6511_p11), [#allocation12], 4294967024 }
 0x2c7   : > { %5043 = dma.done.wait (%p6512_p6), [#allocation15], 512   ;;  %p6513_p7 = pmov %p6508_p4 }
 0x2c8   : > { %p6514_p13 = pmov %p6508_p4 }
 0x2c9   : > { %5045 = vsyncadd (%p6513_p7), [#allocation15], 4294966784 }
 0x2ca   : > { %5047 = dma.done.wait (%p6514_p13), [#allocation18], 512   ;;  %p6515_p1 = pmov %p6508_p4 }
 0x2cc   : > { %5049 = vsyncadd (%p6515_p1), [#allocation18], 4294966784  ;;  %p6516_p10 = pmov %p6515_p1 }
 0x2cd   : > { %p6517_p9 = pmov %p6515_p1 }
 0x2ce   : > { %5051 = dma.done.wait (%p6516_p10), [#allocation21], 512  }
 0x2cf   : > { %5053 = vsyncadd (%p6517_p9), [#allocation21], 4294966784  ;;  %p6518_p0 = pmov %p6515_p1 }
 0x2d1   : > { %5055 = dma.done.wait (%p6518_p0), [#allocation24], 512   ;;  %p6519_p2 = pmov %p6518_p0 }
 0x2d2   : > { %p6520_p12 = pmov %p6518_p0 }
 0x2d3   : > { %5057 = vsyncadd (%p6519_p2), [#allocation24], 4294966784 }
 0x2d4   : > { %5059 = dma.done.wait (%p6520_p12), [#allocation27], 512   ;;  %p6521_p3 = pmov %p6518_p0 }
 0x2d5   : > { %p6522_p4 = pmov %p6518_p0 }
 0x2d6   : > { %5061 = vsyncadd (%p6521_p3), [#allocation27], 4294966784 }
 0x2d7   : > { %5063 = dma.done.wait (%p6522_p4), [#allocation30], 512   ;;  %p6523_p5 = pmov %p6518_p0 }
 0x2d8   : > { %p6524_p8 = pmov %p6518_p0 }
 0x2d9   : > { %5065 = vsyncadd (%p6523_p5), [#allocation30], 4294966784 }
 0x2da   : > { %5067 = dma.done.wait (%p6524_p8), [#allocation33], 768   ;;  %p6525_p11 = pmov %p6518_p0 }
 0x2db   : > { %p6526_p6 = pmov %p6518_p0 }
 0x2dc   : > { %5069 = vsyncadd (%p6525_p11), [#allocation33], 4294966528 }
 0x2dd   : > { %5071 = dma.done.wait (%p6526_p6), [#allocation36], 256   ;;  %p6527_p7 = pmov %p6518_p0 }
 0x2de   : > { %vm1107_vm0 = vcmask 261120   ;;  %v1105_v0 = vld [vmem:[%s921_s14] sm:$0xff]  ;;  %v4243_v8 = vld [vmem:[#allocation14] sm:$0xff]   ;;  %v5124_v9 = vmov 0.0   ;;  %vm5125_vm1 = vmmov 0   ;;  %v1122_v14 = vlaneseq  ;;  %s5126_s29 = smov 120  }
 0x2df   : > { %5073 = vsyncadd (%p6527_p7), [#allocation36], 4294967040  ;;  %v1108_v1 = vsel %vm1107_vm0, %v1105_v0, 0.0  ;;  %v4242_v7 = vld [vmem:[#allocation13] sm:$0xff]   ;;  %3754 = vmatprep.subr.bf16.mxu0 %v5124_v9  ;;  %3762 = vmatprep.subr.bf16.mxu1 %v5124_v9  ;;  %v4244_v10 = vld [vmem:[#allocation13 + $0x8] sm:$0xff]   ;;  %vm1342_vm2 = vcmask 64512  }
 0x2e0   : > { %1109 = vadd.xlane.f32.xlu0 %v1108_v1  ;;  %3755 = vmatpush3.bf16.msra.mxu0 %v4242_v7  ;;  %v4245_v11 = vld [vmem:[#allocation14 + $0x8] sm:$0xff]   ;;  %v5957_v16 = vshrl.u32 %v1122_v14, 7  ;;  %v5962_v18 = vld [vmem:[#allocation10] sm:$0xff]  ;;  %s5127_s6 = smov 112   ;;  %s5128_s8 = smov 104   ;;  %vm1586_vm3 = vcmask 1043456  }
 0x2e1   : > { %3763 = vmatpush3.bf16.msra.mxu1 %v4243_v8  ;;  %3756 = vmatprep.subr.bf16.mxu0 %v5124_v9  ;;  %v4246_v26 = vld [vmem:[#allocation16] sm:$0xff]   ;;  %v4247_v28 = vld [vmem:[#allocation16 + $0x8] sm:$0xff]   ;;  %s5129_s3 = smov 8   ;;  %s5130_s2 = smov 16   ;;  %vm1784_vm4 = vcmask 130048   ;;  %vm1787_vm5 = vcmask 195584  }
 0x2e2   : > { %3764 = vmatprep.subr.bf16.mxu1 %v5124_v9  ;;  %3758 = vmatprep.mubr.msk.bf16.mxu0 %vm5125_vm1, %v5124_v9  ;;  %v5960_v17 = vsub.s32 0, %v5957_v16  ;;  %v5965_v19 = vsub.s32 1, %v5957_v16  ;;  %v1141_v29 = vsub.s32 2, %v5957_v16  ;;  %v1205_v30 = vsub.s32 3, %v5957_v16  ;;  %s5131_s12 = smov 24   ;;  %s3592_s11 = sshll.u32 %s5878_s13, 5 }
 0x2e3   : > { %3766 = vmatprep.mubr.msk.bf16.mxu1 %vm5125_vm1, %v5124_v9  ;;  %v1266_v50 = vsub.s32 4, %v5957_v16  ;;  %s6185_s7 = scalar_lea.vmem [#allocation38], %s3592_s11  ;;  %vm2994_vm6 = vcmask 523264   ;;  %s3671_s15 = sshll.u32 %s5276_s26, 9 }
 0x2e4   : > { %3757 = vmatpush3.bf16.msra.mxu0 %v4244_v10  ;;  %v1125_v20 = vrot.slane %v5962_v18, %v5960_v17  ;;  %v1130_v23 = vrot.slane %v5962_v18, %v5965_v19  ;;  %v1142_v31 = vrot.slane %v5962_v18, %v1141_v29  ;;  %v1206_v32 = vrot.slane %v5962_v18, %v1205_v30  ;;  %s3202_s21 = sshll.u32 %s6185_s7, 4  ;;  %s6528_s0 = sld [smem:[#allocation83_spill]]  ;;  %s6280_s21 = int_to_ptr.vmem [resolvable:$true] %s3202_s21 }
 0x2e5   : > { %3765 = vmatpush3.bf16.msra.mxu1 %v4245_v11  ;;  %3770 = vmatprep.subr.bf16.mxu0 %v5124_v9  ;;  %v1267_v52 = vrot.slane %v5962_v18, %v1266_v50  ;;  %s4950_s18 = scalar_lea.vmem %s6280_s21, 512  ;;  %p6529_p1 = scmp.ne.s32.totalorder %s6476_s20, 0 }
 0x2e6   : > { %3778 = vmatprep.subr.bf16.mxu1 %v5124_v9  ;;  %p4951_p13 = scmp.ne.s32.totalorder %s6280_s21, %s4950_s18 }
 0x2e8   : > { %p4952_p10 = pnand %p4951_p13, %p6529_p1 }
 0x2ea   : > { %s6278_s5 = scalar_lea.hbm %s6528_s0, %s3671_s15  ;;  %p4953_p9 = pneg %p4952_p10 }
 0x36d   : > { %v1110_v2 = vpop.xlane.xlu0 %1109 }
 0x36e   : > { %v1112_v3 = vmul.f32 0.03125, %v1110_v2 }
 0x370   : > { %v1113_v4 = vsub.f32 %v1105_v0, %v1112_v3  ;;  %v1132_v0 = vld [vmem:[%s5896_s17] sm:$0xf]  ;;  %s5132_s17 = smov [#allocation38]  }
 0x371   : > { %v1133_v1 = vunpack.c.l.bf16 %v1132_v0  ;;  %s4954_s19 = sshll.u32 %s5132_s17, 4  ;;  %s4955_s19 = int_to_ptr.vmem [resolvable:$false] %s4954_s19 }
 0x372   : > { %v1114_v5 = vmul.f32 %v1113_v4, %v1113_v4  ;;  %p4957_p0 = scmp.lt.s32.totalorder %s6280_s21, %s4955_s19 }
 0x374   : > { %v1115_v6 = vsel %vm1107_vm0, %v1114_v5, 0.0 }
 0x375   : > { %1116 = vadd.xlane.f32.xlu0 %v1115_v6 }
 0x402   : > { %v1117_v12 = vpop.xlane.xlu0 %1116 }
 0x403   : > { %v1118_v13 = vmul.f32 0.03125, %v1117_v12 }
 0x405   : > { %v1119_v15 = vadd.f32 1e-05, %v1118_v13 }
 0x407   : > { %4276 = vrsqrt.f32 %v1119_v15 }
 0x411   : > { %v4277_v21 = vpop.eup %4276 }
 0x412   : > { %v1121_v22 = vmul.f32 %v4277_v21, %v1113_v4 }
 0x414   : > { %v1126_v24 = vmul.f32 %v1125_v20, %v1121_v22 }
 0x416   : > { %v5971_v25 = vadd.f32 %v1130_v23, %v1126_v24 }
 0x418   : > { %v5975_v27 = vpack.c.bf16 %v5971_v25, %v5971_v25 }
 0x41a   : > { %3759 = vmatmul.mubr.msk.bf16.vlgmr.msra.gmra.mrb[0].mxu0 %vm1107_vm0, %v5975_v27  ;;  %3767 = vmatmul.mubr.msk.bf16.vlgmr.msra.gmra.mrb[0].mxu1 %vm1107_vm0, %v5975_v27 }
 0x41b   : > { %3771 = vmatpush3.bf16.msra.mxu0 %v4246_v26  ;;  %3774 = vmatprep.mubr.msk.bf16.mxu0 %vm5125_vm1, %v5124_v9 }
 0x41c   : > { %3772 = vmatprep.subr.bf16.mxu0 %v5124_v9  ;;  %3780 = vmatprep.mubr.msk.bf16.mxu1 %vm5125_vm1, %v5124_v9 }
 0x41f   : > { %3773 = vmatpush3.bf16.msra.mxu0 %v4247_v28 }
 0x420   : > { %3784 = vmatprep.subr.bf16.mxu0 %v5124_v9 }
 0x422   : > { %3775 = vmatmul.mubr.msk.bf16.vlgmr.msra.gmra.mrb[4].mxu0 %vm1107_vm0, %v5975_v27 }
 0x423   : > { %3786 = vmatprep.mubr.msk.bf16.mxu0 %vm5125_vm1, %v5124_v9 }
 0x4ed   : > { %v1192_v33 = vpop.f32.mrb[0].mxu0  ;;  %v1253_v34 = vpop.f32.mrb[0].mxu1 }
 0x4ee   : > { %v1193_v35 = vadd.f32 %v1192_v33, %v1142_v31  ;;  %v1254_v36 = vadd.f32 %v1253_v34, %v1206_v32  ;;  %v3760_v37 = vpop.f32.mrb[1].mxu0  ;;  %v3768_v38 = vpop.f32.mrb[1].mxu1 }
 0x4ef   : > { %v1195_v39 = vpop.f32.mrb[2].mxu0  ;;  %v1256_v40 = vpop.f32.mrb[2].mxu1 }
 0x4f0   : > { %v1198_v41 = vpack.c.bf16 %v1193_v35, %v1193_v35  ;;  %v1259_v42 = vpack.c.bf16 %v1254_v36, %v1254_v36  ;;  %v3761_v43 = vpop.f32.mrb[3].mxu0  ;;  %v3769_v44 = vpop.f32.mrb[3].mxu1 }
 0x4f2   : > { %1329 = vrot.lane.b32.xlu1 %v1259_v42, %s5126_s29  ;;  %1322 = vrot.lane.b32.xlu0 %v1198_v41, %s5126_s29  ;;  %v1347_v45 = vsel %vm1342_vm2, %v1259_v42, 0 }
 0x4f3   : > { %3779 = vmatpush3.bf16.xpose.msra.mxu1 %v1347_v45 }
 0x4f4   : > { %3790 = vmatprep.subr.bf16.mxu1 %v5124_v9 }
 0x4f5   : > { %v1314_v46 = vpop.f32.mrb[4].mxu0 }
 0x4f6   : > { %1331 = vrot.lane.b32.xlu1 %v1259_v42, %s5127_s6  ;;  %v3776_v47 = vpop.f32.mrb[5].mxu0  ;;  %v1315_v55 = vadd.f32 %v1314_v46, %v1267_v52 }
 0x4f7   : > { %v1317_v48 = vpop.f32.mrb[6].mxu0 }
 0x4f8   : > { %v3777_v49 = vpop.f32.mrb[7].mxu0  ;;  %v6018_v59 = vpack.c.bf16 %v1315_v55, %v1315_v55 }
 0x4fa   : > { %1333 = vrot.lane.b32.xlu1 %v1259_v42, %s5128_s8  ;;  %3781 = vmatmul.mubr.msk.bf16.vlgmr.msra.gmra.mrb[4].mxu1 %vm1342_vm2, %v1198_v41  ;;  %v1588_v62 = vsel %vm1586_vm3, %v6018_v59, 0 }
 0x4fb   : > { %3792 = vmatprep.mubr.msk.bf16.mxu1 %vm5125_vm1, %v5124_v9 }
 0x4fe   : > { %1324 = vrot.lane.b32.xlu1 %v1198_v41, %s5127_s6 }
 0x502   : > { %1326 = vrot.lane.b32.xlu1 %v1198_v41, %s5128_s8 }
 0x564   : > { %v1330_v51 = vpop.permute.xlu1 %1329  ;;  %v1323_v57 = vpop.permute.xlu0 %1322 }
 0x565   : > { %v1393_v53 = vsel %vm1342_vm2, %v1330_v51, 0 }
 0x566   : > { %3785 = vmatpush3.bf16.xpose.msra.mxu0 %v1393_v53 }
 0x567   : > { %3796 = vmatprep.subr.bf16.mxu0 %v5124_v9 }
 0x568   : > { %v1332_v54 = vpop.permute.xlu1 %1331 }
 0x569   : > { %v1439_v56 = vsel %vm1342_vm2, %v1332_v54, 0 }
 0x56a   : > { %3791 = vmatpush3.bf16.xpose.msra.mxu1 %v1439_v56 }
 0x56b   : > { %3802 = vmatprep.subr.bf16.mxu1 %v5124_v9 }
 0x56c   : > { %v1334_v58 = vpop.permute.xlu1 %1333 }
 0x56d   : > { %v1485_v60 = vsel %vm1342_vm2, %v1334_v58, 0  ;;  %3787 = vmatmul.mubr.msk.bf16.vlgmr.msra.gmra.mrb[8].mxu0 %vm1342_vm2, %v1323_v57 }
 0x56e   : > { %3797 = vmatpush3.bf16.xpose.msra.mxu0 %v1485_v60  ;;  %3798 = vmatprep.mubr.msk.bf16.mxu0 %vm5125_vm1, %v5124_v9 }
 0x56f   : > { %3808 = vmatprep.subr.bf16.mxu0 %v5124_v9 }
 0x570   : > { %v1325_v61 = vpop.permute.xlu1 %1324 }
 0x571   : > { %3793 = vmatmul.mubr.msk.bf16.vlgmr.msra.gmra.mrb[8].mxu1 %vm1342_vm2, %v1325_v61 }
 0x572   : > { %3803 = vmatpush3.bf16.msra.mxu1 %v1588_v62  ;;  %3804 = vmatprep.mubr.msk.bf16.mxu1 %vm5125_vm1, %v5124_v9 }
 0x573   : > { %3814 = vmatprep.subr.bf16.mxu1 %v5124_v9 }
 0x574   : > { %v1327_v63 = vpop.permute.xlu1 %1326 }
 0x575   : > { %3799 = vmatmul.mubr.msk.bf16.vlgmr.msra.gmra.mrb[12].mxu0 %vm1342_vm2, %v1327_v63 }
 0x576   : > { %3810 = vmatprep.mubr.msk.bf16.mxu0 %vm5125_vm1, %v5124_v9 }
 0x5cd   : > { %v1383_v2 = vpop.f32.mrb[4].mxu1 }
 0x5ce   : > { %v1527_v3 = vmul.f32 0.35355338, %v1383_v2  ;;  %v3782_v4 = vpop.f32.mrb[5].mxu1 }
 0x5cf   : > { %v1386_v5 = vpop.f32.mrb[6].mxu1 }
 0x5d0   : > { %v3783_v6 = vpop.f32.mrb[7].mxu1  ;;  %v1531_v7 = vadd.f32 %v1527_v3, %v1133_v1 }
 0x5d2   : > { %v1535_v8 = vsel %vm1342_vm2, %v1531_v7, -inf }
 0x5d3   : > { %1536 = vmax.xlane.f32.xlu1 %v1535_v8 }
 0x640   : > { %v1429_v10 = vpop.f32.mrb[8].mxu0 }
 0x641   : > { %v1528_v11 = vmul.f32 0.35355338, %v1429_v10  ;;  %v3788_v12 = vpop.f32.mrb[9].mxu0 }
 0x642   : > { %v1432_v13 = vpop.f32.mrb[10].mxu0 }
 0x643   : > { %v3789_v14 = vpop.f32.mrb[11].mxu0  ;;  %v1532_v15 = vadd.f32 %v1528_v11, %v1133_v1 }
 0x644   : > { %v1475_v20 = vpop.f32.mrb[8].mxu1 }
 0x645   : > { %v1529_v21 = vmul.f32 0.35355338, %v1475_v20  ;;  %v3794_v22 = vpop.f32.mrb[9].mxu1  ;;  %v1538_v23 = vsel %vm1342_vm2, %v1532_v15, -inf }
 0x646   : > { %v1478_v24 = vpop.f32.mrb[10].mxu1  ;;  %1539 = vmax.xlane.f32.xlu0 %v1538_v23  ;;  %v4248_v22 = vld [vmem:[#allocation20] sm:$0xff]  }
 0x647   : > { %v3795_v26 = vpop.f32.mrb[11].mxu1  ;;  %v1533_v28 = vadd.f32 %v1529_v21, %v1133_v1  ;;  %v4249_v24 = vld [vmem:[#allocation20 + $0x8] sm:$0xff]  }
 0x648   : > { %v1521_v31 = vpop.f32.mrb[12].mxu0 }
 0x649   : > { %v1530_v32 = vmul.f32 0.35355338, %v1521_v31  ;;  %v3800_v33 = vpop.f32.mrb[13].mxu0  ;;  %v1541_v34 = vsel %vm1342_vm2, %v1533_v28, -inf }
 0x64a   : > { %1542 = vmax.xlane.f32.xlu1 %v1541_v34  ;;  %v1524_v35 = vpop.f32.mrb[14].mxu0  ;;  %v4250_v33 = vld [vmem:[#allocation17] sm:$0xff]   ;;  %v4251_v34 = vld [vmem:[#allocation17 + $0x8] sm:$0xff]  }
 0x64b   : > { %v3801_v36 = vpop.f32.mrb[15].mxu0  ;;  %v1534_v37 = vadd.f32 %v1530_v32, %v1133_v1 }
 0x64d   : > { %v1544_v38 = vsel %vm1342_vm2, %v1534_v37, -inf }
 0x64e   : > { %1545 = vmax.xlane.f32.xlu1 %v1544_v38 }
 0x660   : > { %v1537_v39 = vpop.xlane.xlu1 %1536 }
 0x661   : > { %v1547_v40 = vsub.f32 %v1531_v7, %v1537_v39 }
 0x663   : > { %v1551_v41 = vmul.f32 1.442695, %v1547_v40 }
 0x665   : > { %4278 = vpow2.f32 %v1551_v41 }
 0x66f   : > { %v4279_v42 = vpop.eup %4278 }
 0x670   : > { %v1559_v43 = vsel %vm1342_vm2, %v4279_v42, 0.0 }
 0x671   : > { %1560 = vadd.xlane.f32.xlu0 %v1559_v43 }
 0x6d3   : > { %v1540_v44 = vpop.xlane.xlu0 %1539 }
 0x6d4   : > { %v1548_v45 = vsub.f32 %v1532_v15, %v1540_v44 }
 0x6d6   : > { %v1553_v46 = vmul.f32 1.442695, %v1548_v45 }
 0x6d7   : > { %v1543_v47 = vpop.xlane.xlu1 %1542 }
 0x6d8   : > { %4280 = vpow2.f32 %v1553_v46  ;;  %v1549_v48 = vsub.f32 %v1533_v28, %v1543_v47 }
 0x6da   : > { %v1555_v49 = vmul.f32 1.442695, %v1549_v48 }
 0x6db   : > { %v1546_v56 = vpop.xlane.xlu1 %1545 }
 0x6dc   : > { %4282 = vpow2.f32 %v1555_v49  ;;  %v1550_v57 = vsub.f32 %v1534_v37, %v1546_v56 }
 0x6de   : > { %v1557_v58 = vmul.f32 1.442695, %v1550_v57 }
 0x6e2   : > { %v4281_v51 = vpop.eup %4280 }
 0x6e3   : > { %v1562_v52 = vsel %vm1342_vm2, %v4281_v51, 0.0 }
 0x6e4   : > { %1563 = vadd.xlane.f32.xlu1 %v1562_v52 }
 0x6e6   : > { %v4283_v53 = vpop.eup %4282 }
 0x6e7   : > { %v1565_v54 = vsel %vm1342_vm2, %v4283_v53, 0.0 }
 0x6e8   : > { %1566 = vadd.xlane.f32.xlu0 %v1565_v54 }
 0x6f5   : > { %1338 = vrot.lane.b32.xlu1 %v6018_v59, %s5127_s6 }
 0x6fe   : > { %1336 = vrot.lane.b32.xlu0 %v6018_v59, %s5126_s29  ;;  %v1561_v55 = vpop.xlane.xlu0 %1560 }
 0x6ff   : > { %4284 = vrcp.f32 %v1561_v55 }
 0x700   : > { %4286 = vpow2.f32 %v1557_v58  ;;  %v4252_v58 = vld [vmem:[#allocation19] sm:$0xff]  }
 0x709   : > { %v4285_v60 = vpop.eup %4284 }
 0x70a   : > { %v1572_v61 = vmul.f32 %v4285_v60, %v4279_v42  ;;  %v4287_v63 = vpop.eup %4286 }
 0x70b   : > { %v1568_v0 = vsel %vm1342_vm2, %v4287_v63, 0.0 }
 0x70c   : > { %v1579_v62 = vpack.c.bf16 %v1572_v61, %v1572_v61 }
 0x70e   : > { %3805 = vmatmul.mubr.msk.bf16.vlgmr.msra.gmra.mrb[12].mxu1 %vm1342_vm2, %v1579_v62 }
 0x70f   : > { %3816 = vmatprep.mubr.msk.bf16.mxu1 %vm5125_vm1, %v5124_v9 }
 0x719   : > { %1569 = vadd.xlane.f32.xlu1 %v1568_v0  ;;  %v1796_v0 = vsub.s32 5, %v5957_v16 }
 0x72a   : > { %1340 = vrot.lane.b32.xlu1 %v6018_v59, %s5128_s8 }
 0x771   : > { %v1564_v1 = vpop.xlane.xlu1 %1563 }
 0x772   : > { %4288 = vrcp.f32 %v1564_v1  ;;  %v1797_v1 = vrot.slane %v5962_v18, %v1796_v0 }
 0x775   : > { %v1567_v2 = vpop.xlane.xlu0 %1566  ;;  %v1339_v3 = vpop.permute.xlu1 %1338 }
 0x776   : > { %4290 = vrcp.f32 %v1567_v2  ;;  %v1680_v4 = vsel %vm1586_vm3, %v1339_v3, 0 }
 0x777   : > { %3815 = vmatpush3.bf16.msra.mxu1 %v1680_v4 }
 0x778   : > { %3826 = vmatprep.subr.bf16.mxu1 %v5124_v9 }
 0x779   : > { %v1337_v5 = vpop.permute.xlu0 %1336 }
 0x77a   : > { %v1634_v6 = vsel %vm1586_vm3, %v1337_v5, 0 }
 0x77b   : > { %3809 = vmatpush3.bf16.msra.mxu0 %v1634_v6 }
 0x77c   : > { %v4289_v7 = vpop.eup %4288  ;;  %3820 = vmatprep.subr.bf16.mxu0 %v5124_v9 }
 0x77d   : > { %v1574_v8 = vmul.f32 %v4289_v7, %v4281_v51 }
 0x77f   : > { %v1580_v10 = vpack.c.bf16 %v1574_v8, %v1574_v8  ;;  %v1970_v8 = vsub.s32 6, %v5957_v16 }
 0x780   : > { %v4291_v59 = vpop.eup %4290 }
 0x781   : > { %v1576_v11 = vmul.f32 %v4291_v59, %v4283_v53  ;;  %3811 = vmatmul.mubr.msk.bf16.vlgmr.msra.gmra.mrb[16].mxu0 %vm1342_vm2, %v1580_v10  ;;  %v1971_v10 = vrot.slane %v5962_v18, %v1970_v8 }
 0x782   : > { %3822 = vmatprep.mubr.msk.bf16.mxu0 %vm5125_vm1, %v5124_v9 }
 0x783   : > { %v1581_v12 = vpack.c.bf16 %v1576_v11, %v1576_v11 }
 0x785   : > { %3817 = vmatmul.mubr.msk.bf16.vlgmr.msra.gmra.mrb[16].mxu1 %vm1342_vm2, %v1581_v12 }
 0x786   : > { %3830 = vmatprep.mubr.msk.bf16.mxu1 %vm5125_vm1, %v5124_v9  ;;  %3827 = vmatpush3.bf16.msra.mxu1 %v4250_v33 }
 0x787   : > { %3828 = vmatprep.subr.bf16.mxu1 %v5124_v9 }
 0x78a   : > { %3829 = vmatpush3.bf16.msra.mxu1 %v4251_v34 }
 0x78b   : > { %3842 = vmatprep.subr.bf16.mxu1 %v5124_v9 }
 0x7a6   : > { %v1570_v13 = vpop.xlane.xlu1 %1569 }
 0x7a7   : > { %4292 = vrcp.f32 %v1570_v13 }
 0x7aa   : > { %v1341_v14 = vpop.permute.xlu1 %1340 }
 0x7ab   : > { %v1726_v15 = vsel %vm1586_vm3, %v1341_v14, 0 }
 0x7ac   : > { %3821 = vmatpush3.bf16.msra.mxu0 %v1726_v15 }
 0x7ad   : > { %3834 = vmatprep.subr.bf16.mxu0 %v5124_v9 }
 0x7b1   : > { %v4293_v20 = vpop.eup %4292 }
 0x7b2   : > { %v1578_v21 = vmul.f32 %v4293_v20, %v4287_v63  ;;  %v4253_v63 = vld [vmem:[#allocation19 + $0x8] sm:$0xff]  }
 0x7b4   : > { %v1582_v23 = vpack.c.bf16 %v1578_v21, %v1578_v21 }
 0x7b6   : > { %3823 = vmatmul.mubr.msk.bf16.vlgmr.msra.gmra.mrb[20].mxu0 %vm1342_vm2, %v1582_v23 }
 0x7b7   : > { %3835 = vmatpush3.bf16.msra.mxu0 %v4248_v22  ;;  %3838 = vmatprep.mubr.msk.bf16.mxu0 %vm5125_vm1, %v5124_v9 }
 0x7b8   : > { %3836 = vmatprep.subr.bf16.mxu0 %v5124_v9 }
 0x7bb   : > { %3837 = vmatpush3.bf16.msra.mxu0 %v4249_v24 }
 0x7bc   : > { %3850 = vmatprep.subr.bf16.mxu0 %v5124_v9 }
 0x7be   : > { %3839 = vmatmul.mubr.msk.bf16.vlgmr.msra.gmra.mrb[24].mxu0 %vm1107_vm0, %v5975_v27 }
 0x7bf   : > { %3854 = vmatprep.mubr.msk.bf16.mxu0 %vm5125_vm1, %v5124_v9 }
 0x7e1   : > { %v1624_v26 = vpop.f32.mrb[12].mxu1 }
 0x7e2   : > { %v3806_v28 = vpop.f32.mrb[13].mxu1  ;;  %v1768_v55 = vpack.c.bf16 %v1624_v26, %v1624_v26 }
 0x7e3   : > { %v1627_v31 = vpop.f32.mrb[14].mxu1 }
 0x7e4   : > { %v3807_v32 = vpop.f32.mrb[15].mxu1 }
 0x854   : > { %v1670_v35 = vpop.f32.mrb[16].mxu0 }
 0x855   : > { %v1769_v36 = vpack.c.bf16 %v1670_v35, %v1670_v35  ;;  %v3812_v37 = vpop.f32.mrb[17].mxu0 }
 0x856   : > { %v1673_v38 = vpop.f32.mrb[18].mxu0 }
 0x857   : > { %1773 = vrot.lane.b32.xlu0 %v1769_v36, %s5129_s3  ;;  %v3813_v27 = vpop.f32.mrb[19].mxu0  ;;  %v4254_v38 = vld [vmem:[#allocation23] sm:$0xff]  }
 0x858   : > { %v1716_v39 = vpop.f32.mrb[16].mxu1  ;;  %v4255_v27 = vld [vmem:[#allocation23 + $0x8] sm:$0xff]  }
 0x859   : > { %v1770_v40 = vpack.c.bf16 %v1716_v39, %v1716_v39  ;;  %v3818_v41 = vpop.f32.mrb[17].mxu1  ;;  %v1106_v39 = vld [vmem:[%s930_s27] sm:$0xff]  ;;  %s3176_s27 = scalar_lea.sflag [#allocation39], %s5878_s13 }
 0x85a   : > { %v1719_v42 = vpop.f32.mrb[18].mxu1  ;;  %v4257_v41 = vld [vmem:[#allocation22 + $0x8] sm:$0xff]  }
 0x85b   : > { %1776 = vrot.lane.b32.xlu1 %v1770_v40, %s5130_s2  ;;  %v3819_v43 = vpop.f32.mrb[19].mxu1  ;;  %v4256_v40 = vld [vmem:[#allocation22] sm:$0xff]  }
 0x85c   : > { %3851 = vmatpush3.bf16.msra.mxu0 %v4256_v40 }
 0x85d   : > { %3852 = vmatprep.subr.bf16.mxu0 %v5124_v9 }
 0x860   : > { %3853 = vmatpush3.bf16.msra.mxu0 %v4257_v41 }
 0x861   : > { %3866 = vmatprep.subr.bf16.mxu0 %v5124_v9 }
 0x889   : > { %v1762_v44 = vpop.f32.mrb[20].mxu0 }
 0x88a   : > { %v1771_v45 = vpack.c.bf16 %v1762_v44, %v1762_v44  ;;  %v3824_v46 = vpop.f32.mrb[21].mxu0 }
 0x88b   : > { %v1765_v47 = vpop.f32.mrb[22].mxu0  ;;  %v6110_v46 = vld [vmem:[#allocation10 + $0x8] sm:$0xff] }
 0x88c   : > { %1779 = vrot.lane.b32.xlu0 %v1771_v45, %s5131_s12  ;;  %v3825_v48 = vpop.f32.mrb[23].mxu0  ;;  %v1998_v45 = vsub.s32 7, %v5957_v16  ;;  %v4272_v16 = vld [vmem:[#allocation32 + $0x10] sm:$0xff]  }
 0x88e   : > { %v1999_v47 = vrot.slane %v5962_v18, %v1998_v45  ;;  %v2080_v18 = vrot.slane %v6110_v46, %v1141_v29  ;;  %v4259_v29 = vld [vmem:[#allocation25 + $0x8] sm:$0xff]  }
 0x891   : > { %v1907_v49 = vpop.f32.mrb[24].mxu0 }
 0x892   : > { %v3840_v51 = vpop.f32.mrb[25].mxu0 }
 0x893   : > { %v1910_v52 = vpop.f32.mrb[26].mxu0  ;;  %v2004_v51 = vrot.slane %v6110_v46, %v5960_v17 }
 0x894   : > { %v3841_v53 = vpop.f32.mrb[27].mxu0 }
 0x8c9   : > { %v1774_v54 = vpop.permute.xlu0 %1773 }
 0x8ca   : > { %v1783_v57 = vsel %vm1342_vm2, %v1768_v55, %v1774_v54 }
 0x8cd   : > { %v1777_v56 = vpop.permute.xlu1 %1776 }
 0x8ce   : > { %v1786_v60 = vsel %vm1784_vm4, %v1783_v57, %v1777_v56 }
 0x8fe   : > { %v1780_v61 = vpop.permute.xlu0 %1779 }
 0x8ff   : > { %v1789_v62 = vsel %vm1787_vm5, %v1786_v60, %v1780_v61 }
 0x900   : > { %3831 = vmatmul.mubr.msk.bf16.vlgmr.msra.gmra.mrb[20].mxu1 %vm1107_vm0, %v1789_v62 }
 0x901   : > { %3843 = vmatpush3.bf16.msra.mxu1 %v4252_v58  ;;  %3846 = vmatprep.mubr.msk.bf16.mxu1 %vm5125_vm1, %v5124_v9 }
 0x902   : > { %3844 = vmatprep.subr.bf16.mxu1 %v5124_v9 }
 0x905   : > { %3845 = vmatpush3.bf16.msra.mxu1 %v4253_v63  ;;  %v4258_v63 = vld [vmem:[#allocation25] sm:$0xff]  }
 0x906   : > { %3858 = vmatprep.subr.bf16.mxu1 %v5124_v9 }
 0x9d3   : > { %v1846_v2 = vpop.f32.mrb[20].mxu1 }
 0x9d4   : > { %v1847_v3 = vadd.f32 %v1846_v2, %v1797_v1  ;;  %v3832_v4 = vpop.f32.mrb[21].mxu1 }
 0x9d5   : > { %v1849_v5 = vpop.f32.mrb[22].mxu1 }
 0x9d6   : > { %v1852_v6 = vpack.c.bf16 %v1847_v3, %v1847_v3  ;;  %v3833_v7 = vpop.f32.mrb[23].mxu1 }
 0x9d8   : > { %3847 = vmatmul.mubr.msk.bf16.vlgmr.msra.gmra.mrb[24].mxu1 %vm1107_vm0, %v1852_v6 }
 0x9d9   : > { %3862 = vmatprep.mubr.msk.bf16.mxu1 %vm5125_vm1, %v5124_v9  ;;  %3859 = vmatpush3.bf16.msra.mxu1 %v4254_v38 }
 0x9da   : > { %3860 = vmatprep.subr.bf16.mxu1 %v5124_v9 }
 0x9dd   : > { %3861 = vmatpush3.bf16.msra.mxu1 %v4255_v27 }
 0x9de   : > { %3874 = vmatprep.subr.bf16.mxu1 %v5124_v9 }
 0xaab   : > { %v1962_v59 = vpop.f32.mrb[24].mxu1 }
 0xaac   : > { %v1963_v11 = vadd.f32 %v1962_v59, %v1907_v49  ;;  %v3848_v12 = vpop.f32.mrb[25].mxu1 }
 0xaad   : > { %v1965_v13 = vpop.f32.mrb[26].mxu1 }
 0xaae   : > { %v1972_v14 = vadd.f32 %v1971_v10, %v1963_v11  ;;  %v3849_v15 = vpop.f32.mrb[27].mxu1 }
 0xab0   : > { %v3619_v20 = vmul.f32 -1.442695, %v1972_v14 }
 0xab2   : > { %4294 = vpow2.f32 %v3619_v20 }
 0xabc   : > { %v4295_v21 = vpop.eup %4294 }
 0xabd   : > { %v1976_v22 = vadd.f32 1.0, %v4295_v21  ;;  %v2144_v21 = vrot.slane %v6110_v46, %v1205_v30 }
 0xabf   : > { %4296 = vrcp.f32 %v1976_v22 }
 0xac9   : > { %v4297_v23 = vpop.eup %4296 }
 0xaca   : > { %v1980_v24 = vsub.f32 1.0, %v4297_v23  ;;  %v1979_v26 = vmul.f32 %v4297_v23, %v1847_v3  ;;  %v2015_v3 = vrot.slane %v6110_v46, %v5965_v19 }
 0xacc   : > { %v1981_v28 = vmul.f32 %v1980_v24, %v5971_v25  ;;  %v2072_v25 = vpack.c.bf16 %v1106_v39, %v1106_v39 }
 0xace   : > { %v1982_v31 = vadd.f32 %v1981_v28, %v1979_v26  ;;  %3863 = vmatmul.mubr.msk.bf16.vlgmr.msra.gmra.mrb[28].mxu1 %vm1107_vm0, %v2072_v25 }
 0xacf   : > { %3876 = vmatprep.mubr.msk.bf16.mxu1 %vm5125_vm1, %v5124_v9 }
 0xad0   : > { %v1983_v32 = vsel %vm1107_vm0, %v1982_v31, 0.0 }
 0xad1   : > { %1984 = vadd.xlane.f32.xlu1 %v1983_v32 }
 0xb5e   : > { %v1985_v33 = vpop.xlane.xlu1 %1984 }
 0xb5f   : > { %v1986_v34 = vmul.f32 0.03125, %v1985_v33 }
 0xb61   : > { %v1987_v35 = vsub.f32 %v1982_v31, %v1986_v34  ;;  %v3633_v34 = vld [vmem:[%s947_s9] ss:$0 sm:$0xff]  ;;  %s4956_s9 = scalar_lea.vmem %s4955_s19, 1024 }
 0xb62   : > { %p4958_p2 = scmp.lt.s32.totalorder %s4956_s9, %s4950_s18 }
 0xb63   : > { %v1988_v36 = vmul.f32 %v1987_v35, %v1987_v35 }
 0xb64   : > { %p4959_p12 = por %p4958_p2, %p4957_p0 }
 0xb65   : > { %v1989_v37 = vsel %vm1107_vm0, %v1988_v36, 0.0 }
 0xb66   : > { %1990 = vadd.xlane.f32.xlu0 %v1989_v37  ;;  %p4960_p3 = pnand %p4959_p12, %p4953_p9 }
 0xba1   : > { %v2130_v55 = vpop.f32.mrb[28].mxu1 }
 0xba2   : > { %v2131_v56 = vadd.f32 %v2130_v55, %v2080_v18  ;;  %v3864_v57 = vpop.f32.mrb[29].mxu1 }
 0xba3   : > { %v2133_v58 = vpop.f32.mrb[30].mxu1 }
 0xba4   : > { %v2136_v60 = vpack.c.bf16 %v2131_v56, %v2131_v56  ;;  %v3865_v61 = vpop.f32.mrb[31].mxu1 }
 0xba6   : > { %2206 = vrot.lane.b32.xlu0 %v2136_v60, %s5126_s29  ;;  %2208 = vrot.lane.b32.xlu1 %v2136_v60, %s5127_s6  ;;  %v2223_v62 = vsel %vm1342_vm2, %v2136_v60, 0 }
 0xba7   : > { %3875 = vmatpush3.bf16.xpose.msra.mxu1 %v2223_v62 }
 0xba8   : > { %3886 = vmatprep.subr.bf16.mxu1 %v5124_v9 }
 0xbaa   : > { %2210 = vrot.lane.b32.xlu0 %v2136_v60, %s5128_s8 }
 0xbf3   : > { %v1991_v42 = vpop.xlane.xlu0 %1990 }
 0xbf4   : > { %v1992_v43 = vmul.f32 0.03125, %v1991_v42 }
 0xbf6   : > { %v1993_v44 = vadd.f32 1e-05, %v1992_v43 }
 0xbf8   : > { %4298 = vrsqrt.f32 %v1993_v44 }
 0xc02   : > { %v4299_v48 = vpop.eup %4298 }
 0xc03   : > { %v1995_v49 = vmul.f32 %v4299_v48, %v1987_v35 }
 0xc05   : > { %v2000_v52 = vmul.f32 %v1999_v47, %v1995_v49 }
 0xc07   : > { %v6117_v53 = vadd.f32 %v2004_v51, %v2000_v52 }
 0xc09   : > { %v6121_v54 = vpack.c.bf16 %v6117_v53, %v6117_v53 }
 0xc0b   : > { %3855 = vmatmul.mubr.msk.bf16.vlgmr.msra.gmra.mrb[28].mxu0 %vm1107_vm0, %v6121_v54 }
 0xc0c   : > { %3870 = vmatprep.mubr.msk.bf16.mxu0 %vm5125_vm1, %v5124_v9  ;;  %3867 = vmatpush3.bf16.msra.mxu0 %v4258_v63 }
 0xc0d   : > { %3868 = vmatprep.subr.bf16.mxu0 %v5124_v9 }
 0xc10   : > { %3869 = vmatpush3.bf16.msra.mxu0 %v4259_v29 }
 0xc11   : > { %3880 = vmatprep.subr.bf16.mxu0 %v5124_v9 }
 0xc13   : > { %3871 = vmatmul.mubr.msk.bf16.vlgmr.msra.gmra.mrb[32].mxu0 %vm1107_vm0, %v2072_v25 }
 0xc14   : > { %3882 = vmatprep.mubr.msk.bf16.mxu0 %vm5125_vm1, %v5124_v9 }
 0xc18   : > { %v2207_v1 = vpop.permute.xlu0 %2206  ;;  %v2209_v7 = vpop.permute.xlu1 %2208 }
 0xc19   : > { %v2269_v2 = vsel %vm1342_vm2, %v2207_v1, 0  ;;  %v2315_v12 = vsel %vm1342_vm2, %v2209_v7, 0 }
 0xc1a   : > { %3881 = vmatpush3.bf16.xpose.msra.mxu0 %v2269_v2 }
 0xc1b   : > { %3892 = vmatprep.subr.bf16.mxu0 %v5124_v9 }
 0xc1c   : > { %v2211_v23 = vpop.permute.xlu0 %2210 }
 0xc1d   : > { %v2361_v28 = vsel %vm1342_vm2, %v2211_v23, 0 }
 0xcde   : > { %v2065_v4 = vpop.f32.mrb[28].mxu0 }
 0xcdf   : > { %v2066_v5 = vadd.f32 %v2065_v4, %v2015_v3  ;;  %v3856_v6 = vpop.f32.mrb[29].mxu0 }
 0xce0   : > { %v2068_v10 = vpop.f32.mrb[30].mxu0 }
 0xce1   : > { %v2071_v59 = vpack.c.bf16 %v2066_v5, %v2066_v5  ;;  %v3857_v11 = vpop.f32.mrb[31].mxu0 }
 0xce3   : > { %2203 = vrot.lane.b32.xlu0 %v2071_v59, %s5128_s8  ;;  %2199 = vrot.lane.b32.xlu1 %v2071_v59, %s5126_s29 }
 0xce4   : > { %3877 = vmatmul.mubr.msk.bf16.vlgmr.msra.gmra.mrb[32].mxu1 %vm1342_vm2, %v2071_v59 }
 0xce5   : > { %3887 = vmatpush3.bf16.xpose.msra.mxu1 %v2315_v12  ;;  %3888 = vmatprep.mubr.msk.bf16.mxu1 %vm5125_vm1, %v5124_v9 }
 0xce6   : > { %3898 = vmatprep.subr.bf16.mxu1 %v5124_v9  ;;  %v2191_v13 = vpop.f32.mrb[32].mxu0 }
 0xce7   : > { %2201 = vrot.lane.b32.xlu1 %v2071_v59, %s5127_s6  ;;  %v3872_v14 = vpop.f32.mrb[33].mxu0  ;;  %v2192_v22 = vadd.f32 %v2191_v13, %v2144_v21 }
 0xce8   : > { %v2194_v15 = vpop.f32.mrb[34].mxu0 }
 0xce9   : > { %v3873_v20 = vpop.f32.mrb[35].mxu0  ;;  %v6155_v24 = vpack.c.bf16 %v2192_v22, %v2192_v22 }
 0xceb   : > { %v2473_v31 = vsel %vm1586_vm3, %v6155_v24, 0 }
 0xd55   : > { %v2200_v26 = vpop.permute.xlu1 %2199  ;;  %v2204_v32 = vpop.permute.xlu0 %2203 }
 0xd56   : > { %3883 = vmatmul.mubr.msk.bf16.vlgmr.msra.gmra.mrb[36].mxu0 %vm1342_vm2, %v2200_v26 }
 0xd57   : > { %3893 = vmatpush3.bf16.xpose.msra.mxu0 %v2361_v28  ;;  %3894 = vmatprep.mubr.msk.bf16.mxu0 %vm5125_vm1, %v5124_v9 }
 0xd58   : > { %3904 = vmatprep.subr.bf16.mxu0 %v5124_v9 }
 0xd59   : > { %v2202_v30 = vpop.permute.xlu1 %2201 }
 0xd5a   : > { %3889 = vmatmul.mubr.msk.bf16.vlgmr.msra.gmra.mrb[36].mxu1 %vm1342_vm2, %v2202_v30 }
 0xd5b   : > { %3899 = vmatpush3.bf16.msra.mxu1 %v2473_v31  ;;  %3900 = vmatprep.mubr.msk.bf16.mxu1 %vm5125_vm1, %v5124_v9 }
 0xd5c   : > { %3910 = vmatprep.subr.bf16.mxu1 %v5124_v9 }
 0xd5e   : > { %3895 = vmatmul.mubr.msk.bf16.vlgmr.msra.gmra.mrb[40].mxu0 %vm1342_vm2, %v2204_v32 }
 0xd5f   : > { %3906 = vmatprep.mubr.msk.bf16.mxu0 %vm5125_vm1, %v5124_v9 }
 0xdb7   : > { %v2259_v33 = vpop.f32.mrb[32].mxu1 }
 0xdb8   : > { %v2403_v35 = vmul.f32 0.35355338, %v2259_v33  ;;  %v3878_v36 = vpop.f32.mrb[33].mxu1 }
 0xdb9   : > { %v2262_v37 = vpop.f32.mrb[34].mxu1 }
 0xdba   : > { %v3879_v38 = vpop.f32.mrb[35].mxu1  ;;  %v2413_v27 = vadd.f32 %v3633_v34, %v2403_v35 }
 0xdbc   : > { %v2417_v39 = vsel %vm1342_vm2, %v2413_v27, -inf }
 0xdbd   : > { %2418 = vmax.xlane.f32.xlu1 %v2417_v39 }
 0xe29   : > { %v2305_v25 = vpop.f32.mrb[36].mxu0 }
 0xe2a   : > { %v2404_v40 = vmul.f32 0.35355338, %v2305_v25  ;;  %v3884_v41 = vpop.f32.mrb[37].mxu0 }
 0xe2b   : > { %v2308_v42 = vpop.f32.mrb[38].mxu0 }
 0xe2c   : > { %v3885_v43 = vpop.f32.mrb[39].mxu0  ;;  %v2414_v44 = vadd.f32 %v3633_v34, %v2404_v40 }
 0xe2d   : > { %v2351_v47 = vpop.f32.mrb[36].mxu1 }
 0xe2e   : > { %v2405_v48 = vmul.f32 0.35355338, %v2351_v47  ;;  %v3890_v49 = vpop.f32.mrb[37].mxu1  ;;  %v2420_v51 = vsel %vm1342_vm2, %v2414_v44, -inf }
 0xe2f   : > { %v2354_v52 = vpop.f32.mrb[38].mxu1  ;;  %2421 = vmax.xlane.f32.xlu0 %v2420_v51  ;;  %v4260_v51 = vld [vmem:[#allocation29] sm:$0xff]  }
 0xe30   : > { %v3891_v18 = vpop.f32.mrb[39].mxu1  ;;  %v2415_v55 = vadd.f32 %v3633_v34, %v2405_v48 }
 0xe31   : > { %v2397_v56 = vpop.f32.mrb[40].mxu0  ;;  %v4261_v18 = vld [vmem:[#allocation29 + $0x8] sm:$0xff]  }
 0xe32   : > { %v2406_v57 = vmul.f32 0.35355338, %v2397_v56  ;;  %v3896_v58 = vpop.f32.mrb[41].mxu0  ;;  %v2423_v60 = vsel %vm1342_vm2, %v2415_v55, -inf }
 0xe33   : > { %2424 = vmax.xlane.f32.xlu0 %v2423_v60  ;;  %v2400_v61 = vpop.f32.mrb[42].mxu0  ;;  %v4262_v60 = vld [vmem:[#allocation26] sm:$0xff]  }
 0xe34   : > { %v3897_v62 = vpop.f32.mrb[43].mxu0  ;;  %v2416_v63 = vadd.f32 %v3633_v34, %v2406_v57  ;;  %v4263_v61 = vld [vmem:[#allocation26 + $0x8] sm:$0xff]  }
 0xe36   : > { %v2426_v29 = vsel %vm1342_vm2, %v2416_v63, -inf }
 0xe37   : > { %2427 = vmax.xlane.f32.xlu1 %v2426_v29 }
 0xe4a   : > { %v2419_v1 = vpop.xlane.xlu1 %2418 }
 0xe4b   : > { %v2429_v2 = vsub.f32 %v2413_v27, %v2419_v1 }
 0xe4d   : > { %v2433_v3 = vmul.f32 1.442695, %v2429_v2 }
 0xe4f   : > { %4300 = vpow2.f32 %v2433_v3 }
 0xe59   : > { %v4301_v4 = vpop.eup %4300 }
 0xe5a   : > { %v2441_v5 = vsel %vm1342_vm2, %v4301_v4, 0.0 }
 0xe5b   : > { %2442 = vadd.xlane.f32.xlu0 %v2441_v5 }
 0xebc   : > { %v2422_v6 = vpop.xlane.xlu0 %2421 }
 0xebd   : > { %v2430_v7 = vsub.f32 %v2414_v44, %v2422_v6 }
 0xebf   : > { %v2435_v10 = vmul.f32 1.442695, %v2430_v7 }
 0xec0   : > { %v2425_v59 = vpop.xlane.xlu0 %2424 }
 0xec1   : > { %4302 = vpow2.f32 %v2435_v10  ;;  %v2431_v11 = vsub.f32 %v2415_v55, %v2425_v59 }
 0xec3   : > { %v2437_v12 = vmul.f32 1.442695, %v2431_v11 }
 0xec4   : > { %v2428_v22 = vpop.xlane.xlu1 %2427 }
 0xec5   : > { %4304 = vpow2.f32 %v2437_v12  ;;  %v2432_v23 = vsub.f32 %v2416_v63, %v2428_v22 }
 0xec7   : > { %v2439_v26 = vmul.f32 1.442695, %v2432_v23 }
 0xecb   : > { %v4303_v13 = vpop.eup %4302 }
 0xecc   : > { %v2444_v14 = vsel %vm1342_vm2, %v4303_v13, 0.0 }
 0xecd   : > { %2445 = vadd.xlane.f32.xlu1 %v2444_v14 }
 0xecf   : > { %v4305_v15 = vpop.eup %4304 }
 0xed0   : > { %v2447_v20 = vsel %vm1342_vm2, %v4305_v15, 0.0 }
 0xed1   : > { %2448 = vadd.xlane.f32.xlu0 %v2447_v20 }
 0xede   : > { %2215 = vrot.lane.b32.xlu1 %v6155_v24, %s5127_s6 }
 0xee7   : > { %2213 = vrot.lane.b32.xlu0 %v6155_v24, %s5126_s29 }
 0xee8   : > { %v2443_v21 = vpop.xlane.xlu0 %2442 }
 0xee9   : > { %4306 = vrcp.f32 %v2443_v21 }
 0xeea   : > { %4308 = vpow2.f32 %v2439_v26 }
 0xef3   : > { %v4307_v28 = vpop.eup %4306 }
 0xef4   : > { %v2454_v31 = vmul.f32 %v4307_v28, %v4301_v4  ;;  %v4309_v32 = vpop.eup %4308  ;;  %v4264_v28 = vld [vmem:[#allocation28] sm:$0xff]  }
 0xef5   : > { %v2450_v33 = vsel %vm1342_vm2, %v4309_v32, 0.0 }
 0xef6   : > { %2461 = vst.msk [vmem:[%s6185_s7] sm:$0xff] %vm1342_vm2, %v2454_v31  ;;  %v2465_v30 = vpack.c.bf16 %v2454_v31, %v2454_v31 }
 0xef8   : > { %3901 = vmatmul.mubr.msk.bf16.vlgmr.msra.gmra.mrb[40].mxu1 %vm1342_vm2, %v2465_v30 }
 0xef9   : > { %3912 = vmatprep.mubr.msk.bf16.mxu1 %vm5125_vm1, %v5124_v9 }
 0xf02   : > { %2451 = vadd.xlane.f32.xlu1 %v2450_v33  ;;  %v4265_v33 = vld [vmem:[#allocation28 + $0x8] sm:$0xff]  }
 0xf13   : > { %2217 = vrot.lane.b32.xlu1 %v6155_v24, %s5128_s8 }
 0xf5a   : > { %v2446_v34 = vpop.xlane.xlu1 %2445 }
 0xf5b   : > { %4310 = vrcp.f32 %v2446_v34  ;;  %v2680_v34 = vrot.slane %v6110_v46, %v1266_v50 }
 0xf5e   : > { %v2449_v35 = vpop.xlane.xlu0 %2448  ;;  %v2216_v36 = vpop.permute.xlu1 %2215 }
 0xf5f   : > { %4312 = vrcp.f32 %v2449_v35  ;;  %v2565_v37 = vsel %vm1586_vm3, %v2216_v36, 0 }
 0xf60   : > { %3911 = vmatpush3.bf16.msra.mxu1 %v2565_v37 }
 0xf61   : > { %3922 = vmatprep.subr.bf16.mxu1 %v5124_v9 }
 0xf62   : > { %v2214_v38 = vpop.permute.xlu0 %2213 }
 0xf63   : > { %v2519_v27 = vsel %vm1586_vm3, %v2214_v38, 0 }
 0xf64   : > { %3905 = vmatpush3.bf16.msra.mxu0 %v2519_v27 }
 0xf65   : > { %v4311_v39 = vpop.eup %4310  ;;  %3916 = vmatprep.subr.bf16.mxu0 %v5124_v9 }
 0xf66   : > { %v2456_v25 = vmul.f32 %v4311_v39, %v4303_v13 }
 0xf68   : > { %2462 = vst.msk [vmem:[%s6185_s7 + $0x8] sm:$0xff] %vm1342_vm2, %v2456_v25  ;;  %v2466_v24 = vpack.c.bf16 %v2456_v25, %v2456_v25  ;;  %v2854_v25 = vrot.slane %v6110_v46, %v1796_v0 }
 0xf69   : > { %v4313_v40 = vpop.eup %4312 }
 0xf6a   : > { %v2458_v41 = vmul.f32 %v4313_v40, %v4305_v15  ;;  %3907 = vmatmul.mubr.msk.bf16.vlgmr.msra.gmra.mrb[44].mxu0 %vm1342_vm2, %v2466_v24 }
 0xf6b   : > { %3918 = vmatprep.mubr.msk.bf16.mxu0 %vm5125_vm1, %v5124_v9 }
 0xf6c   : > { %2463 = vst.msk [vmem:[%s6185_s7 + $0x10] sm:$0xff] %vm1342_vm2, %v2458_v41  ;;  %v2467_v42 = vpack.c.bf16 %v2458_v41, %v2458_v41 }
 0xf6e   : > { %3913 = vmatmul.mubr.msk.bf16.vlgmr.msra.gmra.mrb[44].mxu1 %vm1342_vm2, %v2467_v42 }
 0xf6f   : > { %3926 = vmatprep.mubr.msk.bf16.mxu1 %vm5125_vm1, %v5124_v9  ;;  %3923 = vmatpush3.bf16.msra.mxu1 %v4262_v60 }
 0xf70   : > { %3924 = vmatprep.subr.bf16.mxu1 %v5124_v9 }
 0xf73   : > { %3925 = vmatpush3.bf16.msra.mxu1 %v4263_v61 }
 0xf74   : > { %3938 = vmatprep.subr.bf16.mxu1 %v5124_v9 }
 0xf8f   : > { %v2452_v43 = vpop.xlane.xlu1 %2451 }
 0xf90   : > { %4314 = vrcp.f32 %v2452_v43 }
 0xf93   : > { %v2218_v44 = vpop.permute.xlu1 %2217 }
 0xf94   : > { %v2611_v47 = vsel %vm1586_vm3, %v2218_v44, 0 }
 0xf95   : > { %3917 = vmatpush3.bf16.msra.mxu0 %v2611_v47 }
 0xf96   : > { %3930 = vmatprep.subr.bf16.mxu0 %v5124_v9 }
 0xf9a   : > { %v4315_v48 = vpop.eup %4314 }
 0xf9b   : > { %v2460_v49 = vmul.f32 %v4315_v48, %v4309_v32 }
 0xf9d   : > { %2464 = vst.msk [vmem:[%s6185_s7 + $0x18] sm:$0xff] %vm1342_vm2, %v2460_v49  ;;  %v2468_v52 = vpack.c.bf16 %v2460_v49, %v2460_v49 }
 0xf9f   : > { %3919 = vmatmul.mubr.msk.bf16.vlgmr.msra.gmra.mrb[48].mxu0 %vm1342_vm2, %v2468_v52 }
 0xfa0   : > { %3931 = vmatpush3.bf16.msra.mxu0 %v4260_v51  ;;  %3934 = vmatprep.mubr.msk.bf16.mxu0 %vm5125_vm1, %v5124_v9 }
 0xfa1   : > { %3932 = vmatprep.subr.bf16.mxu0 %v5124_v9 }
 0xfa4   : > { %3933 = vmatpush3.bf16.msra.mxu0 %v4261_v18 }
 0xfa5   : > { %3946 = vmatprep.subr.bf16.mxu0 %v5124_v9 }
 0xfa7   : > { %3935 = vmatmul.mubr.msk.bf16.vlgmr.msra.gmra.mrb[52].mxu0 %vm1107_vm0, %v6121_v54 }
 0xfa8   : > { %3950 = vmatprep.mubr.msk.bf16.mxu0 %vm5125_vm1, %v5124_v9 }
 0xfcb   : > { %v2509_v55 = vpop.f32.mrb[40].mxu1 }
 0xfcc   : > { %v3902_v56 = vpop.f32.mrb[41].mxu1  ;;  %v2653_v22 = vpack.c.bf16 %v2509_v55, %v2509_v55 }
 0xfcd   : > { %v2512_v57 = vpop.f32.mrb[42].mxu1 }
 0xfce   : > { %v3903_v58 = vpop.f32.mrb[43].mxu1 }
0x103d   : > { %v2555_v62 = vpop.f32.mrb[44].mxu0 }
0x103e   : > { %v2654_v63 = vpack.c.bf16 %v2555_v62, %v2555_v62  ;;  %v3908_v29 = vpop.f32.mrb[45].mxu0  ;;  %v4266_v62 = vld [vmem:[#allocation31] sm:$0xff]  }
0x103f   : > { %v2558_v1 = vpop.f32.mrb[46].mxu0  ;;  %3947 = vmatpush3.bf16.msra.mxu0 %v4266_v62  ;;  %v4271_v29 = vld [vmem:[#allocation32 + $0x8] sm:$0xff]  }
0x1040   : > { %2658 = vrot.lane.b32.xlu0 %v2654_v63, %s5129_s3  ;;  %v3909_v54 = vpop.f32.mrb[47].mxu0  ;;  %v4267_v63 = vld [vmem:[#allocation31 + $0x8] sm:$0xff]   ;;  %3948 = vmatprep.subr.bf16.mxu0 %v5124_v9 }
0x1041   : > { %v2601_v2 = vpop.f32.mrb[44].mxu1 }
0x1042   : > { %v2655_v3 = vpack.c.bf16 %v2601_v2, %v2601_v2  ;;  %v3914_v4 = vpop.f32.mrb[45].mxu1 }
0x1043   : > { %v2604_v5 = vpop.f32.mrb[46].mxu1  ;;  %3949 = vmatpush3.bf16.msra.mxu0 %v4267_v63 }
0x1044   : > { %2661 = vrot.lane.b32.xlu1 %v2655_v3, %s5130_s2  ;;  %v3915_v6 = vpop.f32.mrb[47].mxu1  ;;  %3966 = vmatprep.subr.bf16.mxu0 %v5124_v9  ;;  %v2882_v3 = vrot.slane %v6110_v46, %v1970_v8  ;;  %v4273_v8 = vld [vmem:[#allocation32 + $0x18] sm:$0xff]  }
0x1045   : > { %v2887_v6 = vrot.slane %v6110_v46, %v1998_v45  ;;  %v4274_v45 = vld [vmem:[#allocation34] sm:$0xff]   ;;  %v3648_v46 = vld [vmem:[#allocation11] ss:$0 sm:$0xff] }
0x1072   : > { %v2647_v7 = vpop.f32.mrb[48].mxu0 }
0x1073   : > { %v2656_v10 = vpack.c.bf16 %v2647_v7, %v2647_v7  ;;  %v3920_v59 = vpop.f32.mrb[49].mxu0 }
0x1074   : > { %v2650_v11 = vpop.f32.mrb[50].mxu0  ;;  %v4268_v59 = vld [vmem:[#allocation35] sm:$0xff]  }
0x1075   : > { %2664 = vrot.lane.b32.xlu0 %v2656_v10, %s5131_s12  ;;  %v3921_v12 = vpop.f32.mrb[51].mxu0 }
0x1076   : > { %v4269_v12 = vld [vmem:[#allocation35 + $0x8] sm:$0xff]  }
0x107a   : > { %v2790_v13 = vpop.f32.mrb[52].mxu0 }
0x107b   : > { %v3936_v14 = vpop.f32.mrb[53].mxu0 }
0x107c   : > { %v2793_v15 = vpop.f32.mrb[54].mxu0 }
0x107d   : > { %v3937_v20 = vpop.f32.mrb[55].mxu0 }
0x10b2   : > { %v2659_v21 = vpop.permute.xlu0 %2658 }
0x10b3   : > { %v2668_v26 = vsel %vm1342_vm2, %v2653_v22, %v2659_v21 }
0x10b6   : > { %v2662_v23 = vpop.permute.xlu1 %2661 }
0x10b7   : > { %v2670_v31 = vsel %vm1784_vm4, %v2668_v26, %v2662_v23 }
0x10e7   : > { %v2665_v30 = vpop.permute.xlu0 %2664 }
0x10e8   : > { %v2672_v32 = vsel %vm1787_vm5, %v2670_v31, %v2665_v30 }
0x10e9   : > { %3927 = vmatmul.mubr.msk.bf16.vlgmr.msra.gmra.mrb[48].mxu1 %vm1107_vm0, %v2672_v32  ;;  %v4275_v32 = vld [vmem:[#allocation34 + $0x8] sm:$0xff]  }
0x10ea   : > { %3939 = vmatpush3.bf16.msra.mxu1 %v4264_v28  ;;  %3942 = vmatprep.mubr.msk.bf16.mxu1 %vm5125_vm1, %v5124_v9 }
0x10eb   : > { %3940 = vmatprep.subr.bf16.mxu1 %v5124_v9 }
0x10ee   : > { %3941 = vmatpush3.bf16.msra.mxu1 %v4265_v33 }
0x10ef   : > { %3954 = vmatprep.subr.bf16.mxu1 %v5124_v9 }
0x11bc   : > { %v2729_v35 = vpop.f32.mrb[48].mxu1 }
0x11bd   : > { %v2730_v36 = vadd.f32 %v2729_v35, %v2680_v34  ;;  %v3928_v37 = vpop.f32.mrb[49].mxu1 }
0x11be   : > { %v2732_v38 = vpop.f32.mrb[50].mxu1 }
0x11bf   : > { %v2735_v27 = vpack.c.bf16 %v2730_v36, %v2730_v36  ;;  %v3929_v39 = vpop.f32.mrb[51].mxu1 }
0x11c1   : > { %3943 = vmatmul.mubr.msk.bf16.vlgmr.msra.gmra.mrb[52].mxu1 %vm1107_vm0, %v2735_v27 }
0x11c2   : > { %3962 = vmatprep.mubr.msk.bf16.mxu1 %vm5125_vm1, %v5124_v9 }
0x1294   : > { %v2845_v24 = vpop.f32.mrb[52].mxu1 }
0x1295   : > { %v2846_v40 = vadd.f32 %v2845_v24, %v2790_v13  ;;  %v3944_v41 = vpop.f32.mrb[53].mxu1 }
0x1296   : > { %v2848_v42 = vpop.f32.mrb[54].mxu1 }
0x1297   : > { %v2855_v50 = vadd.f32 %v2854_v25, %v2846_v40  ;;  %v3945_v43 = vpop.f32.mrb[55].mxu1 }
0x1299   : > { %v3647_v44 = vmul.f32 -1.442695, %v2855_v50 }
0x129b   : > { %4316 = vpow2.f32 %v3647_v44 }
0x12a5   : > { %v4317_v47 = vpop.eup %4316 }
0x12a6   : > { %v2859_v48 = vadd.f32 1.0, %v4317_v47 }
0x12a8   : > { %4318 = vrcp.f32 %v2859_v48 }
0x12b2   : > { %v4319_v49 = vpop.eup %4318 }
0x12b3   : > { %v2863_v51 = vsub.f32 1.0, %v4319_v49  ;;  %v2862_v52 = vmul.f32 %v4319_v49, %v2730_v36 }
0x12b5   : > { %v2864_v18 = vmul.f32 %v2863_v51, %v6117_v53  ;;  %v4270_v53 = vld [vmem:[#allocation32] sm:$0xff]  }
0x12b6   : > { %3955 = vmatpush3.bf16.msra.mxu1 %v4270_v53 }
0x12b7   : > { %v2865_v55 = vadd.f32 %v2864_v18, %v2862_v52  ;;  %3956 = vmatprep.subr.bf16.mxu1 %v5124_v9 }
0x12b9   : > { %v2866_v56 = vsel %vm1107_vm0, %v2865_v55, 0.0 }
0x12ba   : > { %2867 = vadd.xlane.f32.xlu1 %v2866_v56  ;;  %3957 = vmatpush3.bf16.msra.mxu1 %v4271_v29 }
0x12bb   : > { %3958 = vmatprep.subr.bf16.mxu1 %v5124_v9 }
0x12be   : > { %3959 = vmatpush3.bf16.msra.mxu1 %v4272_v16 }
0x12bf   : > { %3960 = vmatprep.subr.bf16.mxu1 %v5124_v9 }
0x12c2   : > { %3961 = vmatpush3.bf16.msra.mxu1 %v4273_v8 }
0x1347   : > { %v2868_v0 = vpop.xlane.xlu1 %2867 }
0x1348   : > { %v2869_v57 = vmul.f32 0.03125, %v2868_v0 }
0x134a   : > { %v2870_v58 = vsub.f32 %v2865_v55, %v2869_v57 }
0x134c   : > { %v2871_v60 = vmul.f32 %v2870_v58, %v2870_v58 }
0x134e   : > { %v2872_v61 = vsel %vm1107_vm0, %v2871_v60, 0.0 }
0x134f   : > { %2873 = vadd.xlane.f32.xlu0 %v2872_v61 }
0x13dc   : > { %v2874_v1 = vpop.xlane.xlu0 %2873 }
0x13dd   : > { %v2875_v54 = vmul.f32 0.03125, %v2874_v1 }
0x13df   : > { %v2876_v2 = vadd.f32 1e-05, %v2875_v54 }
0x13e1   : > { %4320 = vrsqrt.f32 %v2876_v2 }
0x13eb   : > { %v4321_v4 = vpop.eup %4320 }
0x13ec   : > { %v2878_v5 = vmul.f32 %v4321_v4, %v2870_v58 }
0x13ee   : > { %v2883_v7 = vmul.f32 %v2882_v3, %v2878_v5 }
0x13f0   : > { %v6257_v10 = vadd.f32 %v2887_v6, %v2883_v7 }
0x13f2   : > { %v2889_v11 = vpack.c.bf16 %v6257_v10, %v6257_v10 }
0x13f4   : > { %3951 = vmatmul.mubr.msk.bf16.vlgmr.msra.gmra.mrb[56].mxu0 %vm1107_vm0, %v2889_v11 }
0x13f5   : > { %3967 = vmatpush3.bf16.msra.mxu0 %v4268_v59  ;;  %3970 = vmatprep.mubr.msk.bf16.mxu0 %vm5125_vm1, %v5124_v9 }
0x13f6   : > { %3968 = vmatprep.subr.bf16.mxu0 %v5124_v9 }
0x13f9   : > { %3969 = vmatpush3.bf16.msra.mxu0 %v4269_v12 }
0x13fa   : > { %3974 = vmatprep.subr.bf16.mxu0 %v5124_v9 }
0x13fc   : > { %3971 = vmatmul.mubr.msk.bf16.vlgmr.msra.gmra.mrb[60].mxu0 %vm1107_vm0, %v2889_v11 }
0x13fd   : > { %3978 = vmatprep.mubr.msk.bf16.mxu0 %vm5125_vm1, %v5124_v9  ;;  %3975 = vmatpush3.bf16.msra.mxu0 %v4274_v45 }
0x13fe   : > { %3976 = vmatprep.subr.bf16.mxu0 %v5124_v9  ;;  %v1104_v9 = vld [vmem:[#allocation10 + $0x10] sm:$0x3] }
0x13ff   : > { %v2969_v33 = vrot.slane %v1104_v9, %v5960_v17 }
0x1401   : > { %3977 = vmatpush3.bf16.msra.mxu0 %v4275_v32 }
0x14c7   : > { %v2950_v13 = vpop.f32.mrb[56].mxu0 }
0x14c8   : > { %v2951_v14 = vadd.f32 %v3648_v46, %v2950_v13  ;;  %v3952_v15 = vpop.f32.mrb[57].mxu0 }
0x14c9   : > { %v2953_v20 = vpop.f32.mrb[58].mxu0 }
0x14ca   : > { %v2956_v21 = vmax.f32 %v2951_v14, 0.0  ;;  %v3953_v22 = vpop.f32.mrb[59].mxu0 }
0x14cc   : > { %v2957_v23 = vpack.c.bf16 %v2956_v21, %v2956_v21 }
0x14ce   : > { %3963 = vmatmul.mubr.msk.bf16.vlgmr.msra.gmra.mrb[56].mxu1 %vm2994_vm6, %v2957_v23 }
0x14cf   : > { %v3093_v26 = vpop.f32.mrb[60].mxu0 }
0x14d0   : > { %v3972_v28 = vpop.f32.mrb[61].mxu0 }
0x14d1   : > { %v3096_v31 = vpop.f32.mrb[62].mxu0 }
0x14d2   : > { %v3973_v30 = vpop.f32.mrb[63].mxu0 }
0x15a1   : > { %v3032_v34 = vpop.f32.mrb[56].mxu1 }
0x15a2   : > { %v3033_v35 = vadd.f32 %v3032_v34, %v2969_v33  ;;  %v3964_v36 = vpop.f32.mrb[57].mxu1 }
0x15a3   : > { %v3035_v37 = vpop.f32.mrb[58].mxu1 }
0x15a4   : > { %v3038_v38 = vpack.c.bf16 %v3033_v35, %v3033_v35  ;;  %v3965_v27 = vpop.f32.mrb[59].mxu1 }
0x15a6   : > { %3979 = vmatmul.mubr.msk.bf16.vlgmr.msra.gmra.mrb[64].mxu0 %vm1107_vm0, %v3038_v38 }
0x15a7   : > { %4963 = shalt.err (!%p4960_p3)
}
0x15a8   : > { %s4964_s29 = scalar_lea.hbm %s6278_s5, 512  ;;  %s4968_s2 = scalar_lea.hbm %s6528_s0, 1024 }
0x15a9   : > { %p4965_p4 = scmp.ne.s32.totalorder %s6278_s5, %s4964_s29  ;;  %p4969_p11 = scmp.lt.u32.totalorder %s6278_s5, %s6528_s0 }
0x15aa   : > { %p4970_p6 = scmp.lt.u32.totalorder %s4968_s2, %s4964_s29  ;;  %p4972_p13 = scmp.lt.u32.totalorder %s4964_s29, %s6278_s5 }
0x15ab   : > { %p4966_p5 = pnand %p4965_p4, %p6529_p1 }
0x15ac   : > { %p4971_p7 = por %p4970_p6, %p4969_p11 }
0x15ad   : > { %p4967_p8 = pneg %p4966_p5 }
0x15ae   : > { %p4973_p10 = por %p4972_p13, %p4971_p7 }
0x15b0   : > { %p4974_p9 = pnand %p4973_p10, %p4967_p8 }
0x15b2   : > { %4977 = shalt.err (!%p4974_p9)
}
0x15b3   : > { %s5133_s7 = smov 128   ;;  %v3157_v17 = vrot.slane %v1104_v9, %v5965_v19  ;;  %s3666_s15 = sshll.u32 %s5276_s26, 7 }
0x15b4   : > { %4063 = dma.vmem_to_hbm [thread:$0]  (%p6529_p1), %s6280_s21, 512, %s6278_s5, %s3176_s27, %s5133_s7, %s5133_s7, %s5129_s3  }
0x15b5   : > { %s1093_s3 = scalar_lea.vmem [#allocation37], %s5881_s10  ;;  %s6530_s5 = sld [smem:[#allocation82_spill]] }
0x15b6   : > { %s3189_s21 = sshll.u32 %s1093_s3, 4  ;;  %s3171_s18 = scalar_lea.sflag [#allocation4], %s5878_s13  ;;  %s6316_s21 = int_to_ptr.vmem [resolvable:$true] %s3189_s21 }
0x15b7   : > { %s4978_s26 = scalar_lea.vmem %s6316_s21, 128  ;;  %s5134_s10 = smov [#allocation37]  }
0x15b8   : > { %p4979_p0 = scmp.ne.s32.totalorder %s6316_s21, %s4978_s26  ;;  %s4982_s17 = sshll.u32 %s5134_s10, 4  ;;  %s4983_s17 = int_to_ptr.vmem [resolvable:$false] %s4982_s17 }
0x15b9   : > { %s4984_s19 = scalar_lea.vmem %s4983_s17, 256  ;;  %p4985_p3 = scmp.lt.s32.totalorder %s6316_s21, %s4983_s17 }
0x15ba   : > { %p4980_p2 = pnand %p4979_p0, %p6529_p1  ;;  %p4986_p4 = scmp.lt.s32.totalorder %s4984_s19, %s4978_s26 }
0x15bb   : > { %s6314_s27 = scalar_lea.hbm %s6530_s5, %s3666_s15 }
0x15bc   : > { %p4981_p12 = pneg %p4980_p2  ;;  %p4987_p5 = por %p4986_p4, %p4985_p3 }
0x15be   : > { %p4988_p8 = pnand %p4987_p5, %p4981_p12 }
0x1679   : > { %v3148_v39 = vpop.f32.mrb[64].mxu0 }
0x167a   : > { %v3149_v25 = vadd.f32 %v3148_v39, %v3093_v26  ;;  %v3980_v24 = vpop.f32.mrb[65].mxu0 }
0x167b   : > { %v3151_v40 = vpop.f32.mrb[66].mxu0 }
0x167c   : > { %v3158_v41 = vadd.f32 %v3157_v17, %v3149_v25  ;;  %v3981_v42 = vpop.f32.mrb[67].mxu0 }
0x167e   : > { %v3663_v50 = vmul.f32 -1.442695, %v3158_v41 }
0x1680   : > { %4322 = vpow2.f32 %v3663_v50 }
0x168a   : > { %v4323_v43 = vpop.eup %4322 }
0x168b   : > { %v3162_v44 = vadd.f32 1.0, %v4323_v43 }
0x168d   : > { %4324 = vrcp.f32 %v3162_v44 }
0x1697   : > { %v4325_v47 = vpop.eup %4324 }
0x1698   : > { %v3166_v48 = vsub.f32 1.0, %v4325_v47  ;;  %v3165_v49 = vmul.f32 %v4325_v47, %v3033_v35 }
0x169a   : > { %v3167_v19 = vmul.f32 %v3166_v48, %v6257_v10 }
0x169c   : > { %v3168_v51 = vadd.f32 %v3167_v19, %v3165_v49 }
0x169e   : > { %3169 = vst.msk [vmem:[%s1093_s3] sm:$0xff] %vm1107_vm0, %v3168_v51 }
0x169f   : > { %4991 = shalt.err (!%p4988_p8)
}
0x16a0   : > { %s4992_s13 = scalar_lea.hbm %s6314_s27, 128  ;;  %s4996_s6 = scalar_lea.hbm %s6530_s5, 256 }
0x16a1   : > { %p4993_p11 = scmp.ne.s32.totalorder %s6314_s27, %s4992_s13  ;;  %p4997_p13 = scmp.lt.u32.totalorder %s6314_s27, %s6530_s5 }
0x16a2   : > { %p4998_p10 = scmp.lt.u32.totalorder %s4996_s6, %s4992_s13  ;;  %p5000_p0 = scmp.lt.u32.totalorder %s4992_s13, %s6314_s27 }
0x16a3   : > { %p4994_p6 = pnand %p4993_p11, %p6529_p1 }
0x16a4   : > { %p4999_p9 = por %p4998_p10, %p4997_p13 }
0x16a5   : > { %p4995_p7 = pneg %p4994_p6 }
0x16a6   : > { %p5001_p2 = por %p5000_p0, %p4999_p9 }
0x16a8   : > { %p5002_p12 = pnand %p5001_p2, %p4995_p7 }
0x16aa   : > { %5005 = shalt.err (!%p5002_p12)
}
0x16ab   : > { %4062 = dma.vmem_to_hbm [thread:$0]  (%p6529_p1), %s6316_s21, 128, %s6314_s27, %s3171_s18  }
0x16ac PF: > { %s6531_s12 = sld [smem:[#allocation59_spill]]  ;;  %s3217_s11 = sand.u32 1, %s5084_s4  }
0x16ad   : > { %p6533_p4 = scmp.ge.s32.totalorder %s5096_s25, 2  ;;  %s3218_s7 = scalar_lea.sflag [#allocation4], %s3217_s11 }
0x16b2   : > { %p6532_p3 = scmp.ne.s32.totalorder %s6531_s12, 0 }
0x16b4   : > { %p4135_p5 = pnand %p6533_p4, %p6532_p3 }
0x16b6   : > { %5075 = dma.done.wait (!%p4135_p5), %s3218_s7, 128  }
0x16b7   : > { %5077 = vsyncadd (!%p4135_p5), %s3218_s7, 4294967168  ;;  %s3227_s15 = scalar_lea.sflag [#allocation39], %s3217_s11 }
0x16b8   : > { %5079 = dma.done.wait (!%p4135_p5), %s3227_s15, 512  }
0x16b9   : > { %5081 = vsyncadd (!%p4135_p5), %s3227_s15, 4294966784  ;;  %s6534_s25 = sld [smem:[#allocation57_spill]]  ;;  %s6535_s20 = sld [smem:[#allocation55_spill]] }
0x16ba   : > { %s6536_s24 = sld [smem:[#allocation58_spill]]  ;;  %s6537_s4 = smov %s5088_s30 }
0x16bf   : > { %p55_p1 = scmp.ge.s32.totalorder %s6534_s25, 4   ;;  %s6538_s30 = smov %s6535_s20 }
0x16c1   :  { %57 = sbr.rel (!%p55_p1) target bundleno = 45 (0x2d), region = 279 }
0x16c8   :  { %3232 = vsyncpa [#allocation3], 1 }
0x16c9   :  { %3234 = vsyncpa [#allocation3 + $0x1], 1 }
0x16ca   :  { %3235 = vsyncpa [#allocation6], 1 }
0x16cb   :  { %3237 = vsyncpa [#allocation6 + $0x1], 1 }
0x16cc   :  { %3238 = vsyncpa [#allocation9], 1 }
0x16cd   :  { %3240 = vsyncpa [#allocation9 + $0x1], 1 }
0x16ce   :  { %3241 = vsyncpa [#allocation12], 1 }
0x16cf   :  { %3242 = vsyncpa [#allocation15], 1 }
0x16d0   :  { %3243 = vsyncpa [#allocation18], 1 }
0x16d1   :  { %3244 = vsyncpa [#allocation21], 1 }
0x16d2   :  { %3245 = vsyncpa [#allocation24], 1 }
0x16d3   :  { %3246 = vsyncpa [#allocation27], 1 }
0x16d4   :  { %3247 = vsyncpa [#allocation30], 1 }
0x16d5   :  { %3248 = vsyncpa [#allocation33], 1 }
0x16d6   :  { %3249 = vsyncpa [#allocation36], 1 }
0x16d7   :  { %3250 = vsyncpa [#allocation4], 1 }
0x16d8   :  { %3252 = vsyncpa [#allocation4 + $0x1], 1 }
0x16d9   :  { %3253 = vsyncpa [#allocation39], 1 }
0x16da   :  { %3255 = vsyncpa [#allocation39 + $0x1], 1 }

</bundles_post_ra>
